<compile_context>
chip_gen: v7x
topology: tpu7x:2x2x1
jax: 0.10.0
libtpu: 0.0.40
codegen_flags: <defaults>
</compile_context>

<pallas_src>
import functools

import numpy as np
import jax
import jax.numpy as jnp
from jax.experimental import pallas as pl
from jax.experimental.pallas import tpu as pltpu


# ---------------------------------------------------------------------------
# The single fused kernel
# ---------------------------------------------------------------------------
def _net_kernel(x_ref, cw1_ref, cb1_ref, cw2_ref, cb2_ref,
                fw1_ref, fb1_ref, fw2_ref, fb2_ref, fw3_ref, fb3_ref, o_ref):
    """x_ref: (32, TB, 96) bf16   -- rows = image row h, lanes = w*3 + c.
    cw1: (5, 96, 256) bf16 banded conv1 weight (out lane = dj*128 + pw*6 + oc)
    cw2: (5, 128, 256) bf16 banded conv2 weight (out lane = dj*128 + pw*16 + oc)
    fw1: (5, 128, 128) bf16 fc1 weight (rows = pw*16 + c, torch flatten order)
    fw2/fw3: (128, 128) bf16;  all biases f32, lane-padded.
    o_ref: (TB, 128) f32 (logits in lanes 0..9)."""
    tb = x_ref.shape[1]
    f32 = jnp.float32
    bf16 = jnp.bfloat16

    x = x_ref[...]                                            # (32, TB, 96) bf16

    # ---- conv1 + bias + ReLU ------------------------------------------------
    acc = None
    for i in range(5):                                        # kernel row i
        lhs = x[i:i + 28].reshape(28 * tb, 96)                # rows = oh*TB + b
        t = jnp.dot(lhs, cw1_ref[i], preferred_element_type=f32)
        acc = t if acc is None else acc + t
    y = jnp.maximum(acc + cb1_ref[...], 0.0)                  # (28*TB, 256) f32

    # ---- 2x2 max-pool #1 (rows via reshape, cols via the 128-lane halves) ---
    y = y.reshape(14, 2, tb, 256)
    y = jnp.maximum(y[:, 0], y[:, 1])                         # (14, TB, 256)
    m1 = jnp.maximum(y[:, :, :128], y[:, :, 128:]).astype(bf16)  # (14, TB, 128)

    # ---- conv2 + bias + ReLU ------------------------------------------------
    acc = None
    for i in range(5):
        lhs = m1[i:i + 10].reshape(10 * tb, 128)
        t = jnp.dot(lhs, cw2_ref[i], preferred_element_type=f32)
        acc = t if acc is None else acc + t
    y = jnp.maximum(acc + cb2_ref[...], 0.0)                  # (10*TB, 256) f32

    # ---- 2x2 max-pool #2 ----------------------------------------------------
    y = y.reshape(5, 2, tb, 256)
    y = jnp.maximum(y[:, 0], y[:, 1])                         # (5, TB, 256)
    m2 = jnp.maximum(y[:, :, :128], y[:, :, 128:]).astype(bf16)  # (5, TB, 128)

    # ---- fc1 + ReLU (torch flatten order folded into fw1's rows) ------------
    h = None
    for ph in range(5):                                       # pooled row index
        t = jnp.dot(m2[ph], fw1_ref[ph], preferred_element_type=f32)
        h = t if h is None else h + t
    h = jnp.maximum(h + fb1_ref[...], 0.0).astype(bf16)       # (TB, 128)

    # ---- fc2 + ReLU ----------------------------------------------------------
    h = jnp.dot(h, fw2_ref[...], preferred_element_type=f32) + fb2_ref[...]
    h = jnp.maximum(h, 0.0).astype(bf16)

    # ---- fc3 -----------------------------------------------------------------
    o = jnp.dot(h, fw3_ref[...], preferred_element_type=f32) + fb3_ref[...]
    o_ref[...] = o.astype(o_ref.dtype)


# ---------------------------------------------------------------------------
# Wrapper
# ---------------------------------------------------------------------------
def _pick_tb(batch):
    """Batch tile: multiple of 16 (aligned in-kernel reshapes), >=2 grid steps
    at real batch sizes (v7x megacore), per-block working set a few MB."""
    if batch >= 128:
        return 64
    if batch >= 64:
        return 32
    return 16


def _resident(shape):
    nd = len(shape)
    return pl.BlockSpec(shape, lambda b: (0,) * nd)           # weights stay put


def net_forward(kp, x):
    """x: (B, 3, 32, 32) NCHW f32 -- same interface as the torch module.
    Returns (B, 10) f32 logits."""
    assert x.shape[1:] == (3, 32, 32), x.shape
    B = x.shape[0]
    TB = _pick_tb(B)
    B_pad = pl.cdiv(B, TB) * TB

    # (b, c, h, w) -> (h, b, w*3+c): one tiny transpose of the raw input.
    xk = jnp.transpose(x.astype(jnp.bfloat16), (2, 0, 3, 1)).reshape(32, B, 96)
    if B_pad != B:
        xk = jnp.pad(xk, ((0, 0), (0, B_pad - B), (0, 0)))

    out = pl.pallas_call(
        _net_kernel,
        out_shape=jax.ShapeDtypeStruct((B_pad, 128), jnp.float32),
        grid=(B_pad // TB,),
        in_specs=[
            pl.BlockSpec((32, TB, 96), lambda b: (0, b, 0)),
            _resident(kp["cw1"].shape), _resident(kp["cb1"].shape),
            _resident(kp["cw2"].shape), _resident(kp["cb2"].shape),
            _resident(kp["fw1"].shape), _resident(kp["fb1"].shape),
            _resident(kp["fw2"].shape), _resident(kp["fb2"].shape),
            _resident(kp["fw3"].shape), _resident(kp["fb3"].shape),
        ],
        out_specs=pl.BlockSpec((TB, 128), lambda b: (b, 0)),
        compiler_params=pltpu.CompilerParams(
            dimension_semantics=("parallel",)),
    )(xk, kp["cw1"], kp["cb1"], kp["cw2"], kp["cb2"],
      kp["fw1"], kp["fb1"], kp["fw2"], kp["fb2"], kp["fw3"], kp["fb3"])
    return out[:B, :10]


# ---------------------------------------------------------------------------
# Parameters (torch layout) + one-time conversion to banded / padded layout
# ---------------------------------------------------------------------------
def init_params(key):
    ks = jax.random.split(key, 10)

    def u(k, shape, fan_in):
        bound = 1.0 / jnp.sqrt(fan_in)
        return jax.random.uniform(k, shape, jnp.float32, -bound, bound)

    p = {}
    p["conv1_w"] = u(ks[0], (6, 3, 5, 5), 3 * 5 * 5)
    p["conv1_b"] = u(ks[1], (6,), 3 * 5 * 5)
    p["conv2_w"] = u(ks[2], (16, 6, 5, 5), 6 * 5 * 5)
    p["conv2_b"] = u(ks[3], (16,), 6 * 5 * 5)
    p["fc1_w"] = u(ks[4], (120, 400), 400)
    p["fc1_b"] = u(ks[5], (120,), 400)
    p["fc2_w"] = u(ks[6], (84, 120), 120)
    p["fc2_b"] = u(ks[7], (84,), 120)
    p["fc3_w"] = u(ks[8], (10, 84), 84)
    p["fc3_b"] = u(ks[9], (10,), 84)
    return p


def prepare_params(p):
    """Build the banded conv weights / lane-padded fc weights once (host-side).

    Conv-1 output lane layout:  dj*128 + pw*6  + oc   (w_out = 2*pw + dj)
    Conv-2 output lane layout:  dj*128 + pw*16 + oc
    so the 2x2-pool column max is just max(lanes[:128], lanes[128:])."""
    w1 = np.asarray(p["conv1_w"], np.float32)   # (6, 3, 5, 5)
    b1 = np.asarray(p["conv1_b"], np.float32)
    w2 = np.asarray(p["conv2_w"], np.float32)   # (16, 6, 5, 5)
    b2 = np.asarray(p["conv2_b"], np.float32)
    f1w = np.asarray(p["fc1_w"], np.float32)    # (120, 400)
    f1b = np.asarray(p["fc1_b"], np.float32)
    f2w = np.asarray(p["fc2_w"], np.float32)    # (84, 120)
    f2b = np.asarray(p["fc2_b"], np.float32)
    f3w = np.asarray(p["fc3_w"], np.float32)    # (10, 84)
    f3b = np.asarray(p["fc3_b"], np.float32)

    # conv1: input lane = w*3 + c   (w in [0,32), c in [0,3))
    ow = np.arange(28)
    col1 = (ow % 2) * 128 + (ow // 2) * 6
    cw1 = np.zeros((5, 96, 256), np.float32)
    for i in range(5):
        for j in range(5):
            for c in range(3):
                for oc in range(6):
                    cw1[i, (ow + j) * 3 + c, col1 + oc] = w1[oc, c, i, j]
    cb1 = np.zeros((1, 256), np.float32)
    for oc in range(6):
        cb1[0, col1 + oc] = b1[oc]

    # conv2: input lane = u*6 + c   (u = pooled column in [0,14), c in [0,6))
    ow2 = np.arange(10)
    col2 = (ow2 % 2) * 128 + (ow2 // 2) * 16
    cw2 = np.zeros((5, 128, 256), np.float32)
    for i in range(5):
        for j in range(5):
            for c in range(6):
                for oc in range(16):
                    cw2[i, (ow2 + j) * 6 + c, col2 + oc] = w2[oc, c, i, j]
    cb2 = np.zeros((1, 256), np.float32)
    for oc in range(16):
        cb2[0, col2 + oc] = b2[oc]

    # fc1: rows = pw*16 + c, per pooled row ph; torch flatten order (c, h, w).
    fw1 = np.zeros((5, 128, 128), np.float32)
    for ph in range(5):
        for pw in range(5):
            for c in range(16):
                fw1[ph, pw * 16 + c, :120] = f1w[:, c * 25 + ph * 5 + pw]
    fb1 = np.zeros((1, 128), np.float32); fb1[0, :120] = f1b
    fw2 = np.zeros((128, 128), np.float32); fw2[:120, :84] = f2w.T
    fb2 = np.zeros((1, 128), np.float32); fb2[0, :84] = f2b
    fw3 = np.zeros((128, 128), np.float32); fw3[:84, :10] = f3w.T
    fb3 = np.zeros((1, 128), np.float32); fb3[0, :10] = f3b

    bf = jnp.bfloat16
    return {
        "cw1": jnp.asarray(cw1, bf), "cb1": jnp.asarray(cb1),
        "cw2": jnp.asarray(cw2, bf), "cb2": jnp.asarray(cb2),
        "fw1": jnp.asarray(fw1, bf), "fb1": jnp.asarray(fb1),
        "fw2": jnp.asarray(fw2, bf), "fb2": jnp.asarray(fb2),
        "fw3": jnp.asarray(fw3, bf), "fb3": jnp.asarray(fb3),
    }


# ---------------------------------------------------------------------------
# Pure-JAX f32 reference (torch semantics / layout)
# ---------------------------------------------------------------------------
def net_forward_ref(params, x):
    def conv(x, w, b):
        y = jax.lax.conv_general_dilated(
            x, w, (1, 1), "VALID",
            dimension_numbers=("NCHW", "OIHW", "NCHW"))
        return jax.nn.relu(y + b[None, :, None, None])

    def pool(x):
        return jax.lax.reduce_window(
            x, -jnp.inf, jax.lax.max, (1, 1, 2, 2), (1, 1, 2, 2), "VALID")

    x = pool(conv(x, params["conv1_w"], params["conv1_b"]))
    x = pool(conv(x, params["conv2_w"], params["conv2_b"]))
    x = x.reshape(x.shape[0], -1)
    x = jax.nn.relu(x @ params["fc1_w"].T + params["fc1_b"])
    x = jax.nn.relu(x @ params["fc2_w"].T + params["fc2_b"])
    return x @ params["fc3_w"].T + params["fc3_b"]


if __name__ == "__main__":
    key = jax.random.PRNGKey(0)
    kx, kp_ = jax.random.split(key)
    # CIFAR-10 style input (3x32x32 is required by fc1 = 16*5*5), small batch.
    x = jax.random.normal(kx, (2, 3, 32, 32), jnp.float32)
    params = init_params(kp_)
    kparams = prepare_params(params)          # one-time layout/dtype conversion

    fwd = jax.jit(net_forward)
    out = jax.block_until_ready(fwd(kparams, x))
    ref = jax.block_until_ready(net_forward_ref(params, x))

    assert out.shape == (2, 10), out.shape
    # bf16 MXU operands with f32 accumulation -> ~1% agreement vs f32 reference.
    assert jnp.allclose(out, ref, rtol=2e-2, atol=2e-2), (
        "mismatch vs pure-JAX reference, max abs diff = "
        f"{float(jnp.max(jnp.abs(out - ref)))}")
    print("KERNEL_OK")
</pallas_src>

<mosaic_0001>
module attributes {stable_mosaic.version = 11 : i64} {
  func.func @_net_kernel(%arg0: i32, %arg1: memref<32x16x96xbf16, #tpu.memory_space<vmem>>, %arg2: memref<5x96x256xbf16, #tpu.memory_space<vmem>>, %arg3: memref<1x256xf32, #tpu.memory_space<vmem>>, %arg4: memref<5x128x256xbf16, #tpu.memory_space<vmem>>, %arg5: memref<1x256xf32, #tpu.memory_space<vmem>>, %arg6: memref<5x128x128xbf16, #tpu.memory_space<vmem>>, %arg7: memref<1x128xf32, #tpu.memory_space<vmem>>, %arg8: memref<128x128xbf16, #tpu.memory_space<vmem>>, %arg9: memref<1x128xf32, #tpu.memory_space<vmem>>, %arg10: memref<128x128xbf16, #tpu.memory_space<vmem>>, %arg11: memref<1x128xf32, #tpu.memory_space<vmem>>, %arg12: memref<16x128xf32, #tpu.memory_space<vmem>>) attributes {dimension_semantics = [#tpu.dimension_semantics<parallel>], iteration_bounds = array<i64: 1>, scalar_prefetch = 0 : i64, scratch_operands = 0 : i64, tpu.core_type = #tpu.core_type<tc>, window_params = [{transform_indices = @transform_0, window_bounds = array<i64: 32, 16, 96>}, {pipeline_mode = #tpu.pipeline_mode<synchronous>, transform_indices = @transform_1, window_bounds = array<i64: 5, 96, 256>}, {pipeline_mode = #tpu.pipeline_mode<synchronous>, transform_indices = @transform_2, window_bounds = array<i64: 1, 256>}, {pipeline_mode = #tpu.pipeline_mode<synchronous>, transform_indices = @transform_3, window_bounds = array<i64: 5, 128, 256>}, {pipeline_mode = #tpu.pipeline_mode<synchronous>, transform_indices = @transform_4, window_bounds = array<i64: 1, 256>}, {pipeline_mode = #tpu.pipeline_mode<synchronous>, transform_indices = @transform_5, window_bounds = array<i64: 5, 128, 128>}, {pipeline_mode = #tpu.pipeline_mode<synchronous>, transform_indices = @transform_6, window_bounds = array<i64: 1, 128>}, {pipeline_mode = #tpu.pipeline_mode<synchronous>, transform_indices = @transform_7, window_bounds = array<i64: 128, 128>}, {pipeline_mode = #tpu.pipeline_mode<synchronous>, transform_indices = @transform_8, window_bounds = array<i64: 1, 128>}, {pipeline_mode = #tpu.pipeline_mode<synchronous>, transform_indices = @transform_9, window_bounds = array<i64: 128, 128>}, {pipeline_mode = #tpu.pipeline_mode<synchronous>, transform_indices = @transform_10, window_bounds = array<i64: 1, 128>}, {transform_indices = @transform_11, window_bounds = array<i64: 16, 128>}]} {
    %c0 = arith.constant 0 : index
    %c0_0 = arith.constant 0 : index
    %c0_1 = arith.constant 0 : index
    %0 = vector.load %arg1[%c0, %c0_0, %c0_1] : memref<32x16x96xbf16, #tpu.memory_space<vmem>>, vector<32x16x96xbf16>
    %1 = vector.extract_strided_slice %0 {offsets = [0, 0, 0], sizes = [28, 16, 96], strides = [1, 1, 1]} : vector<32x16x96xbf16> to vector<28x16x96xbf16>
    %2 = vector.shape_cast %1 : vector<28x16x96xbf16> to vector<448x96xbf16>
    %c0_2 = arith.constant 0 : index
    %c0_3 = arith.constant 0 : index
    %c0_4 = arith.constant 0 : index
    %3 = vector.load %arg2[%c0_2, %c0_3, %c0_4] : memref<5x96x256xbf16, #tpu.memory_space<vmem>>, vector<1x96x256xbf16>
    %4 = vector.shape_cast %3 : vector<1x96x256xbf16> to vector<96x256xbf16>
    %cst = arith.constant dense<0.000000e+00> : vector<448x256xf32>
    %5 = tpu.matmul %2, %4, %cst {dimension_numbers = #tpu.dot_dimension_numbers<[1], [0], [0], [1], [0, 0, 1, 1], [], []>} : vector<448x96xbf16>, vector<96x256xbf16>, vector<448x256xf32> -> vector<448x256xf32>
    %6 = vector.extract_strided_slice %0 {offsets = [1, 0, 0], sizes = [28, 16, 96], strides = [1, 1, 1]} : vector<32x16x96xbf16> to vector<28x16x96xbf16>
    %7 = vector.shape_cast %6 : vector<28x16x96xbf16> to vector<448x96xbf16>
    %c1 = arith.constant 1 : index
    %c0_5 = arith.constant 0 : index
    %c0_6 = arith.constant 0 : index
    %8 = vector.load %arg2[%c1, %c0_5, %c0_6] : memref<5x96x256xbf16, #tpu.memory_space<vmem>>, vector<1x96x256xbf16>
    %9 = vector.shape_cast %8 : vector<1x96x256xbf16> to vector<96x256xbf16>
    %cst_7 = arith.constant dense<0.000000e+00> : vector<448x256xf32>
    %10 = tpu.matmul %7, %9, %cst_7 {dimension_numbers = #tpu.dot_dimension_numbers<[1], [0], [0], [1], [0, 0, 1, 1], [], []>} : vector<448x96xbf16>, vector<96x256xbf16>, vector<448x256xf32> -> vector<448x256xf32>
    %11 = arith.addf %5, %10 : vector<448x256xf32>
    %12 = vector.extract_strided_slice %0 {offsets = [2, 0, 0], sizes = [28, 16, 96], strides = [1, 1, 1]} : vector<32x16x96xbf16> to vector<28x16x96xbf16>
    %13 = vector.shape_cast %12 : vector<28x16x96xbf16> to vector<448x96xbf16>
    %c2 = arith.constant 2 : index
    %c0_8 = arith.constant 0 : index
    %c0_9 = arith.constant 0 : index
    %14 = vector.load %arg2[%c2, %c0_8, %c0_9] : memref<5x96x256xbf16, #tpu.memory_space<vmem>>, vector<1x96x256xbf16>
    %15 = vector.shape_cast %14 : vector<1x96x256xbf16> to vector<96x256xbf16>
    %cst_10 = arith.constant dense<0.000000e+00> : vector<448x256xf32>
    %16 = tpu.matmul %13, %15, %cst_10 {dimension_numbers = #tpu.dot_dimension_numbers<[1], [0], [0], [1], [0, 0, 1, 1], [], []>} : vector<448x96xbf16>, vector<96x256xbf16>, vector<448x256xf32> -> vector<448x256xf32>
    %17 = arith.addf %11, %16 : vector<448x256xf32>
    %18 = vector.extract_strided_slice %0 {offsets = [3, 0, 0], sizes = [28, 16, 96], strides = [1, 1, 1]} : vector<32x16x96xbf16> to vector<28x16x96xbf16>
    %19 = vector.shape_cast %18 : vector<28x16x96xbf16> to vector<448x96xbf16>
    %c3 = arith.constant 3 : index
    %c0_11 = arith.constant 0 : index
    %c0_12 = arith.constant 0 : index
    %20 = vector.load %arg2[%c3, %c0_11, %c0_12] : memref<5x96x256xbf16, #tpu.memory_space<vmem>>, vector<1x96x256xbf16>
    %21 = vector.shape_cast %20 : vector<1x96x256xbf16> to vector<96x256xbf16>
    %cst_13 = arith.constant dense<0.000000e+00> : vector<448x256xf32>
    %22 = tpu.matmul %19, %21, %cst_13 {dimension_numbers = #tpu.dot_dimension_numbers<[1], [0], [0], [1], [0, 0, 1, 1], [], []>} : vector<448x96xbf16>, vector<96x256xbf16>, vector<448x256xf32> -> vector<448x256xf32>
    %23 = arith.addf %17, %22 : vector<448x256xf32>
    %24 = vector.extract_strided_slice %0 {offsets = [4, 0, 0], sizes = [28, 16, 96], strides = [1, 1, 1]} : vector<32x16x96xbf16> to vector<28x16x96xbf16>
    %25 = vector.shape_cast %24 : vector<28x16x96xbf16> to vector<448x96xbf16>
    %c4 = arith.constant 4 : index
    %c0_14 = arith.constant 0 : index
    %c0_15 = arith.constant 0 : index
    %26 = vector.load %arg2[%c4, %c0_14, %c0_15] : memref<5x96x256xbf16, #tpu.memory_space<vmem>>, vector<1x96x256xbf16>
    %27 = vector.shape_cast %26 : vector<1x96x256xbf16> to vector<96x256xbf16>
    %cst_16 = arith.constant dense<0.000000e+00> : vector<448x256xf32>
    %28 = tpu.matmul %25, %27, %cst_16 {dimension_numbers = #tpu.dot_dimension_numbers<[1], [0], [0], [1], [0, 0, 1, 1], [], []>} : vector<448x96xbf16>, vector<96x256xbf16>, vector<448x256xf32> -> vector<448x256xf32>
    %29 = arith.addf %23, %28 : vector<448x256xf32>
    %c0_17 = arith.constant 0 : index
    %c0_18 = arith.constant 0 : index
    %30 = vector.load %arg3[%c0_17, %c0_18] : memref<1x256xf32, #tpu.memory_space<vmem>>, vector<1x256xf32>
    %31 = vector.broadcast %30 : vector<1x256xf32> to vector<448x256xf32>
    %32 = arith.addf %29, %31 : vector<448x256xf32>
    %cst_19 = arith.constant 0.000000e+00 : f32
    %33 = vector.broadcast %cst_19 : f32 to vector<448x256xf32>
    %34 = arith.maximumf %32, %33 : vector<448x256xf32>
    %35 = vector.shape_cast %34 : vector<448x256xf32> to vector<14x2x16x256xf32>
    %36 = vector.extract_strided_slice %35 {offsets = [0, 0, 0, 0], sizes = [14, 1, 16, 256], strides = [1, 1, 1, 1]} : vector<14x2x16x256xf32> to vector<14x1x16x256xf32>
    %37 = vector.shape_cast %36 : vector<14x1x16x256xf32> to vector<14x16x256xf32>
    %38 = vector.extract_strided_slice %35 {offsets = [0, 1, 0, 0], sizes = [14, 1, 16, 256], strides = [1, 1, 1, 1]} : vector<14x2x16x256xf32> to vector<14x1x16x256xf32>
    %39 = vector.shape_cast %38 : vector<14x1x16x256xf32> to vector<14x16x256xf32>
    %40 = arith.maximumf %37, %39 : vector<14x16x256xf32>
    %41 = vector.extract_strided_slice %40 {offsets = [0, 0, 0], sizes = [14, 16, 128], strides = [1, 1, 1]} : vector<14x16x256xf32> to vector<14x16x128xf32>
    %42 = vector.extract_strided_slice %40 {offsets = [0, 0, 128], sizes = [14, 16, 128], strides = [1, 1, 1]} : vector<14x16x256xf32> to vector<14x16x128xf32>
    %43 = arith.maximumf %41, %42 : vector<14x16x128xf32>
    %44 = arith.truncf %43 : vector<14x16x128xf32> to vector<14x16x128xbf16>
    %45 = vector.extract_strided_slice %44 {offsets = [0, 0, 0], sizes = [10, 16, 128], strides = [1, 1, 1]} : vector<14x16x128xbf16> to vector<10x16x128xbf16>
    %46 = vector.shape_cast %45 : vector<10x16x128xbf16> to vector<160x128xbf16>
    %c0_20 = arith.constant 0 : index
    %c0_21 = arith.constant 0 : index
    %c0_22 = arith.constant 0 : index
    %47 = vector.load %arg4[%c0_20, %c0_21, %c0_22] : memref<5x128x256xbf16, #tpu.memory_space<vmem>>, vector<1x128x256xbf16>
    %48 = vector.shape_cast %47 : vector<1x128x256xbf16> to vector<128x256xbf16>
    %cst_23 = arith.constant dense<0.000000e+00> : vector<160x256xf32>
    %49 = tpu.matmul %46, %48, %cst_23 {dimension_numbers = #tpu.dot_dimension_numbers<[1], [0], [0], [1], [0, 0, 1, 1], [], []>} : vector<160x128xbf16>, vector<128x256xbf16>, vector<160x256xf32> -> vector<160x256xf32>
    %50 = vector.extract_strided_slice %44 {offsets = [1, 0, 0], sizes = [10, 16, 128], strides = [1, 1, 1]} : vector<14x16x128xbf16> to vector<10x16x128xbf16>
    %51 = vector.shape_cast %50 : vector<10x16x128xbf16> to vector<160x128xbf16>
    %c1_24 = arith.constant 1 : index
    %c0_25 = arith.constant 0 : index
    %c0_26 = arith.constant 0 : index
    %52 = vector.load %arg4[%c1_24, %c0_25, %c0_26] : memref<5x128x256xbf16, #tpu.memory_space<vmem>>, vector<1x128x256xbf16>
    %53 = vector.shape_cast %52 : vector<1x128x256xbf16> to vector<128x256xbf16>
    %cst_27 = arith.constant dense<0.000000e+00> : vector<160x256xf32>
    %54 = tpu.matmul %51, %53, %cst_27 {dimension_numbers = #tpu.dot_dimension_numbers<[1], [0], [0], [1], [0, 0, 1, 1], [], []>} : vector<160x128xbf16>, vector<128x256xbf16>, vector<160x256xf32> -> vector<160x256xf32>
    %55 = arith.addf %49, %54 : vector<160x256xf32>
    %56 = vector.extract_strided_slice %44 {offsets = [2, 0, 0], sizes = [10, 16, 128], strides = [1, 1, 1]} : vector<14x16x128xbf16> to vector<10x16x128xbf16>
    %57 = vector.shape_cast %56 : vector<10x16x128xbf16> to vector<160x128xbf16>
    %c2_28 = arith.constant 2 : index
    %c0_29 = arith.constant 0 : index
    %c0_30 = arith.constant 0 : index
    %58 = vector.load %arg4[%c2_28, %c0_29, %c0_30] : memref<5x128x256xbf16, #tpu.memory_space<vmem>>, vector<1x128x256xbf16>
    %59 = vector.shape_cast %58 : vector<1x128x256xbf16> to vector<128x256xbf16>
    %cst_31 = arith.constant dense<0.000000e+00> : vector<160x256xf32>
    %60 = tpu.matmul %57, %59, %cst_31 {dimension_numbers = #tpu.dot_dimension_numbers<[1], [0], [0], [1], [0, 0, 1, 1], [], []>} : vector<160x128xbf16>, vector<128x256xbf16>, vector<160x256xf32> -> vector<160x256xf32>
    %61 = arith.addf %55, %60 : vector<160x256xf32>
    %62 = vector.extract_strided_slice %44 {offsets = [3, 0, 0], sizes = [10, 16, 128], strides = [1, 1, 1]} : vector<14x16x128xbf16> to vector<10x16x128xbf16>
    %63 = vector.shape_cast %62 : vector<10x16x128xbf16> to vector<160x128xbf16>
    %c3_32 = arith.constant 3 : index
    %c0_33 = arith.constant 0 : index
    %c0_34 = arith.constant 0 : index
    %64 = vector.load %arg4[%c3_32, %c0_33, %c0_34] : memref<5x128x256xbf16, #tpu.memory_space<vmem>>, vector<1x128x256xbf16>
    %65 = vector.shape_cast %64 : vector<1x128x256xbf16> to vector<128x256xbf16>
    %cst_35 = arith.constant dense<0.000000e+00> : vector<160x256xf32>
    %66 = tpu.matmul %63, %65, %cst_35 {dimension_numbers = #tpu.dot_dimension_numbers<[1], [0], [0], [1], [0, 0, 1, 1], [], []>} : vector<160x128xbf16>, vector<128x256xbf16>, vector<160x256xf32> -> vector<160x256xf32>
    %67 = arith.addf %61, %66 : vector<160x256xf32>
    %68 = vector.extract_strided_slice %44 {offsets = [4, 0, 0], sizes = [10, 16, 128], strides = [1, 1, 1]} : vector<14x16x128xbf16> to vector<10x16x128xbf16>
    %69 = vector.shape_cast %68 : vector<10x16x128xbf16> to vector<160x128xbf16>
    %c4_36 = arith.constant 4 : index
    %c0_37 = arith.constant 0 : index
    %c0_38 = arith.constant 0 : index
    %70 = vector.load %arg4[%c4_36, %c0_37, %c0_38] : memref<5x128x256xbf16, #tpu.memory_space<vmem>>, vector<1x128x256xbf16>
    %71 = vector.shape_cast %70 : vector<1x128x256xbf16> to vector<128x256xbf16>
    %cst_39 = arith.constant dense<0.000000e+00> : vector<160x256xf32>
    %72 = tpu.matmul %69, %71, %cst_39 {dimension_numbers = #tpu.dot_dimension_numbers<[1], [0], [0], [1], [0, 0, 1, 1], [], []>} : vector<160x128xbf16>, vector<128x256xbf16>, vector<160x256xf32> -> vector<160x256xf32>
    %73 = arith.addf %67, %72 : vector<160x256xf32>
    %c0_40 = arith.constant 0 : index
    %c0_41 = arith.constant 0 : index
    %74 = vector.load %arg5[%c0_40, %c0_41] : memref<1x256xf32, #tpu.memory_space<vmem>>, vector<1x256xf32>
    %75 = vector.broadcast %74 : vector<1x256xf32> to vector<160x256xf32>
    %76 = arith.addf %73, %75 : vector<160x256xf32>
    %cst_42 = arith.constant 0.000000e+00 : f32
    %77 = vector.broadcast %cst_42 : f32 to vector<160x256xf32>
    %78 = arith.maximumf %76, %77 : vector<160x256xf32>
    %79 = vector.shape_cast %78 : vector<160x256xf32> to vector<5x2x16x256xf32>
    %80 = vector.extract_strided_slice %79 {offsets = [0, 0, 0, 0], sizes = [5, 1, 16, 256], strides = [1, 1, 1, 1]} : vector<5x2x16x256xf32> to vector<5x1x16x256xf32>
    %81 = vector.shape_cast %80 : vector<5x1x16x256xf32> to vector<5x16x256xf32>
    %82 = vector.extract_strided_slice %79 {offsets = [0, 1, 0, 0], sizes = [5, 1, 16, 256], strides = [1, 1, 1, 1]} : vector<5x2x16x256xf32> to vector<5x1x16x256xf32>
    %83 = vector.shape_cast %82 : vector<5x1x16x256xf32> to vector<5x16x256xf32>
    %84 = arith.maximumf %81, %83 : vector<5x16x256xf32>
    %85 = vector.extract_strided_slice %84 {offsets = [0, 0, 0], sizes = [5, 16, 128], strides = [1, 1, 1]} : vector<5x16x256xf32> to vector<5x16x128xf32>
    %86 = vector.extract_strided_slice %84 {offsets = [0, 0, 128], sizes = [5, 16, 128], strides = [1, 1, 1]} : vector<5x16x256xf32> to vector<5x16x128xf32>
    %87 = arith.maximumf %85, %86 : vector<5x16x128xf32>
    %88 = arith.truncf %87 : vector<5x16x128xf32> to vector<5x16x128xbf16>
    %89 = vector.extract_strided_slice %88 {offsets = [0, 0, 0], sizes = [1, 16, 128], strides = [1, 1, 1]} : vector<5x16x128xbf16> to vector<1x16x128xbf16>
    %90 = vector.shape_cast %89 : vector<1x16x128xbf16> to vector<16x128xbf16>
    %c0_43 = arith.constant 0 : index
    %c0_44 = arith.constant 0 : index
    %c0_45 = arith.constant 0 : index
    %91 = vector.load %arg6[%c0_43, %c0_44, %c0_45] : memref<5x128x128xbf16, #tpu.memory_space<vmem>>, vector<1x128x128xbf16>
    %92 = vector.shape_cast %91 : vector<1x128x128xbf16> to vector<128x128xbf16>
    %cst_46 = arith.constant dense<0.000000e+00> : vector<16x128xf32>
    %93 = tpu.matmul %90, %92, %cst_46 {dimension_numbers = #tpu.dot_dimension_numbers<[1], [0], [0], [1], [0, 0, 1, 1], [], []>} : vector<16x128xbf16>, vector<128x128xbf16>, vector<16x128xf32> -> vector<16x128xf32>
    %94 = vector.extract_strided_slice %88 {offsets = [1, 0, 0], sizes = [1, 16, 128], strides = [1, 1, 1]} : vector<5x16x128xbf16> to vector<1x16x128xbf16>
    %95 = vector.shape_cast %94 : vector<1x16x128xbf16> to vector<16x128xbf16>
    %c1_47 = arith.constant 1 : index
    %c0_48 = arith.constant 0 : index
    %c0_49 = arith.constant 0 : index
    %96 = vector.load %arg6[%c1_47, %c0_48, %c0_49] : memref<5x128x128xbf16, #tpu.memory_space<vmem>>, vector<1x128x128xbf16>
    %97 = vector.shape_cast %96 : vector<1x128x128xbf16> to vector<128x128xbf16>
    %cst_50 = arith.constant dense<0.000000e+00> : vector<16x128xf32>
    %98 = tpu.matmul %95, %97, %cst_50 {dimension_numbers = #tpu.dot_dimension_numbers<[1], [0], [0], [1], [0, 0, 1, 1], [], []>} : vector<16x128xbf16>, vector<128x128xbf16>, vector<16x128xf32> -> vector<16x128xf32>
    %99 = arith.addf %93, %98 : vector<16x128xf32>
    %100 = vector.extract_strided_slice %88 {offsets = [2, 0, 0], sizes = [1, 16, 128], strides = [1, 1, 1]} : vector<5x16x128xbf16> to vector<1x16x128xbf16>
    %101 = vector.shape_cast %100 : vector<1x16x128xbf16> to vector<16x128xbf16>
    %c2_51 = arith.constant 2 : index
    %c0_52 = arith.constant 0 : index
    %c0_53 = arith.constant 0 : index
    %102 = vector.load %arg6[%c2_51, %c0_52, %c0_53] : memref<5x128x128xbf16, #tpu.memory_space<vmem>>, vector<1x128x128xbf16>
    %103 = vector.shape_cast %102 : vector<1x128x128xbf16> to vector<128x128xbf16>
    %cst_54 = arith.constant dense<0.000000e+00> : vector<16x128xf32>
    %104 = tpu.matmul %101, %103, %cst_54 {dimension_numbers = #tpu.dot_dimension_numbers<[1], [0], [0], [1], [0, 0, 1, 1], [], []>} : vector<16x128xbf16>, vector<128x128xbf16>, vector<16x128xf32> -> vector<16x128xf32>
    %105 = arith.addf %99, %104 : vector<16x128xf32>
    %106 = vector.extract_strided_slice %88 {offsets = [3, 0, 0], sizes = [1, 16, 128], strides = [1, 1, 1]} : vector<5x16x128xbf16> to vector<1x16x128xbf16>
    %107 = vector.shape_cast %106 : vector<1x16x128xbf16> to vector<16x128xbf16>
    %c3_55 = arith.constant 3 : index
    %c0_56 = arith.constant 0 : index
    %c0_57 = arith.constant 0 : index
    %108 = vector.load %arg6[%c3_55, %c0_56, %c0_57] : memref<5x128x128xbf16, #tpu.memory_space<vmem>>, vector<1x128x128xbf16>
    %109 = vector.shape_cast %108 : vector<1x128x128xbf16> to vector<128x128xbf16>
    %cst_58 = arith.constant dense<0.000000e+00> : vector<16x128xf32>
    %110 = tpu.matmul %107, %109, %cst_58 {dimension_numbers = #tpu.dot_dimension_numbers<[1], [0], [0], [1], [0, 0, 1, 1], [], []>} : vector<16x128xbf16>, vector<128x128xbf16>, vector<16x128xf32> -> vector<16x128xf32>
    %111 = arith.addf %105, %110 : vector<16x128xf32>
    %112 = vector.extract_strided_slice %88 {offsets = [4, 0, 0], sizes = [1, 16, 128], strides = [1, 1, 1]} : vector<5x16x128xbf16> to vector<1x16x128xbf16>
    %113 = vector.shape_cast %112 : vector<1x16x128xbf16> to vector<16x128xbf16>
    %c4_59 = arith.constant 4 : index
    %c0_60 = arith.constant 0 : index
    %c0_61 = arith.constant 0 : index
    %114 = vector.load %arg6[%c4_59, %c0_60, %c0_61] : memref<5x128x128xbf16, #tpu.memory_space<vmem>>, vector<1x128x128xbf16>
    %115 = vector.shape_cast %114 : vector<1x128x128xbf16> to vector<128x128xbf16>
    %cst_62 = arith.constant dense<0.000000e+00> : vector<16x128xf32>
    %116 = tpu.matmul %113, %115, %cst_62 {dimension_numbers = #tpu.dot_dimension_numbers<[1], [0], [0], [1], [0, 0, 1, 1], [], []>} : vector<16x128xbf16>, vector<128x128xbf16>, vector<16x128xf32> -> vector<16x128xf32>
    %117 = arith.addf %111, %116 : vector<16x128xf32>
    %c0_63 = arith.constant 0 : index
    %c0_64 = arith.constant 0 : index
    %118 = vector.load %arg7[%c0_63, %c0_64] : memref<1x128xf32, #tpu.memory_space<vmem>>, vector<1x128xf32>
    %119 = vector.broadcast %118 : vector<1x128xf32> to vector<16x128xf32>
    %120 = arith.addf %117, %119 : vector<16x128xf32>
    %cst_65 = arith.constant 0.000000e+00 : f32
    %121 = vector.broadcast %cst_65 : f32 to vector<16x128xf32>
    %122 = arith.maximumf %120, %121 : vector<16x128xf32>
    %123 = arith.truncf %122 : vector<16x128xf32> to vector<16x128xbf16>
    %c0_66 = arith.constant 0 : index
    %c0_67 = arith.constant 0 : index
    %124 = vector.load %arg8[%c0_66, %c0_67] : memref<128x128xbf16, #tpu.memory_space<vmem>>, vector<128x128xbf16>
    %cst_68 = arith.constant dense<0.000000e+00> : vector<16x128xf32>
    %125 = tpu.matmul %123, %124, %cst_68 {dimension_numbers = #tpu.dot_dimension_numbers<[1], [0], [0], [1], [0, 0, 1, 1], [], []>} : vector<16x128xbf16>, vector<128x128xbf16>, vector<16x128xf32> -> vector<16x128xf32>
    %c0_69 = arith.constant 0 : index
    %c0_70 = arith.constant 0 : index
    %126 = vector.load %arg9[%c0_69, %c0_70] : memref<1x128xf32, #tpu.memory_space<vmem>>, vector<1x128xf32>
    %127 = vector.broadcast %126 : vector<1x128xf32> to vector<16x128xf32>
    %128 = arith.addf %125, %127 : vector<16x128xf32>
    %cst_71 = arith.constant 0.000000e+00 : f32
    %129 = vector.broadcast %cst_71 : f32 to vector<16x128xf32>
    %130 = arith.maximumf %128, %129 : vector<16x128xf32>
    %131 = arith.truncf %130 : vector<16x128xf32> to vector<16x128xbf16>
    %c0_72 = arith.constant 0 : index
    %c0_73 = arith.constant 0 : index
    %132 = vector.load %arg10[%c0_72, %c0_73] : memref<128x128xbf16, #tpu.memory_space<vmem>>, vector<128x128xbf16>
    %cst_74 = arith.constant dense<0.000000e+00> : vector<16x128xf32>
    %133 = tpu.matmul %131, %132, %cst_74 {dimension_numbers = #tpu.dot_dimension_numbers<[1], [0], [0], [1], [0, 0, 1, 1], [], []>} : vector<16x128xbf16>, vector<128x128xbf16>, vector<16x128xf32> -> vector<16x128xf32>
    %c0_75 = arith.constant 0 : index
    %c0_76 = arith.constant 0 : index
    %134 = vector.load %arg11[%c0_75, %c0_76] : memref<1x128xf32, #tpu.memory_space<vmem>>, vector<1x128xf32>
    %135 = vector.broadcast %134 : vector<1x128xf32> to vector<16x128xf32>
    %136 = arith.addf %133, %135 : vector<16x128xf32>
    %c0_77 = arith.constant 0 : index
    %c0_78 = arith.constant 0 : index
    %137 = vector.load %arg12[%c0_77, %c0_78] : memref<16x128xf32, #tpu.memory_space<vmem>>, vector<16x128xf32>
    tpu.vector_store %arg12[%c0_77, %c0_78], %136 {strides = array<i32>} : memref<16x128xf32, #tpu.memory_space<vmem>>, vector<16x128xf32>,
    return
  }
  func.func @transform_0(%arg0: i32) -> (i32, i32, i32) {
    %c0_i32 = arith.constant 0 : i32
    %c0_i32_0 = arith.constant 0 : i32
    %c0_i32_1 = arith.constant 0 : i32
    return %c0_i32, %arg0, %c0_i32_0 : i32, i32, i32
  }
  func.func @transform_1(%arg0: i32) -> (i32, i32, i32) {
    %c0_i32 = arith.constant 0 : i32
    %c0_i32_0 = arith.constant 0 : i32
    %c0_i32_1 = arith.constant 0 : i32
    %c0_i32_2 = arith.constant 0 : i32
    return %c0_i32, %c0_i32_0, %c0_i32_1 : i32, i32, i32
  }
  func.func @transform_2(%arg0: i32) -> (i32, i32) {
    %c0_i32 = arith.constant 0 : i32
    %c0_i32_0 = arith.constant 0 : i32
    %c0_i32_1 = arith.constant 0 : i32
    return %c0_i32, %c0_i32_0 : i32, i32
  }
  func.func @transform_3(%arg0: i32) -> (i32, i32, i32) {
    %c0_i32 = arith.constant 0 : i32
    %c0_i32_0 = arith.constant 0 : i32
    %c0_i32_1 = arith.constant 0 : i32
    %c0_i32_2 = arith.constant 0 : i32
    return %c0_i32, %c0_i32_0, %c0_i32_1 : i32, i32, i32
  }
  func.func @transform_4(%arg0: i32) -> (i32, i32) {
    %c0_i32 = arith.constant 0 : i32
    %c0_i32_0 = arith.constant 0 : i32
    %c0_i32_1 = arith.constant 0 : i32
    return %c0_i32, %c0_i32_0 : i32, i32
  }
  func.func @transform_5(%arg0: i32) -> (i32, i32, i32) {
    %c0_i32 = arith.constant 0 : i32
    %c0_i32_0 = arith.constant 0 : i32
    %c0_i32_1 = arith.constant 0 : i32
    %c0_i32_2 = arith.constant 0 : i32
    return %c0_i32, %c0_i32_0, %c0_i32_1 : i32, i32, i32
  }
  func.func @transform_6(%arg0: i32) -> (i32, i32) {
    %c0_i32 = arith.constant 0 : i32
    %c0_i32_0 = arith.constant 0 : i32
    %c0_i32_1 = arith.constant 0 : i32
    return %c0_i32, %c0_i32_0 : i32, i32
  }
  func.func @transform_7(%arg0: i32) -> (i32, i32) {
    %c0_i32 = arith.constant 0 : i32
    %c0_i32_0 = arith.constant 0 : i32
    %c0_i32_1 = arith.constant 0 : i32
    return %c0_i32, %c0_i32_0 : i32, i32
  }
  func.func @transform_8(%arg0: i32) -> (i32, i32) {
    %c0_i32 = arith.constant 0 : i32
    %c0_i32_0 = arith.constant 0 : i32
    %c0_i32_1 = arith.constant 0 : i32
    return %c0_i32, %c0_i32_0 : i32, i32
  }
  func.func @transform_9(%arg0: i32) -> (i32, i32) {
    %c0_i32 = arith.constant 0 : i32
    %c0_i32_0 = arith.constant 0 : i32
    %c0_i32_1 = arith.constant 0 : i32
    return %c0_i32, %c0_i32_0 : i32, i32
  }
  func.func @transform_10(%arg0: i32) -> (i32, i32) {
    %c0_i32 = arith.constant 0 : i32
    %c0_i32_0 = arith.constant 0 : i32
    %c0_i32_1 = arith.constant 0 : i32
    return %c0_i32, %c0_i32_0 : i32, i32
  }
  func.func @transform_11(%arg0: i32) -> (i32, i32) {
    %c0_i32 = arith.constant 0 : i32
    %c0_i32_0 = arith.constant 0 : i32
    return %arg0, %c0_i32 : i32, i32
  }
}

</mosaic_0001>

<bundles_post_ra>
// kernel: net_forward.1
= control target key start
LH: loop header
LB: loop body
LE: loop exit
PB: predicated region body
PF: predicated region fallthrough
CT: control target
= control target key end

     0   :  { %16 = vsyncpa [#allocation3], 0  ;;  %s8484_s0 = inlined_call_operand.vmem [shape: bf16[32,16,96], index: 0, kind: input, shape index: {}]   ;;  %s8485_s1 = inlined_call_operand.hbm [shape: bf16[5,96,256], index: 1, kind: input, shape index: {}]   ;;  %s8486_s2 = inlined_call_operand.vmem [shape: f32[1,256], index: 2, kind: input, shape index: {}]   ;;  %s8487_s3 = inlined_call_operand.vmem [shape: bf16[5,128,256], index: 3, kind: input, shape index: {}]   ;;  %s8488_s4 = inlined_call_operand.vmem [shape: f32[1,256], index: 4, kind: input, shape index: {}]   ;;  %s8489_s5 = inlined_call_operand.hbm [shape: bf16[5,128,128], index: 5, kind: input, shape index: {}]   ;;  %s8490_s6 = inlined_call_operand.vmem [shape: f32[1,128], index: 6, kind: input, shape index: {}]   ;;  %s8491_s7 = inlined_call_operand.vmem [shape: bf16[128,128], index: 7, kind: input, shape index: {}]   ;;  %s8492_s8 = inlined_call_operand.vmem [shape: f32[1,128], index: 8, kind: input, shape index: {}]   ;;  %s8493_s9 = inlined_call_operand.vmem [shape: bf16[128,128], index: 9, kind: input, shape index: {}]   ;;  %s8494_s10 = inlined_call_operand.vmem [shape: f32[1,128], index: 10, kind: input, shape index: {}]   ;;  %s8495_s11 = inlined_call_operand.vmem [shape: f32[16,128], index: 11, kind: output, shape index: {}]  }
   0x1   :  { %17 = vsyncpa [#allocation5], 0  ;;  %s6790_s17 = smov [#allocation2]   ;;  %s6742_s21 = scalar_lea.hbm %s8485_s1, 7680 }
   0x2   :  { %s25_s18 = sshll.u32 %s6790_s17, 4  ;;  %p6743_p0 = scmp.ne.s32.totalorder %s8485_s1, %s6742_s21  ;;  %s26_s18 = int_to_ptr.vmem [resolvable:$true] %s25_s18 }
   0x3   :  { %p6746_p1 = scmp.lt.u32.totalorder %s6742_s21, %s8485_s1 }
   0x5   :  { %p6748_p2 = pnand %p6746_p1, %p6743_p0 }
   0x7   :  { %6751 = shalt.err (!%p6748_p2)
}
   0x8   :  { %s6752_s26 = scalar_lea.vmem %s26_s18, 7680  ;;  %p6757_p4 = scmp.lt.s32.totalorder %s26_s18, %s26_s18 }
   0x9   :  { %p6753_p3 = scmp.ne.s32.totalorder %s26_s18, %s6752_s26  ;;  %p6758_p5 = scmp.lt.s32.totalorder %s6752_s26, %s6752_s26 }
   0xb   :  { %p6759_p6 = por %p6758_p5, %p6757_p4 }
   0xd   :  { %p6760_p7 = pnand %p6759_p6, %p6753_p3 }
   0xf   :  { %6763 = shalt.err (!%p6760_p7)
}
  0x10   :  { %s6791_s27 = smov 128   ;;  %s6792_s28 = smov 8  }
  0x11   :  { %31 = dma.hbm_to_vmem [thread:$0]  %s8485_s1, 7680, %s26_s18, [#allocation3], %s6791_s27, %s6791_s27, %s6792_s28  }
  0x12   :  { %s6793_s12 = smov [#allocation4]   ;;  %s6764_s16 = scalar_lea.hbm %s8489_s5, 5120 }
  0x13   :  { %s43_s13 = sshll.u32 %s6793_s12, 4  ;;  %p6765_p8 = scmp.ne.s32.totalorder %s8489_s5, %s6764_s16  ;;  %s44_s13 = int_to_ptr.vmem [resolvable:$true] %s43_s13 }
  0x14   :  { %p6768_p9 = scmp.lt.u32.totalorder %s6764_s16, %s8489_s5 }
  0x16   :  { %p6770_p10 = pnand %p6768_p9, %p6765_p8 }
  0x18   :  { %6773 = shalt.err (!%p6770_p10)
}
  0x19   :  { %s6774_s22 = scalar_lea.vmem %s44_s13, 5120  ;;  %p6779_p12 = scmp.lt.s32.totalorder %s44_s13, %s44_s13 }
  0x1a   :  { %p6775_p11 = scmp.ne.s32.totalorder %s44_s13, %s6774_s22  ;;  %p6780_p13 = scmp.lt.s32.totalorder %s6774_s22, %s6774_s22 }
  0x1c   :  { %p6781_p0 = por %p6780_p13, %p6779_p12 }
  0x1e   :  { %p6782_p1 = pnand %p6781_p0, %p6775_p11 }
  0x20   :  { %6785 = shalt.err (!%p6782_p1)
}
  0x21   :  { %s6794_s1 = smov 64   ;;  %s6795_s18 = smov 4  }
  0x22   :  { %49 = dma.hbm_to_vmem [thread:$0]  %s8489_s5, 5120, %s44_s13, [#allocation5], %s6794_s1, %s6794_s1, %s6795_s18  }
  0x23   :  { %6786 = dma.done.wait [#allocation3], 7680  }
  0x24   :  { %6787 = vsyncadd [#allocation3], 4294959616 }
  0x25   :  { %6788 = dma.done.wait [#allocation5], 5120  }
  0x26   :  { %6789 = vsyncadd [#allocation5], 4294962176  ;;  %v8496_v0 = vmov 0   ;;  %v6432_v1 = vld [vmem:[#allocation2 + $0x4] ss:$8 sps:$4 sm:$0xff]   ;;  %vm356_vm0 = vcmask 785408  }
  0x27   :  { %854 = vmatprep.mubr.bf16.mxu0 %v8496_v0  ;;  %473 = vmatprep.mubr.bf16.mxu1 %v8496_v0  ;;  %v6434_v2 = vld [vmem:[#allocation2] ss:$8 sps:$4 sm:$0xff]   ;;  %v6435_v3 = vld [vmem:[#allocation2 + $0x14] ss:$8 sps:$4 sm:$0xff]   ;;  %v6437_v4 = vld [vmem:[#allocation2 + $0x10] ss:$8 sps:$4 sm:$0xff]  }
  0x28   :  { %822 = vmatprep.subr.bf16.mxu0 %v6432_v1  ;;  %v6438_v5 = vld [vmem:[#allocation2 + $0x24] ss:$8 sps:$4 sm:$0xff]   ;;  %v6440_v6 = vld [vmem:[#allocation2 + $0x20] ss:$8 sps:$4 sm:$0xff]   ;;  %v6441_v7 = vld [vmem:[#allocation2 + $0x34] ss:$8 sps:$4 sm:$0xff]  }
  0x29   :  { %823 = vmatpush1.bf16.msra.mxu0 %v6434_v2  ;;  %v6443_v8 = vld [vmem:[#allocation2 + $0x30] ss:$8 sps:$4 sm:$0xff]   ;;  %v6444_v9 = vld [vmem:[#allocation2 + $0x44] ss:$8 sps:$4 sm:$0xff]   ;;  %v6446_v10 = vld [vmem:[#allocation2 + $0x40] ss:$8 sps:$4 sm:$0xff]  }
  0x2a   :  { %824 = vmatprep.subr.bf16.mxu0 %v6435_v3  ;;  %v6447_v11 = vld [vmem:[#allocation2 + $0x54] ss:$8 sps:$4 sm:$0xff]   ;;  %v6449_v12 = vld [vmem:[#allocation2 + $0x50] ss:$8 sps:$4 sm:$0xff]   ;;  %v6453_v13 = vld [vmem:[#allocation2 + $0xc4] ss:$8 sps:$4 sm:$0xff]  }
  0x2b   :  { %v6450_v14 = vld [vmem:[%s8484_s0] sm:$0xff]   ;;  %v6460_v16 = vld [vmem:[#allocation2 + $0xd4] ss:$8 sps:$4 sm:$0xff]   ;;  %v6458_v17 = vld [vmem:[#allocation2 + $0xd0] ss:$8 sps:$4 sm:$0xff]   ;;  %vm6798_vm1 = vmmov 0  }
  0x2c   :  { %v6451_v15 = vld [vmem:[#allocation2 + $0xc0] ss:$8 sps:$4 sm:$0xff]   ;;  %v6467_v18 = vld [vmem:[#allocation2 + $0xe4] ss:$8 sps:$4 sm:$0xff]   ;;  %v6474_v21 = vld [vmem:[#allocation2 + $0xf4] ss:$8 sps:$4 sm:$0xff]  }
  0x2d   :  { %825 = vmatpush1.bf16.msra.mxu0 %v6437_v4  ;;  %v6893_v19 = vld [vmem:[%s8484_s0 + $0x8] sm:$0xff]   ;;  %v6472_v22 = vld [vmem:[#allocation2 + $0xf0] ss:$8 sps:$4 sm:$0xff]   ;;  %v6917_v27 = vld [vmem:[%s8484_s0 + $0x20] sm:$0xff]  }
  0x2e   :  { %826 = vmatprep.subr.bf16.mxu0 %v6438_v5  ;;  %v6465_v20 = vld [vmem:[#allocation2 + $0xe0] ss:$8 sps:$4 sm:$0xff]   ;;  %v6481_v23 = vld [vmem:[#allocation2 + $0x104] ss:$8 sps:$4 sm:$0xff]   ;;  %v6901_v24 = vld [vmem:[%s8484_s0 + $0x10] sm:$0xff]  }
  0x2f   :  { %v6479_v25 = vld [vmem:[#allocation2 + $0x100] ss:$8 sps:$4 sm:$0xff]   ;;  %v6909_v26 = vld [vmem:[%s8484_s0 + $0x18] sm:$0xff]   ;;  %v6933_v31 = vld [vmem:[%s8484_s0 + $0x30] sm:$0xff]  }
  0x30   :  { %v6486_v28 = vld [vmem:[#allocation2 + $0x110] ss:$8 sps:$4 sm:$0xff]   ;;  %v6488_v29 = vld [vmem:[#allocation2 + $0x114] ss:$8 sps:$4 sm:$0xff]   ;;  %v6925_v30 = vld [vmem:[%s8484_s0 + $0x28] sm:$0xff]  }
  0x31   :  { %827 = vmatpush1.bf16.msra.mxu0 %v6440_v6  ;;  %v6941_v32 = vld [vmem:[%s8484_s0 + $0x38] sm:$0xff]   ;;  %v6949_v33 = vld [vmem:[%s8484_s0 + $0x40] sm:$0xff]   ;;  %v6957_v35 = vld [vmem:[%s8484_s0 + $0x48] sm:$0xff]  }
  0x32   :  { %828 = vmatprep.subr.bf16.mxu0 %v6441_v7  ;;  %v6494_v34 = vld [vmem:[#allocation2 + $0x124] ss:$8 sps:$4 sm:$0xff]   ;;  %v6965_v36 = vld [vmem:[%s8484_s0 + $0x50] sm:$0xff]   ;;  %v6973_v37 = vld [vmem:[%s8484_s0 + $0x58] sm:$0xff]  }
  0x33   :  { %v6981_v38 = vld [vmem:[%s8484_s0 + $0x60] sm:$0xff]   ;;  %v6989_v39 = vld [vmem:[%s8484_s0 + $0x68] sm:$0xff]   ;;  %v6997_v40 = vld [vmem:[%s8484_s0 + $0x70] sm:$0xff]  }
  0x34   :  { %v7005_v41 = vld [vmem:[%s8484_s0 + $0x78] sm:$0xff]   ;;  %v7013_v42 = vld [vmem:[%s8484_s0 + $0x80] sm:$0xff]   ;;  %v7021_v43 = vld [vmem:[%s8484_s0 + $0x88] sm:$0xff]  }
  0x35   :  { %829 = vmatpush1.bf16.msra.mxu0 %v6443_v8  ;;  %v7029_v44 = vld [vmem:[%s8484_s0 + $0x90] sm:$0xff]   ;;  %v7037_v45 = vld [vmem:[%s8484_s0 + $0x98] sm:$0xff]   ;;  %v7045_v46 = vld [vmem:[%s8484_s0 + $0xa0] sm:$0xff]  }
  0x36   :  { %830 = vmatprep.subr.bf16.mxu0 %v6444_v9  ;;  %v7053_v47 = vld [vmem:[%s8484_s0 + $0xa8] sm:$0xff]   ;;  %v7061_v48 = vld [vmem:[%s8484_s0 + $0xb0] sm:$0xff]   ;;  %v7069_v49 = vld [vmem:[%s8484_s0 + $0xb8] sm:$0xff]  }
  0x37   :  { %v6492_v50 = vld [vmem:[#allocation2 + $0x120] ss:$8 sps:$4 sm:$0xff]   ;;  %v6497_v51 = vld [vmem:[#allocation2 + $0x134] ss:$8 sps:$4 sm:$0xff]   ;;  %v6495_v52 = vld [vmem:[#allocation2 + $0x130] ss:$8 sps:$4 sm:$0xff]  }
  0x38   :  { %v6500_v53 = vld [vmem:[#allocation2 + $0x144] ss:$8 sps:$4 sm:$0xff]   ;;  %v6498_v54 = vld [vmem:[#allocation2 + $0x140] ss:$8 sps:$4 sm:$0xff]   ;;  %v6503_v55 = vld [vmem:[#allocation2 + $0x154] ss:$8 sps:$4 sm:$0xff]  }
  0x39   :  { %831 = vmatpush1.bf16.msra.mxu0 %v6446_v10  ;;  %v6501_v56 = vld [vmem:[#allocation2 + $0x150] ss:$8 sps:$4 sm:$0xff]   ;;  %v6504_v57 = vld [vmem:[#allocation2 + $0x160] ss:$8 sps:$4 sm:$0xff]   ;;  %v6506_v58 = vld [vmem:[#allocation2 + $0x164] ss:$8 sps:$4 sm:$0xff]  }
  0x3a   :  { %832 = vmatprep.subr.bf16.mxu0 %v6447_v11  ;;  %v6509_v59 = vld [vmem:[#allocation2 + $0x170] ss:$8 sps:$4 sm:$0xff]   ;;  %v6511_v60 = vld [vmem:[#allocation2 + $0x174] ss:$8 sps:$4 sm:$0xff]   ;;  %v6518_v61 = vld [vmem:[#allocation2 + $0x184] ss:$8 sps:$4 sm:$0xff]  }
  0x3b   :  { %v7143_v62 = vld [vmem:[%s8484_s0 + $0xc0] sm:$0xff]   ;;  %v7151_v63 = vld [vmem:[%s8484_s0 + $0xc8] sm:$0xff]   ;;  %v7159_v1 = vld [vmem:[%s8484_s0 + $0xd0] sm:$0xff]  }
  0x3c   :  { %v7167_v2 = vld [vmem:[%s8484_s0 + $0xd8] sm:$0xff]   ;;  %v7175_v3 = vld [vmem:[%s8484_s0 + $0xe0] sm:$0xff]   ;;  %v7183_v4 = vld [vmem:[%s8484_s0 + $0xe8] sm:$0xff]  }
  0x3d   :  { %833 = vmatpush1.bf16.msra.mxu0 %v6449_v12  ;;  %v6516_v5 = vld [vmem:[#allocation2 + $0x180] ss:$8 sps:$4 sm:$0xff]   ;;  %v6521_v6 = vld [vmem:[#allocation2 + $0x194] ss:$8 sps:$4 sm:$0xff]   ;;  %v6519_v7 = vld [vmem:[#allocation2 + $0x190] ss:$8 sps:$4 sm:$0xff]  }
  0x3e   :  { %1216 = vmatprep.subr.bf16.mxu0 %v6453_v13  ;;  %v6524_v8 = vld [vmem:[#allocation2 + $0x1a4] ss:$8 sps:$4 sm:$0xff]   ;;  %v6522_v9 = vld [vmem:[#allocation2 + $0x1a0] ss:$8 sps:$4 sm:$0xff]   ;;  %v6527_v10 = vld [vmem:[#allocation2 + $0x1b4] ss:$8 sps:$4 sm:$0xff]  }
  0x3f   :  { %v6525_v11 = vld [vmem:[#allocation2 + $0x1b0] ss:$8 sps:$4 sm:$0xff]   ;;  %v6528_v12 = vld [vmem:[#allocation2 + $0x1c0] ss:$8 sps:$4 sm:$0xff]   ;;  %v6530_v13 = vld [vmem:[#allocation2 + $0x1c4] ss:$8 sps:$4 sm:$0xff]  }
  0x40   :  { %5246 = vmatmul.mubr.msk.bf16.vlgmr.msra.gmra.mrb[0].mxu0 %vm356_vm0, %v6450_v14  ;;  %v6531_v14 = vld [vmem:[#allocation2 + $0x64] ss:$8 sps:$4 sm:$0xff]  }
  0x41   :  { %1217 = vmatpush1.bf16.msra.mxu0 %v6451_v15  ;;  %864 = vmatprep.mubr.bf16.mxu0 %v8496_v0  ;;  %v6533_v15 = vld [vmem:[#allocation2 + $0x60] ss:$8 sps:$4 sm:$0xff]  }
  0x42   :  { %1218 = vmatprep.subr.bf16.mxu0 %v6460_v16  ;;  %441 = vmatprep.subr.bf16.mxu1 %v6531_v14  ;;  %v6534_v16 = vld [vmem:[#allocation2 + $0x74] ss:$8 sps:$4 sm:$0xff]  }
  0x43   :  { %442 = vmatpush1.bf16.msra.mxu1 %v6533_v15  ;;  %v6566_v15 = vld [vmem:[%s8487_s3 + $0xc0] ss:$8 sps:$4 sm:$0xff]  }
  0x44   :  { %443 = vmatprep.subr.bf16.mxu1 %v6534_v16 }
  0x45   :  { %1219 = vmatpush1.bf16.msra.mxu0 %v6458_v17  ;;  %v6536_v17 = vld [vmem:[#allocation2 + $0x70] ss:$8 sps:$4 sm:$0xff]  }
  0x46   :  { %1220 = vmatprep.subr.bf16.mxu0 %v6467_v18  ;;  %v6537_v18 = vld [vmem:[#allocation2 + $0x84] ss:$8 sps:$4 sm:$0xff]  }
  0x47   :  { %444 = vmatpush1.bf16.msra.mxu1 %v6536_v17  ;;  %v6569_v17 = vld [vmem:[%s8487_s3 + $0xd0] ss:$8 sps:$4 sm:$0xff]  }
  0x48   :  { %5247 = vmatmul.mubr.msk.bf16.gmra.mrb[4].mxu0 %vm356_vm0, %v6893_v19  ;;  %445 = vmatprep.subr.bf16.mxu1 %v6537_v18 }
  0x49   :  { %874 = vmatprep.mubr.bf16.mxu0 %v8496_v0  ;;  %1221 = vmatpush1.bf16.msra.mxu0 %v6465_v20  ;;  %v6539_v20 = vld [vmem:[#allocation2 + $0x80] ss:$8 sps:$4 sm:$0xff]  }
  0x4a   :  { %1222 = vmatprep.subr.bf16.mxu0 %v6474_v21  ;;  %v6540_v21 = vld [vmem:[#allocation2 + $0x94] ss:$8 sps:$4 sm:$0xff]  }
  0x4b   :  { %446 = vmatpush1.bf16.msra.mxu1 %v6539_v20 }
  0x4c   :  { %447 = vmatprep.subr.bf16.mxu1 %v6540_v21  ;;  %v6574_v21 = vld [vmem:[%s8487_s3 + $0xe4] ss:$8 sps:$4 sm:$0xff]  }
  0x4d   :  { %1223 = vmatpush1.bf16.msra.mxu0 %v6472_v22  ;;  %v6542_v22 = vld [vmem:[#allocation2 + $0x90] ss:$8 sps:$4 sm:$0xff]  }
  0x4e   :  { %1224 = vmatprep.subr.bf16.mxu0 %v6481_v23  ;;  %v6543_v23 = vld [vmem:[#allocation2 + $0xa4] ss:$8 sps:$4 sm:$0xff]  }
  0x4f   :  { %448 = vmatpush1.bf16.msra.mxu1 %v6542_v22 }
  0x50   :  { %5248 = vmatmul.mubr.msk.bf16.gmra.mrb[8].mxu0 %vm356_vm0, %v6901_v24  ;;  %449 = vmatprep.subr.bf16.mxu1 %v6543_v23  ;;  %v6572_v23 = vld [vmem:[%s8487_s3 + $0xe0] ss:$8 sps:$4 sm:$0xff]  }
  0x51   :  { %884 = vmatprep.mubr.bf16.mxu0 %v8496_v0  ;;  %1225 = vmatpush1.bf16.msra.mxu0 %v6479_v25  ;;  %v6545_v25 = vld [vmem:[#allocation2 + $0xa0] ss:$8 sps:$4 sm:$0xff]  }
  0x52   :  { %1226 = vmatprep.subr.bf16.mxu0 %v6488_v29  ;;  %v6548_v29 = vld [vmem:[#allocation2 + $0x1d4] ss:$8 sps:$4 sm:$0xff]  }
  0x53   :  { %450 = vmatpush1.bf16.msra.mxu1 %v6545_v25 }
  0x55   :  { %1227 = vmatpush1.bf16.msra.mxu0 %v6486_v28  ;;  %v6546_v28 = vld [vmem:[#allocation2 + $0x1d0] ss:$8 sps:$4 sm:$0xff]  }
  0x56   :  { %1722 = vmatprep.subr.bf16.mxu0 %v6494_v34  ;;  %v6549_v34 = vld [vmem:[#allocation2 + $0xb4] ss:$8 sps:$4 sm:$0xff]  }
  0x57   :  { %451 = vmatprep.subr.bf16.mxu1 %v6549_v34 }
  0x58   :  { %5249 = vmatmul.mubr.msk.bf16.gmra.mrb[12].mxu0 %vm356_vm0, %v6909_v26 }
  0x59   :  { %894 = vmatprep.mubr.bf16.mxu0 %v8496_v0 }
  0x60   :  { %5250 = vmatmul.mubr.msk.bf16.gmra.mrb[16].mxu0 %vm356_vm0, %v6917_v27 }
  0x61   :  { %904 = vmatprep.mubr.bf16.mxu0 %v8496_v0 }
  0x68   :  { %5251 = vmatmul.mubr.msk.bf16.gmra.mrb[20].mxu0 %vm356_vm0, %v6925_v30 }
  0x69   :  { %914 = vmatprep.mubr.bf16.mxu0 %v8496_v0 }
  0x70   :  { %5252 = vmatmul.mubr.msk.bf16.gmra.mrb[24].mxu0 %vm356_vm0, %v6933_v31 }
  0x71   :  { %924 = vmatprep.mubr.bf16.mxu0 %v8496_v0 }
  0x78   :  { %5253 = vmatmul.mubr.msk.bf16.gmra.mrb[28].mxu0 %vm356_vm0, %v6941_v32 }
  0x79   :  { %934 = vmatprep.mubr.bf16.mxu0 %v8496_v0 }
  0x80   :  { %5254 = vmatmul.mubr.msk.bf16.gmra.mrb[32].mxu0 %vm356_vm0, %v6949_v33 }
  0x81   :  { %944 = vmatprep.mubr.bf16.mxu0 %v8496_v0 }
  0x88   :  { %5255 = vmatmul.mubr.msk.bf16.gmra.mrb[36].mxu0 %vm356_vm0, %v6957_v35 }
  0x89   :  { %954 = vmatprep.mubr.bf16.mxu0 %v8496_v0 }
  0x90   :  { %5256 = vmatmul.mubr.msk.bf16.gmra.mrb[40].mxu0 %vm356_vm0, %v6965_v36 }
  0x91   :  { %964 = vmatprep.mubr.bf16.mxu0 %v8496_v0 }
  0x98   :  { %5257 = vmatmul.mubr.msk.bf16.gmra.mrb[44].mxu0 %vm356_vm0, %v6973_v37 }
  0x99   :  { %974 = vmatprep.mubr.bf16.mxu0 %v8496_v0 }
  0xa0   :  { %5258 = vmatmul.mubr.msk.bf16.gmra.mrb[48].mxu0 %vm356_vm0, %v6981_v38 }
  0xa1   :  { %984 = vmatprep.mubr.bf16.mxu0 %v8496_v0 }
  0xa8   :  { %5259 = vmatmul.mubr.msk.bf16.gmra.mrb[52].mxu0 %vm356_vm0, %v6989_v39 }
  0xa9   :  { %994 = vmatprep.mubr.bf16.mxu0 %v8496_v0 }
  0xb0   :  { %5260 = vmatmul.mubr.msk.bf16.gmra.mrb[56].mxu0 %vm356_vm0, %v6997_v40 }
  0xb1   :  { %1004 = vmatprep.mubr.bf16.mxu0 %v8496_v0 }
  0xb8   :  { %5261 = vmatmul.mubr.msk.bf16.gmra.mrb[60].mxu0 %vm356_vm0, %v7005_v41 }
  0xb9   :  { %1014 = vmatprep.mubr.bf16.mxu0 %v8496_v0 }
  0xc0   :  { %5262 = vmatmul.mubr.msk.bf16.gmra.mrb[64].mxu0 %vm356_vm0, %v7013_v42 }
  0xc1   :  { %1024 = vmatprep.mubr.bf16.mxu0 %v8496_v0 }
  0xc8   :  { %5263 = vmatmul.mubr.msk.bf16.gmra.mrb[68].mxu0 %vm356_vm0, %v7021_v43 }
  0xc9   :  { %1034 = vmatprep.mubr.bf16.mxu0 %v8496_v0 }
  0xd0   :  { %5264 = vmatmul.mubr.msk.bf16.gmra.mrb[72].mxu0 %vm356_vm0, %v7029_v44 }
  0xd1   :  { %1044 = vmatprep.mubr.bf16.mxu0 %v8496_v0 }
  0xd8   :  { %5265 = vmatmul.mubr.msk.bf16.gmra.mrb[76].mxu0 %vm356_vm0, %v7037_v45 }
  0xd9   :  { %1054 = vmatprep.mubr.bf16.mxu0 %v8496_v0 }
  0xe0   :  { %5266 = vmatmul.mubr.msk.bf16.gmra.mrb[80].mxu0 %vm356_vm0, %v7045_v46 }
  0xe1   :  { %1064 = vmatprep.mubr.bf16.mxu0 %v8496_v0 }
  0xe8   :  { %5267 = vmatmul.mubr.msk.bf16.gmra.mrb[84].mxu0 %vm356_vm0, %v7053_v47 }
  0xe9   :  { %1074 = vmatprep.mubr.bf16.mxu0 %v8496_v0 }
  0xf0   :  { %5268 = vmatmul.mubr.msk.bf16.gmra.mrb[88].mxu0 %vm356_vm0, %v7061_v48 }
  0xf1   :  { %1084 = vmatprep.mubr.bf16.mxu0 %v8496_v0 }
  0xf8   :  { %5269 = vmatmul.mubr.msk.bf16.gmra.mrb[92].mxu0 %vm356_vm0, %v7069_v49 }
  0xf9   :  { %1248 = vmatprep.mubr.bf16.mxu0 %v8496_v0 }
 0x100   :  { %5287 = vmatmul.mubr.msk.bf16.vlgmr.msra.gmra.mrb[0].mxu0 %vm356_vm0, %v6901_v24 }
 0x101   :  { %1723 = vmatpush1.bf16.msra.mxu0 %v6492_v50  ;;  %1258 = vmatprep.mubr.bf16.mxu0 %v8496_v0  ;;  %v6551_v50 = vld [vmem:[#allocation2 + $0xb0] ss:$8 sps:$4 sm:$0xff]  }
 0x102   :  { %1724 = vmatprep.subr.bf16.mxu0 %v6497_v51  ;;  %452 = vmatpush1.bf16.msra.mxu1 %v6551_v50  ;;  %v6730_v51 = vld [vmem:[#allocation2 + $0x4] ss:$8 sps:$4 sm:$0xff]  }
 0x103   :  { %5803 = vmatprep.subr.bf16.mxu1 %v6730_v51 }
 0x105   :  { %1725 = vmatpush1.bf16.msra.mxu0 %v6495_v52  ;;  %5205 = vmatmul.mubr.msk.bf16.vlgmr.msra.gmra.mrb[0].mxu1 %vm356_vm0, %v6893_v19  ;;  %v6731_v52 = vld [vmem:[#allocation2] ss:$8 sps:$4 sm:$0xff]  }
 0x106   :  { %1726 = vmatprep.subr.bf16.mxu0 %v6500_v53  ;;  %483 = vmatprep.mubr.bf16.mxu1 %v8496_v0  ;;  %v6732_v53 = vld [vmem:[#allocation2 + $0x14] ss:$8 sps:$4 sm:$0xff]   ;;  %v6735_v19 = vld [vmem:[#allocation2 + $0x20] ss:$8 sps:$4 sm:$0xff]  }
 0x107   :  { %5809 = vmatpush1.bf16.msra.mxu1 %v6731_v52 }
 0x108   :  { %5288 = vmatmul.mubr.msk.bf16.gmra.mrb[4].mxu0 %vm356_vm0, %v6909_v26  ;;  %5804 = vmatprep.subr.bf16.mxu1 %v6732_v53 }
 0x109   :  { %1268 = vmatprep.mubr.bf16.mxu0 %v8496_v0  ;;  %1727 = vmatpush1.bf16.msra.mxu0 %v6498_v54  ;;  %v6733_v54 = vld [vmem:[#allocation2 + $0x10] ss:$8 sps:$4 sm:$0xff]  }
 0x10a   :  { %1728 = vmatprep.subr.bf16.mxu0 %v6503_v55  ;;  %v6734_v55 = vld [vmem:[#allocation2 + $0x24] ss:$8 sps:$4 sm:$0xff]  }
 0x10b   :  { %5810 = vmatpush1.bf16.msra.mxu1 %v6733_v54 }
 0x10c   :  { %5805 = vmatprep.subr.bf16.mxu1 %v6734_v55 }
 0x10d   :  { %1729 = vmatpush1.bf16.msra.mxu0 %v6501_v56  ;;  %5206 = vmatmul.mubr.msk.bf16.gmra.mrb[4].mxu1 %vm356_vm0, %v6901_v24  ;;  %v6736_v56 = vld [vmem:[#allocation2 + $0x34] ss:$8 sps:$4 sm:$0xff]   ;;  %v6739_v24 = vld [vmem:[#allocation2 + $0x40] ss:$8 sps:$4 sm:$0xff]  }
 0x10e   :  { %1730 = vmatprep.subr.bf16.mxu0 %v6506_v58  ;;  %493 = vmatprep.mubr.bf16.mxu1 %v8496_v0  ;;  %v6738_v58 = vld [vmem:[#allocation2 + $0x44] ss:$8 sps:$4 sm:$0xff]  }
 0x10f   :  { %5811 = vmatpush1.bf16.msra.mxu1 %v6735_v19 }
 0x110   :  { %5289 = vmatmul.mubr.msk.bf16.gmra.mrb[8].mxu0 %vm356_vm0, %v6917_v27  ;;  %5806 = vmatprep.subr.bf16.mxu1 %v6736_v56 }
 0x111   :  { %1278 = vmatprep.mubr.bf16.mxu0 %v8496_v0  ;;  %1731 = vmatpush1.bf16.msra.mxu0 %v6504_v57  ;;  %v6737_v57 = vld [vmem:[#allocation2 + $0x30] ss:$8 sps:$4 sm:$0xff]  }
 0x112   :  { %1732 = vmatprep.subr.bf16.mxu0 %v6511_v60  ;;  %v6741_v60 = vld [vmem:[#allocation2 + $0x50] ss:$8 sps:$4 sm:$0xff]  }
 0x113   :  { %5812 = vmatpush1.bf16.msra.mxu1 %v6737_v57 }
 0x114   :  { %5807 = vmatprep.subr.bf16.mxu1 %v6738_v58 }
 0x115   :  { %1733 = vmatpush1.bf16.msra.mxu0 %v6509_v59  ;;  %5207 = vmatmul.mubr.msk.bf16.gmra.mrb[8].mxu1 %vm356_vm0, %v6909_v26  ;;  %v6740_v59 = vld [vmem:[#allocation2 + $0x54] ss:$8 sps:$4 sm:$0xff]  }
 0x116   :  { %2228 = vmatprep.subr.bf16.mxu0 %v6518_v61  ;;  %503 = vmatprep.mubr.bf16.mxu1 %v8496_v0 }
 0x117   :  { %5813 = vmatpush1.bf16.msra.mxu1 %v6739_v24 }
 0x118   :  { %5290 = vmatmul.mubr.msk.bf16.gmra.mrb[12].mxu0 %vm356_vm0, %v6925_v30  ;;  %5808 = vmatprep.subr.bf16.mxu1 %v6740_v59 }
 0x119   :  { %1288 = vmatprep.mubr.bf16.mxu0 %v8496_v0 }
 0x11b   :  { %5814 = vmatpush1.bf16.msra.mxu1 %v6741_v60 }
 0x11d   :  { %5208 = vmatmul.mubr.msk.bf16.gmra.mrb[12].mxu1 %vm356_vm0, %v6917_v27 }
 0x11e   :  { %513 = vmatprep.mubr.bf16.mxu1 %v8496_v0 }
 0x120   :  { %5291 = vmatmul.mubr.msk.bf16.gmra.mrb[16].mxu0 %vm356_vm0, %v6933_v31 }
 0x121   :  { %1298 = vmatprep.mubr.bf16.mxu0 %v8496_v0 }
 0x125   :  { %5209 = vmatmul.mubr.msk.bf16.gmra.mrb[16].mxu1 %vm356_vm0, %v6925_v30 }
 0x126   :  { %523 = vmatprep.mubr.bf16.mxu1 %v8496_v0 }
 0x128   :  { %5292 = vmatmul.mubr.msk.bf16.gmra.mrb[20].mxu0 %vm356_vm0, %v6941_v32 }
 0x129   :  { %1308 = vmatprep.mubr.bf16.mxu0 %v8496_v0 }
 0x12d   :  { %5210 = vmatmul.mubr.msk.bf16.gmra.mrb[20].mxu1 %vm356_vm0, %v6933_v31 }
 0x12e   :  { %533 = vmatprep.mubr.bf16.mxu1 %v8496_v0 }
 0x130   :  { %5293 = vmatmul.mubr.msk.bf16.gmra.mrb[24].mxu0 %vm356_vm0, %v6949_v33 }
 0x131   :  { %1318 = vmatprep.mubr.bf16.mxu0 %v8496_v0 }
 0x135   :  { %5211 = vmatmul.mubr.msk.bf16.gmra.mrb[24].mxu1 %vm356_vm0, %v6941_v32 }
 0x136   :  { %543 = vmatprep.mubr.bf16.mxu1 %v8496_v0 }
 0x138   :  { %5294 = vmatmul.mubr.msk.bf16.gmra.mrb[28].mxu0 %vm356_vm0, %v6957_v35 }
 0x139   :  { %1328 = vmatprep.mubr.bf16.mxu0 %v8496_v0 }
 0x13d   :  { %5212 = vmatmul.mubr.msk.bf16.gmra.mrb[28].mxu1 %vm356_vm0, %v6949_v33 }
 0x13e   :  { %553 = vmatprep.mubr.bf16.mxu1 %v8496_v0 }
 0x140   :  { %5295 = vmatmul.mubr.msk.bf16.gmra.mrb[32].mxu0 %vm356_vm0, %v6965_v36 }
 0x141   :  { %1338 = vmatprep.mubr.bf16.mxu0 %v8496_v0 }
 0x145   :  { %5213 = vmatmul.mubr.msk.bf16.gmra.mrb[32].mxu1 %vm356_vm0, %v6957_v35 }
 0x146   :  { %563 = vmatprep.mubr.bf16.mxu1 %v8496_v0 }
 0x148   :  { %5296 = vmatmul.mubr.msk.bf16.gmra.mrb[36].mxu0 %vm356_vm0, %v6973_v37 }
 0x149   :  { %1348 = vmatprep.mubr.bf16.mxu0 %v8496_v0 }
 0x14d   :  { %5214 = vmatmul.mubr.msk.bf16.gmra.mrb[36].mxu1 %vm356_vm0, %v6965_v36 }
 0x14e   :  { %573 = vmatprep.mubr.bf16.mxu1 %v8496_v0 }
 0x150   :  { %5297 = vmatmul.mubr.msk.bf16.gmra.mrb[40].mxu0 %vm356_vm0, %v6981_v38 }
 0x151   :  { %1358 = vmatprep.mubr.bf16.mxu0 %v8496_v0 }
 0x155   :  { %5215 = vmatmul.mubr.msk.bf16.gmra.mrb[40].mxu1 %vm356_vm0, %v6973_v37 }
 0x156   :  { %583 = vmatprep.mubr.bf16.mxu1 %v8496_v0 }
 0x158   :  { %5298 = vmatmul.mubr.msk.bf16.gmra.mrb[44].mxu0 %vm356_vm0, %v6989_v39 }
 0x159   :  { %1368 = vmatprep.mubr.bf16.mxu0 %v8496_v0 }
 0x15d   :  { %5216 = vmatmul.mubr.msk.bf16.gmra.mrb[44].mxu1 %vm356_vm0, %v6981_v38 }
 0x15e   :  { %593 = vmatprep.mubr.bf16.mxu1 %v8496_v0 }
 0x160   :  { %5299 = vmatmul.mubr.msk.bf16.gmra.mrb[48].mxu0 %vm356_vm0, %v6997_v40 }
 0x161   :  { %1378 = vmatprep.mubr.bf16.mxu0 %v8496_v0 }
 0x165   :  { %5217 = vmatmul.mubr.msk.bf16.gmra.mrb[48].mxu1 %vm356_vm0, %v6989_v39 }
 0x166   :  { %603 = vmatprep.mubr.bf16.mxu1 %v8496_v0 }
 0x168   :  { %5300 = vmatmul.mubr.msk.bf16.gmra.mrb[52].mxu0 %vm356_vm0, %v7005_v41 }
 0x169   :  { %1388 = vmatprep.mubr.bf16.mxu0 %v8496_v0 }
 0x16d   :  { %5218 = vmatmul.mubr.msk.bf16.gmra.mrb[52].mxu1 %vm356_vm0, %v6997_v40 }
 0x16e   :  { %613 = vmatprep.mubr.bf16.mxu1 %v8496_v0 }
 0x170   :  { %5301 = vmatmul.mubr.msk.bf16.gmra.mrb[56].mxu0 %vm356_vm0, %v7013_v42 }
 0x171   :  { %1398 = vmatprep.mubr.bf16.mxu0 %v8496_v0 }
 0x175   :  { %5219 = vmatmul.mubr.msk.bf16.gmra.mrb[56].mxu1 %vm356_vm0, %v7005_v41 }
 0x176   :  { %623 = vmatprep.mubr.bf16.mxu1 %v8496_v0 }
 0x178   :  { %5302 = vmatmul.mubr.msk.bf16.gmra.mrb[60].mxu0 %vm356_vm0, %v7021_v43 }
 0x179   :  { %1408 = vmatprep.mubr.bf16.mxu0 %v8496_v0 }
 0x17d   :  { %5220 = vmatmul.mubr.msk.bf16.gmra.mrb[60].mxu1 %vm356_vm0, %v7013_v42 }
 0x17e   :  { %633 = vmatprep.mubr.bf16.mxu1 %v8496_v0 }
 0x180   :  { %5303 = vmatmul.mubr.msk.bf16.gmra.mrb[64].mxu0 %vm356_vm0, %v7029_v44 }
 0x181   :  { %1418 = vmatprep.mubr.bf16.mxu0 %v8496_v0 }
 0x185   :  { %5221 = vmatmul.mubr.msk.bf16.gmra.mrb[64].mxu1 %vm356_vm0, %v7021_v43 }
 0x186   :  { %643 = vmatprep.mubr.bf16.mxu1 %v8496_v0 }
 0x188   :  { %5304 = vmatmul.mubr.msk.bf16.gmra.mrb[68].mxu0 %vm356_vm0, %v7037_v45 }
 0x189   :  { %1428 = vmatprep.mubr.bf16.mxu0 %v8496_v0 }
 0x18d   :  { %5222 = vmatmul.mubr.msk.bf16.gmra.mrb[68].mxu1 %vm356_vm0, %v7029_v44 }
 0x18e   :  { %653 = vmatprep.mubr.bf16.mxu1 %v8496_v0 }
 0x190   :  { %5305 = vmatmul.mubr.msk.bf16.gmra.mrb[72].mxu0 %vm356_vm0, %v7045_v46 }
 0x191   :  { %1438 = vmatprep.mubr.bf16.mxu0 %v8496_v0 }
 0x195   :  { %5223 = vmatmul.mubr.msk.bf16.gmra.mrb[72].mxu1 %vm356_vm0, %v7037_v45 }
 0x196   :  { %663 = vmatprep.mubr.bf16.mxu1 %v8496_v0 }
 0x198   :  { %5306 = vmatmul.mubr.msk.bf16.gmra.mrb[76].mxu0 %vm356_vm0, %v7053_v47 }
 0x199   :  { %1448 = vmatprep.mubr.bf16.mxu0 %v8496_v0 }
 0x19d   :  { %5224 = vmatmul.mubr.msk.bf16.gmra.mrb[76].mxu1 %vm356_vm0, %v7045_v46 }
 0x19e   :  { %673 = vmatprep.mubr.bf16.mxu1 %v8496_v0 }
 0x1a0   :  { %5307 = vmatmul.mubr.msk.bf16.gmra.mrb[80].mxu0 %vm356_vm0, %v7061_v48 }
 0x1a1   :  { %1458 = vmatprep.mubr.bf16.mxu0 %v8496_v0 }
 0x1a5   :  { %5225 = vmatmul.mubr.msk.bf16.gmra.mrb[80].mxu1 %vm356_vm0, %v7053_v47 }
 0x1a6   :  { %683 = vmatprep.mubr.bf16.mxu1 %v8496_v0 }
 0x1a8   :  { %5308 = vmatmul.mubr.msk.bf16.gmra.mrb[84].mxu0 %vm356_vm0, %v7069_v49 }
 0x1a9   :  { %1468 = vmatprep.mubr.bf16.mxu0 %v8496_v0 }
 0x1ad   :  { %5226 = vmatmul.mubr.msk.bf16.gmra.mrb[84].mxu1 %vm356_vm0, %v7061_v48 }
 0x1ae   :  { %693 = vmatprep.mubr.bf16.mxu1 %v8496_v0 }
 0x1b0   :  { %5309 = vmatmul.mubr.msk.bf16.gmra.mrb[88].mxu0 %vm356_vm0, %v7143_v62 }
 0x1b1   :  { %1478 = vmatprep.mubr.bf16.mxu0 %v8496_v0 }
 0x1b5   :  { %5227 = vmatmul.mubr.msk.bf16.gmra.mrb[88].mxu1 %vm356_vm0, %v7069_v49 }
 0x1b6   :  { %703 = vmatprep.mubr.bf16.mxu1 %v8496_v0 }
 0x1b8   :  { %5310 = vmatmul.mubr.msk.bf16.gmra.mrb[92].mxu0 %vm356_vm0, %v7151_v63 }
 0x1b9   :  { %1488 = vmatprep.mubr.bf16.mxu0 %v8496_v0 }
 0x1bd   :  { %5228 = vmatmul.mubr.msk.bf16.gmra.mrb[92].mxu1 %vm356_vm0, %v7143_v62 }
 0x1be   :  { %713 = vmatprep.mubr.bf16.mxu1 %v8496_v0 }
 0x1c0   :  { %5311 = vmatmul.mubr.msk.bf16.gmra.mrb[96].mxu0 %vm356_vm0, %v7159_v1 }
 0x1c1   :  { %1498 = vmatprep.mubr.bf16.mxu0 %v8496_v0 }
 0x1c5   :  { %5229 = vmatmul.mubr.msk.bf16.gmra.mrb[96].mxu1 %vm356_vm0, %v7151_v63 }
 0x1c6   :  { %723 = vmatprep.mubr.bf16.mxu1 %v8496_v0 }
 0x1c8   :  { %5312 = vmatmul.mubr.msk.bf16.gmra.mrb[100].mxu0 %vm356_vm0, %v7167_v2 }
 0x1c9   :  { %1508 = vmatprep.mubr.bf16.mxu0 %v8496_v0 }
 0x1cd   :  { %5230 = vmatmul.mubr.msk.bf16.gmra.mrb[100].mxu1 %vm356_vm0, %v7159_v1 }
 0x1ce   :  { %733 = vmatprep.mubr.bf16.mxu1 %v8496_v0 }
 0x1d0   :  { %5313 = vmatmul.mubr.msk.bf16.gmra.mrb[104].mxu0 %vm356_vm0, %v7175_v3 }
 0x1d1   :  { %1518 = vmatprep.mubr.bf16.mxu0 %v8496_v0 }
 0x1d5   :  { %5231 = vmatmul.mubr.msk.bf16.gmra.mrb[104].mxu1 %vm356_vm0, %v7167_v2 }
 0x1d6   :  { %743 = vmatprep.mubr.bf16.mxu1 %v8496_v0 }
 0x1d8   :  { %5314 = vmatmul.mubr.msk.bf16.gmra.mrb[108].mxu0 %vm356_vm0, %v7183_v4 }
 0x1d9   :  { %1754 = vmatprep.mubr.bf16.mxu0 %v8496_v0 }
 0x1dd   :  { %5232 = vmatmul.mubr.msk.bf16.gmra.mrb[108].mxu1 %vm356_vm0, %v7175_v3 }
 0x1de   :  { %1094 = vmatprep.mubr.bf16.mxu1 %v8496_v0 }
 0x1e0   :  { %5328 = vmatmul.mubr.msk.bf16.vlgmr.msra.gmra.mrb[0].mxu0 %vm356_vm0, %v6909_v26  ;;  %v7329_v26 = vld [vmem:[%s8484_s0 + $0xf0] sm:$0xff]  }
 0x1e1   :  { %2229 = vmatpush1.bf16.msra.mxu0 %v6516_v5  ;;  %1764 = vmatprep.mubr.bf16.mxu0 %v8496_v0 }
 0x1e2   :  { %2230 = vmatprep.subr.bf16.mxu0 %v6521_v6  ;;  %v6562_v6 = vld [vmem:[%s8487_s3 + $0xa4] ss:$8 sps:$4 sm:$0xff]  }
 0x1e5   :  { %2231 = vmatpush1.bf16.msra.mxu0 %v6519_v7  ;;  %5270 = vmatmul.mubr.msk.bf16.vlgmr.msra.gmra.mrb[96].mxu1 %vm356_vm0, %v7143_v62 }
 0x1e6   :  { %2232 = vmatprep.subr.bf16.mxu0 %v6524_v8  ;;  %1104 = vmatprep.mubr.bf16.mxu1 %v8496_v0  ;;  %v6560_v8 = vld [vmem:[%s8487_s3 + $0xa0] ss:$8 sps:$4 sm:$0xff]  }
 0x1e8   :  { %5329 = vmatmul.mubr.msk.bf16.gmra.mrb[4].mxu0 %vm356_vm0, %v6917_v27 }
 0x1e9   :  { %1774 = vmatprep.mubr.bf16.mxu0 %v8496_v0  ;;  %2233 = vmatpush1.bf16.msra.mxu0 %v6522_v9 }
 0x1ea   :  { %2234 = vmatprep.subr.bf16.mxu0 %v6527_v10  ;;  %v6563_v10 = vld [vmem:[%s8487_s3 + $0xb0] ss:$8 sps:$4 sm:$0xff]  }
 0x1ed   :  { %2235 = vmatpush1.bf16.msra.mxu0 %v6525_v11  ;;  %5271 = vmatmul.mubr.msk.bf16.gmra.mrb[100].mxu1 %vm356_vm0, %v7151_v63 }
 0x1ee   :  { %2236 = vmatprep.subr.bf16.mxu0 %v6530_v13  ;;  %1114 = vmatprep.mubr.bf16.mxu1 %v8496_v0  ;;  %v6568_v13 = vld [vmem:[%s8487_s3 + $0xc4] ss:$8 sps:$4 sm:$0xff]  }
 0x1f0   :  { %5330 = vmatmul.mubr.msk.bf16.gmra.mrb[8].mxu0 %vm356_vm0, %v6925_v30 }
 0x1f1   :  { %1784 = vmatprep.mubr.bf16.mxu0 %v8496_v0  ;;  %2237 = vmatpush1.bf16.msra.mxu0 %v6528_v12 }
 0x1f2   :  { %2238 = vmatprep.subr.bf16.mxu0 %v6548_v29 }
 0x1f5   :  { %2239 = vmatpush1.bf16.msra.mxu0 %v6546_v28  ;;  %5272 = vmatmul.mubr.msk.bf16.gmra.mrb[104].mxu1 %vm356_vm0, %v7159_v1  ;;  %v6575_v28 = vld [vmem:[%s8487_s3 + $0xf0] ss:$8 sps:$4 sm:$0xff]  }
 0x1f6   :  { %1124 = vmatprep.mubr.bf16.mxu1 %v8496_v0 }
 0x1f8   :  { %5331 = vmatmul.mubr.msk.bf16.gmra.mrb[12].mxu0 %vm356_vm0, %v6933_v31 }
 0x1f9   :  { %1794 = vmatprep.mubr.bf16.mxu0 %v8496_v0 }
 0x1fd   :  { %5273 = vmatmul.mubr.msk.bf16.gmra.mrb[108].mxu1 %vm356_vm0, %v7167_v2 }
 0x1fe   :  { %3132 = vmatprep.mubr.bf16.mxu1 %v8496_v0 }
 0x200   :  { %5332 = vmatmul.mubr.msk.bf16.gmra.mrb[16].mxu0 %vm356_vm0, %v6941_v32 }
 0x201   :  { %1804 = vmatprep.mubr.bf16.mxu0 %v8496_v0 }
 0x208   :  { %5333 = vmatmul.mubr.msk.bf16.gmra.mrb[20].mxu0 %vm356_vm0, %v6949_v33 }
 0x209   :  { %1814 = vmatprep.mubr.bf16.mxu0 %v8496_v0 }
 0x210   :  { %5334 = vmatmul.mubr.msk.bf16.gmra.mrb[24].mxu0 %vm356_vm0, %v6957_v35 }
 0x211   :  { %1824 = vmatprep.mubr.bf16.mxu0 %v8496_v0 }
 0x218   :  { %5335 = vmatmul.mubr.msk.bf16.gmra.mrb[28].mxu0 %vm356_vm0, %v6965_v36 }
 0x219   :  { %1834 = vmatprep.mubr.bf16.mxu0 %v8496_v0 }
 0x220   :  { %5336 = vmatmul.mubr.msk.bf16.gmra.mrb[32].mxu0 %vm356_vm0, %v6973_v37 }
 0x221   :  { %1844 = vmatprep.mubr.bf16.mxu0 %v8496_v0 }
 0x228   :  { %5337 = vmatmul.mubr.msk.bf16.gmra.mrb[36].mxu0 %vm356_vm0, %v6981_v38 }
 0x229   :  { %1854 = vmatprep.mubr.bf16.mxu0 %v8496_v0 }
 0x230   :  { %5338 = vmatmul.mubr.msk.bf16.gmra.mrb[40].mxu0 %vm356_vm0, %v6989_v39 }
 0x231   :  { %1864 = vmatprep.mubr.bf16.mxu0 %v8496_v0 }
 0x238   :  { %5339 = vmatmul.mubr.msk.bf16.gmra.mrb[44].mxu0 %vm356_vm0, %v6997_v40 }
 0x239   :  { %1874 = vmatprep.mubr.bf16.mxu0 %v8496_v0 }
 0x240   :  { %5340 = vmatmul.mubr.msk.bf16.gmra.mrb[48].mxu0 %vm356_vm0, %v7005_v41 }
 0x241   :  { %1884 = vmatprep.mubr.bf16.mxu0 %v8496_v0 }
 0x248   :  { %5341 = vmatmul.mubr.msk.bf16.gmra.mrb[52].mxu0 %vm356_vm0, %v7013_v42 }
 0x249   :  { %1894 = vmatprep.mubr.bf16.mxu0 %v8496_v0 }
 0x250   :  { %5342 = vmatmul.mubr.msk.bf16.gmra.mrb[56].mxu0 %vm356_vm0, %v7021_v43 }
 0x251   :  { %1904 = vmatprep.mubr.bf16.mxu0 %v8496_v0 }
 0x258   :  { %5343 = vmatmul.mubr.msk.bf16.gmra.mrb[60].mxu0 %vm356_vm0, %v7029_v44 }
 0x259   :  { %1914 = vmatprep.mubr.bf16.mxu0 %v8496_v0 }
 0x260   :  { %5344 = vmatmul.mubr.msk.bf16.gmra.mrb[64].mxu0 %vm356_vm0, %v7037_v45 }
 0x261   :  { %1924 = vmatprep.mubr.bf16.mxu0 %v8496_v0 }
 0x268   :  { %5345 = vmatmul.mubr.msk.bf16.gmra.mrb[68].mxu0 %vm356_vm0, %v7045_v46 }
 0x269   :  { %1934 = vmatprep.mubr.bf16.mxu0 %v8496_v0 }
 0x270   :  { %5346 = vmatmul.mubr.msk.bf16.gmra.mrb[72].mxu0 %vm356_vm0, %v7053_v47 }
 0x271   :  { %1944 = vmatprep.mubr.bf16.mxu0 %v8496_v0 }
 0x278   :  { %5347 = vmatmul.mubr.msk.bf16.gmra.mrb[76].mxu0 %vm356_vm0, %v7061_v48 }
 0x279   :  { %1954 = vmatprep.mubr.bf16.mxu0 %v8496_v0 }
 0x280   :  { %5348 = vmatmul.mubr.msk.bf16.gmra.mrb[80].mxu0 %vm356_vm0, %v7069_v49 }
 0x281   :  { %1964 = vmatprep.mubr.bf16.mxu0 %v8496_v0 }
 0x288   :  { %5349 = vmatmul.mubr.msk.bf16.gmra.mrb[84].mxu0 %vm356_vm0, %v7143_v62 }
 0x289   :  { %1974 = vmatprep.mubr.bf16.mxu0 %v8496_v0 }
 0x290   :  { %5350 = vmatmul.mubr.msk.bf16.gmra.mrb[88].mxu0 %vm356_vm0, %v7151_v63 }
 0x291   :  { %1984 = vmatprep.mubr.bf16.mxu0 %v8496_v0 }
 0x298   :  { %5351 = vmatmul.mubr.msk.bf16.gmra.mrb[92].mxu0 %vm356_vm0, %v7159_v1 }
 0x299   :  { %1994 = vmatprep.mubr.bf16.mxu0 %v8496_v0 }
 0x2a0   :  { %5352 = vmatmul.mubr.msk.bf16.gmra.mrb[96].mxu0 %vm356_vm0, %v7167_v2 }
 0x2a1   :  { %2004 = vmatprep.mubr.bf16.mxu0 %v8496_v0 }
 0x2a8   :  { %5353 = vmatmul.mubr.msk.bf16.gmra.mrb[100].mxu0 %vm356_vm0, %v7175_v3 }
 0x2a9   :  { %2014 = vmatprep.mubr.bf16.mxu0 %v8496_v0 }
 0x2b0   :  { %5354 = vmatmul.mubr.msk.bf16.gmra.mrb[104].mxu0 %vm356_vm0, %v7183_v4 }
 0x2b1   :  { %2024 = vmatprep.mubr.bf16.mxu0 %v8496_v0 }
 0x2b8   :  { %5355 = vmatmul.mubr.msk.bf16.gmra.mrb[108].mxu0 %vm356_vm0, %v7329_v26 }
 0x2b9   :  { %2260 = vmatprep.mubr.bf16.mxu0 %v8496_v0 }
 0x2c0   :  { %5369 = vmatmul.mubr.msk.bf16.vlgmr.msra.gmra.mrb[0].mxu0 %vm356_vm0, %v6917_v27  ;;  %v7401_v27 = vpop.f32.mrb[0].mxu1 }
 0x2c1   :  { %2270 = vmatprep.mubr.bf16.mxu0 %v8496_v0 }
 0x2c8   :  { %5370 = vmatmul.mubr.msk.bf16.gmra.mrb[4].mxu0 %vm356_vm0, %v6925_v30  ;;  %v7404_v30 = vpop.f32.mrb[1].mxu1 }
 0x2c9   :  { %2280 = vmatprep.mubr.bf16.mxu0 %v8496_v0 }
 0x2d0   :  { %5371 = vmatmul.mubr.msk.bf16.gmra.mrb[8].mxu0 %vm356_vm0, %v6933_v31  ;;  %v7407_v31 = vpop.f32.mrb[2].mxu1 }
 0x2d1   :  { %2290 = vmatprep.mubr.bf16.mxu0 %v8496_v0 }
 0x2d8   :  { %5372 = vmatmul.mubr.msk.bf16.gmra.mrb[12].mxu0 %vm356_vm0, %v6941_v32  ;;  %v7409_v32 = vpop.f32.mrb[3].mxu1 }
 0x2d9   :  { %2300 = vmatprep.mubr.bf16.mxu0 %v8496_v0 }
 0x2e0   :  { %5373 = vmatmul.mubr.msk.bf16.gmra.mrb[16].mxu0 %vm356_vm0, %v6949_v33  ;;  %v7415_v33 = vpop.f32.mrb[4].mxu1 }
 0x2e1   :  { %2310 = vmatprep.mubr.bf16.mxu0 %v8496_v0 }
 0x2e8   :  { %5374 = vmatmul.mubr.msk.bf16.gmra.mrb[20].mxu0 %vm356_vm0, %v6957_v35  ;;  %v7418_v35 = vpop.f32.mrb[5].mxu1 }
 0x2e9   :  { %2320 = vmatprep.mubr.bf16.mxu0 %v8496_v0 }
 0x2f0   :  { %5375 = vmatmul.mubr.msk.bf16.gmra.mrb[24].mxu0 %vm356_vm0, %v6965_v36  ;;  %v6556_v36 = vld [vmem:[%s8487_s3 + $0x84] ss:$8 sps:$4 sm:$0xff]  }
 0x2f1   :  { %2330 = vmatprep.mubr.bf16.mxu0 %v8496_v0  ;;  %3100 = vmatprep.subr.bf16.mxu1 %v6556_v36 }
 0x2f8   :  { %5376 = vmatmul.mubr.msk.bf16.gmra.mrb[28].mxu0 %vm356_vm0, %v6973_v37  ;;  %v7424_v37 = vpop.f32.mrb[6].mxu1 }
 0x2f9   :  { %2340 = vmatprep.mubr.bf16.mxu0 %v8496_v0 }
 0x300   :  { %5377 = vmatmul.mubr.msk.bf16.gmra.mrb[32].mxu0 %vm356_vm0, %v6981_v38  ;;  %v6554_v38 = vld [vmem:[%s8487_s3 + $0x80] ss:$8 sps:$4 sm:$0xff]  }
 0x301   :  { %2350 = vmatprep.mubr.bf16.mxu0 %v8496_v0  ;;  %3101 = vmatpush1.bf16.msra.mxu1 %v6554_v38 }
 0x308   :  { %5378 = vmatmul.mubr.msk.bf16.gmra.mrb[36].mxu0 %vm356_vm0, %v6989_v39  ;;  %v7429_v39 = vpop.f32.mrb[7].mxu1 }
 0x309   :  { %2360 = vmatprep.mubr.bf16.mxu0 %v8496_v0  ;;  %v7439_v61 = vpop.f32.mrb[8].mxu1 }
 0x30a   :  { %v7442_v5 = vpop.f32.mrb[9].mxu1 }
 0x30b   :  { %v7447_v7 = vpop.f32.mrb[10].mxu1 }
 0x30c   :  { %v7452_v9 = vpop.f32.mrb[11].mxu1 }
 0x30d   :  { %v7462_v11 = vpop.f32.mrb[12].mxu1 }
 0x30e   :  { %v7465_v12 = vpop.f32.mrb[13].mxu1 }
 0x30f   :  { %v7470_v14 = vpop.f32.mrb[14].mxu1 }
 0x310   :  { %5379 = vmatmul.mubr.msk.bf16.gmra.mrb[40].mxu0 %vm356_vm0, %v6997_v40  ;;  %v6559_v40 = vld [vmem:[%s8487_s3 + $0x94] ss:$8 sps:$4 sm:$0xff]   ;;  %v7475_v16 = vpop.f32.mrb[15].mxu1 }
 0x311   :  { %2370 = vmatprep.mubr.bf16.mxu0 %v8496_v0  ;;  %3102 = vmatprep.subr.bf16.mxu1 %v6559_v40  ;;  %v7485_v18 = vpop.f32.mrb[16].mxu1 }
 0x312   :  { %v7488_v20 = vpop.f32.mrb[17].mxu1 }
 0x313   :  { %v7493_v22 = vpop.f32.mrb[18].mxu1 }
 0x314   :  { %v7498_v25 = vpop.f32.mrb[19].mxu1 }
 0x315   :  { %v7508_v29 = vpop.f32.mrb[20].mxu1 }
 0x316   :  { %v7511_v34 = vpop.f32.mrb[21].mxu1 }
 0x317   :  { %v7513_v50 = vpop.f32.mrb[22].mxu1 }
 0x318   :  { %5380 = vmatmul.mubr.msk.bf16.gmra.mrb[44].mxu0 %vm356_vm0, %v7005_v41  ;;  %v6557_v41 = vld [vmem:[%s8487_s3 + $0x90] ss:$8 sps:$4 sm:$0xff]   ;;  %v7515_v51 = vpop.f32.mrb[23].mxu1 }
 0x319   :  { %2380 = vmatprep.mubr.bf16.mxu0 %v8496_v0  ;;  %3103 = vmatpush1.bf16.msra.mxu1 %v6557_v41  ;;  %v7519_v52 = vpop.f32.mrb[24].mxu1 }
 0x31a   :  { %3104 = vmatprep.subr.bf16.mxu1 %v6562_v6  ;;  %v7522_v53 = vpop.f32.mrb[25].mxu1 }
 0x31d   :  { %3105 = vmatpush1.bf16.msra.mxu1 %v6560_v8 }
 0x320   :  { %5381 = vmatmul.mubr.msk.bf16.gmra.mrb[48].mxu0 %vm356_vm0, %v7013_v42  ;;  %v6565_v42 = vld [vmem:[%s8487_s3 + $0xb4] ss:$8 sps:$4 sm:$0xff]  }
 0x321   :  { %2390 = vmatprep.mubr.bf16.mxu0 %v8496_v0  ;;  %3106 = vmatprep.subr.bf16.mxu1 %v6565_v42 }
 0x322   :  { %3107 = vmatpush1.bf16.msra.mxu1 %v6563_v10 }
 0x323   :  { %3108 = vmatprep.subr.bf16.mxu1 %v6568_v13 }
 0x326   :  { %3109 = vmatpush1.bf16.msra.mxu1 %v6566_v15 }
 0x328   :  { %5382 = vmatmul.mubr.msk.bf16.gmra.mrb[52].mxu0 %vm356_vm0, %v7021_v43  ;;  %v6571_v43 = vld [vmem:[%s8487_s3 + $0xd4] ss:$8 sps:$4 sm:$0xff]  }
 0x329   :  { %2400 = vmatprep.mubr.bf16.mxu0 %v8496_v0  ;;  %3110 = vmatprep.subr.bf16.mxu1 %v6571_v43 }
 0x32a   :  { %3111 = vmatpush1.bf16.msra.mxu1 %v6569_v17 }
 0x32b   :  { %3112 = vmatprep.subr.bf16.mxu1 %v6574_v21 }
 0x32e   :  { %3113 = vmatpush1.bf16.msra.mxu1 %v6572_v23 }
 0x330   :  { %5383 = vmatmul.mubr.msk.bf16.gmra.mrb[56].mxu0 %vm356_vm0, %v7029_v44  ;;  %v6577_v44 = vld [vmem:[%s8487_s3 + $0xf4] ss:$8 sps:$4 sm:$0xff]  }
 0x331   :  { %2410 = vmatprep.mubr.bf16.mxu0 %v8496_v0  ;;  %3114 = vmatprep.subr.bf16.mxu1 %v6577_v44 }
 0x332   :  { %3115 = vmatpush1.bf16.msra.mxu1 %v6575_v28 }
 0x338   :  { %5384 = vmatmul.mubr.msk.bf16.gmra.mrb[60].mxu0 %vm356_vm0, %v7037_v45  ;;  %v7524_v45 = vpop.f32.mrb[26].mxu1 }
 0x339   :  { %2420 = vmatprep.mubr.bf16.mxu0 %v8496_v0  ;;  %v7526_v54 = vpop.f32.mrb[27].mxu1 }
 0x33a   :  { %v7530_v55 = vpop.f32.mrb[28].mxu1 }
 0x33b   :  { %v7533_v19 = vpop.f32.mrb[29].mxu1 }
 0x340   :  { %5385 = vmatmul.mubr.msk.bf16.gmra.mrb[64].mxu0 %vm356_vm0, %v7045_v46  ;;  %v7535_v46 = vpop.f32.mrb[30].mxu1 }
 0x341   :  { %2430 = vmatprep.mubr.bf16.mxu0 %v8496_v0  ;;  %v7537_v56 = vpop.f32.mrb[31].mxu1 }
 0x342   :  { %v7541_v57 = vpop.f32.mrb[32].mxu1 }
 0x343   :  { %v7544_v58 = vpop.f32.mrb[33].mxu1 }
 0x348   :  { %5386 = vmatmul.mubr.msk.bf16.gmra.mrb[68].mxu0 %vm356_vm0, %v7053_v47  ;;  %v7546_v47 = vpop.f32.mrb[34].mxu1 }
 0x349   :  { %2440 = vmatprep.mubr.bf16.mxu0 %v8496_v0  ;;  %v7548_v24 = vpop.f32.mrb[35].mxu1 }
 0x34a   :  { %v7552_v59 = vpop.f32.mrb[36].mxu1 }
 0x34b   :  { %v7555_v60 = vpop.f32.mrb[37].mxu1 }
 0x350   :  { %5387 = vmatmul.mubr.msk.bf16.gmra.mrb[72].mxu0 %vm356_vm0, %v7061_v48  ;;  %v7557_v48 = vpop.f32.mrb[38].mxu1 }
 0x351   :  { %2450 = vmatprep.mubr.bf16.mxu0 %v8496_v0  ;;  %v7559_v36 = vpop.f32.mrb[39].mxu1 }
 0x352   :  { %v7563_v38 = vpop.f32.mrb[40].mxu1 }
 0x353   :  { %v7566_v40 = vpop.f32.mrb[41].mxu1 }
 0x358   :  { %5388 = vmatmul.mubr.msk.bf16.gmra.mrb[76].mxu0 %vm356_vm0, %v7069_v49  ;;  %v7568_v49 = vpop.f32.mrb[42].mxu1 }
 0x359   :  { %2460 = vmatprep.mubr.bf16.mxu0 %v8496_v0  ;;  %v7570_v41 = vpop.f32.mrb[43].mxu1 }
 0x35a   :  { %v7574_v6 = vpop.f32.mrb[44].mxu1 }
 0x35b   :  { %v7577_v8 = vpop.f32.mrb[45].mxu1 }
 0x360   :  { %5389 = vmatmul.mubr.msk.bf16.gmra.mrb[80].mxu0 %vm356_vm0, %v7143_v62  ;;  %v7579_v62 = vpop.f32.mrb[46].mxu1 }
 0x361   :  { %2470 = vmatprep.mubr.bf16.mxu0 %v8496_v0  ;;  %8512 = vst [vmem:[#allocation8_spill] sm:$0xff] %v7579_v62  ;;  %v7581_v42 = vpop.f32.mrb[47].mxu1 }
 0x362   :  { %8513 = vst [vmem:[#allocation9_spill] sm:$0xff] %v7581_v42  ;;  %v7585_v10 = vpop.f32.mrb[48].mxu1 }
 0x363   :  { %8514 = vst [vmem:[#allocation10_spill] sm:$0xff] %v7585_v10  ;;  %v7588_v13 = vpop.f32.mrb[49].mxu1 }
 0x364   :  { %8515 = vst [vmem:[#allocation11_spill] sm:$0xff] %v7588_v13 }
 0x368   :  { %5390 = vmatmul.mubr.msk.bf16.gmra.mrb[84].mxu0 %vm356_vm0, %v7151_v63  ;;  %v7590_v63 = vpop.f32.mrb[50].mxu1 }
 0x369   :  { %2480 = vmatprep.mubr.bf16.mxu0 %v8496_v0  ;;  %8516 = vst [vmem:[#allocation12_spill] sm:$0xff] %v7590_v63  ;;  %v7592_v15 = vpop.f32.mrb[51].mxu1 }
 0x36a   :  { %8517 = vst [vmem:[#allocation13_spill] sm:$0xff] %v7592_v15  ;;  %v7596_v43 = vpop.f32.mrb[52].mxu1 }
 0x36b   :  { %8518 = vst [vmem:[#allocation14_spill] sm:$0xff] %v7596_v43  ;;  %v7599_v17 = vpop.f32.mrb[53].mxu1 }
 0x36c   :  { %8519 = vst [vmem:[#allocation15_spill] sm:$0xff] %v7599_v17 }
 0x370   :  { %5391 = vmatmul.mubr.msk.bf16.gmra.mrb[88].mxu0 %vm356_vm0, %v7159_v1  ;;  %v7601_v1 = vpop.f32.mrb[54].mxu1 }
 0x371   :  { %2490 = vmatprep.mubr.bf16.mxu0 %v8496_v0  ;;  %8520 = vst [vmem:[#allocation16_spill] sm:$0xff] %v7601_v1  ;;  %v7603_v21 = vpop.f32.mrb[55].mxu1 }
 0x372   :  { %8521 = vst [vmem:[#allocation17_spill] sm:$0xff] %v7603_v21  ;;  %v7607_v23 = vpop.f32.mrb[56].mxu1 }
 0x373   :  { %8522 = vst [vmem:[#allocation18_spill] sm:$0xff] %v7607_v23  ;;  %v7610_v44 = vpop.f32.mrb[57].mxu1 }
 0x374   :  { %8523 = vst [vmem:[#allocation19_spill] sm:$0xff] %v7610_v44 }
 0x378   :  { %5392 = vmatmul.mubr.msk.bf16.gmra.mrb[92].mxu0 %vm356_vm0, %v7167_v2  ;;  %v7612_v2 = vpop.f32.mrb[58].mxu1 }
 0x379   :  { %2500 = vmatprep.mubr.bf16.mxu0 %v8496_v0  ;;  %8524 = vst [vmem:[#allocation20_spill] sm:$0xff] %v7612_v2  ;;  %v7614_v28 = vpop.f32.mrb[59].mxu1  ;;  %v2655_v2 = vlaneseq }
 0x37a   :  { %8525 = vst [vmem:[#allocation21_spill] sm:$0xff] %v7614_v28  ;;  %v7618_v17 = vpop.f32.mrb[60].mxu1 }
 0x37b   :  { %8526 = vst [vmem:[#allocation22_spill] sm:$0xff] %v7618_v17  ;;  %v7624_v23 = vpop.f32.mrb[61].mxu1 }
 0x37c   :  { %8527 = vst [vmem:[#allocation23_spill] sm:$0xff] %v7624_v23  ;;  %v7626_v21 = vpop.f32.mrb[62].mxu1 }
 0x37d   :  { %8528 = vst [vmem:[#allocation24_spill] sm:$0xff] %v7626_v21  ;;  %v7628_v44 = vpop.f32.mrb[63].mxu1 }
 0x37e   :  { %8529 = vst [vmem:[#allocation25_spill] sm:$0xff] %v7628_v44  ;;  %v7634_v17 = vpop.f32.mrb[64].mxu1 }
 0x37f   :  { %8531 = vst [vmem:[#allocation27_spill] sm:$0xff] %v7634_v17  ;;  %v7637_v28 = vpop.f32.mrb[65].mxu1 }
 0x380   :  { %5393 = vmatmul.mubr.msk.bf16.gmra.mrb[96].mxu0 %vm356_vm0, %v7175_v3  ;;  %v6580_v3 = vld [vmem:[%s8487_s3 + $0x4] ss:$8 sps:$4 sm:$0xff]   ;;  %8532 = vst [vmem:[#allocation28_spill] sm:$0xff] %v7637_v28  ;;  %v7639_v1 = vpop.f32.mrb[66].mxu1 }
 0x381   :  { %2510 = vmatprep.mubr.bf16.mxu0 %v8496_v0  ;;  %3313 = vmatprep.subr.bf16.mxu1 %v6580_v3  ;;  %8533 = vst [vmem:[#allocation29_spill] sm:$0xff] %v7639_v1  ;;  %v7641_v43 = vpop.f32.mrb[67].mxu1 }
 0x382   :  { %8534 = vst [vmem:[#allocation30_spill] sm:$0xff] %v7641_v43  ;;  %v7660_v15 = vpop.f32.mrb[68].mxu1 }
 0x383   :  { %8535 = vst [vmem:[#allocation31_spill] sm:$0xff] %v7660_v15 }
 0x388   :  { %5394 = vmatmul.mubr.msk.bf16.gmra.mrb[100].mxu0 %vm356_vm0, %v7183_v4  ;;  %v7632_v4 = vshrl.u32 %v2655_v2, 7  ;;  %v2653_v2 = vld [vmem:[%s8486_s2] sm:$0x3] }
 0x389   :  { %2520 = vmatprep.mubr.bf16.mxu0 %v8496_v0 }
 0x38a   :  { %8530 = vst [vmem:[#allocation26_spill] sm:$0xff] %v7632_v4  ;;  %v8498_v44 = vsub.s32 0, %v7632_v4  ;;  %v8499_v1 = vsub.s32 1, %v7632_v4 }
 0x38c   :  { %v7664_v63 = vrot.slane %v2653_v2, %v8499_v1 }
 0x390   :  { %5395 = vmatmul.mubr.msk.bf16.gmra.mrb[104].mxu0 %vm356_vm0, %v7329_v26  ;;  %v6553_v26 = vld [vmem:[%s8484_s0 + $0xf8] sm:$0xff]  }
 0x391   :  { %2530 = vmatprep.mubr.bf16.mxu0 %v8496_v0 }
 0x393   :  { %v2262_v23 = vpop.f32.mrb[0].mxu0 }
 0x394   :  { %v5815_v3 = vadd.f32 %v2262_v23, %v7401_v27  ;;  %v2264_v21 = vpop.f32.mrb[1].mxu0  ;;  %v7657_v23 = vrot.slane %v2653_v2, %v8498_v44 }
 0x395   :  { %v5816_v0 = vadd.f32 %v2264_v21, %v7404_v30  ;;  %v2266_v28 = vpop.f32.mrb[2].mxu0  ;;  %v7666_v30 = vpop.f32.mrb[69].mxu1 }
 0x396   :  { %v5817_v43 = vadd.f32 %v2266_v28, %v7407_v31  ;;  %v2268_v17 = vpop.f32.mrb[3].mxu0  ;;  %8536 = vst [vmem:[#allocation32_spill] sm:$0xff] %v7666_v30  ;;  %v7668_v21 = vpop.f32.mrb[70].mxu1  ;;  %v2665_v28 = vadd.f32 %v5815_v3, %v7657_v23 }
 0x397   :  { %v5818_v27 = vadd.f32 %v2268_v17, %v7409_v32  ;;  %8537 = vst [vmem:[#allocation33_spill] sm:$0xff] %v7668_v21  ;;  %v7672_v44 = vpop.f32.mrb[71].mxu1 }
 0x398   :  { %5396 = vmatmul.mubr.msk.bf16.gmra.mrb[108].mxu0 %vm356_vm0, %v6553_v26  ;;  %8538 = vst [vmem:[#allocation34_spill] sm:$0xff] %v7672_v44  ;;  %v2666_v26 = vadd.f32 %v5816_v0, %v7664_v63  ;;  %v2667_v2 = vadd.f32 %v5817_v43, %v7657_v23  ;;  %v7683_v10 = vpop.f32.mrb[72].mxu1 }
 0x399   :  { %v2668_v30 = vadd.f32 %v5818_v27, %v7664_v63  ;;  %8539 = vst [vmem:[#allocation35_spill] sm:$0xff] %v7683_v10 }
 0x39b   :  { %v2272_v31 = vpop.f32.mrb[4].mxu0 }
 0x39c   :  { %v5819_v32 = vadd.f32 %v2272_v31, %v7415_v33  ;;  %v2274_v17 = vpop.f32.mrb[5].mxu0  ;;  %v2777_v31 = vmax.f32 %v2665_v28, 0.0 }
 0x39d   :  { %v5820_v15 = vadd.f32 %v2274_v17, %v7418_v35  ;;  %v2276_v13 = vpop.f32.mrb[6].mxu0  ;;  %v2778_v35 = vmax.f32 %v2666_v26, 0.0 }
 0x39e   :  { %v2669_v1 = vadd.f32 %v5819_v32, %v7657_v23  ;;  %v5821_v4 = vadd.f32 %v2276_v13, %v7424_v37  ;;  %v2278_v21 = vpop.f32.mrb[7].mxu0  ;;  %v7686_v32 = vpop.f32.mrb[73].mxu1  ;;  %v2779_v37 = vmax.f32 %v2667_v2, 0.0 }
 0x39f   :  { %v2670_v3 = vadd.f32 %v5820_v15, %v7664_v63  ;;  %v5822_v33 = vadd.f32 %v2278_v21, %v7429_v39  ;;  %8540 = vst [vmem:[#allocation36_spill] sm:$0xff] %v7686_v32  ;;  %v7688_v27 = vpop.f32.mrb[74].mxu1  ;;  %v2780_v15 = vmax.f32 %v2668_v30, 0.0 }
 0x3a0   :  { %v2781_v44 = vmax.f32 %v2669_v1, 0.0  ;;  %v2671_v0 = vadd.f32 %v5821_v4, %v7657_v23  ;;  %v7690_v1 = vpop.f32.mrb[75].mxu1 }
 0x3a1   :  { %v2782_v17 = vmax.f32 %v2670_v3, 0.0  ;;  %v2672_v43 = vadd.f32 %v5822_v33, %v7664_v63 }
 0x3a2   :  { %v2889_v13 = vmax.f32 %v2777_v31, %v2781_v44  ;;  %v2783_v42 = vmax.f32 %v2671_v0, 0.0  ;;  %v7696_v0 = vpop.f32.mrb[76].mxu1 }
 0x3a3   :  { %v2890_v62 = vmax.f32 %v2778_v35, %v2782_v17  ;;  %v2784_v39 = vmax.f32 %v2672_v43, 0.0  ;;  %v2282_v21 = vpop.f32.mrb[8].mxu0  ;;  %v7700_v17 = vpop.f32.mrb[77].mxu1 }
 0x3a4   :  { %v2891_v4 = vmax.f32 %v2779_v37, %v2783_v42  ;;  %v5823_v28 = vadd.f32 %v2282_v21, %v7439_v61  ;;  %v2284_v26 = vpop.f32.mrb[9].mxu0  ;;  %v7702_v42 = vpop.f32.mrb[78].mxu1 }
 0x3a5   :  { %v2945_v3 = vmax.f32 %v2889_v13, %v2890_v62  ;;  %v2892_v10 = vmax.f32 %v2780_v15, %v2784_v39  ;;  %v5824_v33 = vadd.f32 %v2284_v26, %v7442_v5  ;;  %v2286_v32 = vpop.f32.mrb[10].mxu0  ;;  %v7704_v62 = vpop.f32.mrb[79].mxu1 }
 0x3a6   :  { %v5825_v44 = vadd.f32 %v2286_v32, %v7447_v7  ;;  %v2288_v2 = vpop.f32.mrb[11].mxu0  ;;  %v2673_v5 = vadd.f32 %v5823_v28, %v7657_v23 }
 0x3a7   :  { %v2946_v31 = vmax.f32 %v2891_v4, %v2892_v10  ;;  %v5826_v30 = vadd.f32 %v2288_v2, %v7452_v9  ;;  %v2674_v10 = vadd.f32 %v5824_v33, %v7664_v63  ;;  %v7717_v33 = vpop.f32.mrb[80].mxu1 }
 0x3a8   :  { %v2675_v37 = vadd.f32 %v5825_v44, %v7657_v23 }
 0x3a9   :  { %v7698_v35 = vpack.c.bf16 %v2946_v31, %v2945_v3  ;;  %v2676_v21 = vadd.f32 %v5826_v30, %v7664_v63  ;;  %v7720_v31 = vpop.f32.mrb[81].mxu1 }
 0x3aa   :  { %v7722_v30 = vpop.f32.mrb[82].mxu1 }
 0x3ab   :  { %8541 = vst [vmem:[#allocation37_spill] sm:$0xff] %v7698_v35  ;;  %v2292_v61 = vpop.f32.mrb[12].mxu0 }
 0x3ac   :  { %v5827_v43 = vadd.f32 %v2292_v61, %v7462_v11  ;;  %v2294_v7 = vpop.f32.mrb[13].mxu0  ;;  %v2785_v11 = vmax.f32 %v2673_v5, 0.0 }
 0x3ad   :  { %v5828_v9 = vadd.f32 %v2294_v7, %v7465_v12  ;;  %v2296_v32 = vpop.f32.mrb[14].mxu0  ;;  %v2786_v12 = vmax.f32 %v2674_v10, 0.0  ;;  %v2788_v7 = vmax.f32 %v2676_v21, 0.0 }
 0x3ae   :  { %v2677_v13 = vadd.f32 %v5827_v43, %v7657_v23  ;;  %v5829_v15 = vadd.f32 %v2296_v32, %v7470_v14  ;;  %v2298_v39 = vpop.f32.mrb[15].mxu0  ;;  %v2787_v14 = vmax.f32 %v2675_v37, 0.0  ;;  %v7724_v32 = vpop.f32.mrb[83].mxu1 }
 0x3af   :  { %v2678_v4 = vadd.f32 %v5828_v9, %v7664_v63  ;;  %v5830_v28 = vadd.f32 %v2298_v39, %v7475_v16 }
 0x3b0   :  { %v2789_v26 = vmax.f32 %v2677_v13, 0.0  ;;  %v2679_v3 = vadd.f32 %v5829_v15, %v7657_v23 }
 0x3b1   :  { %v2790_v2 = vmax.f32 %v2678_v4, 0.0  ;;  %v2680_v44 = vadd.f32 %v5830_v28, %v7664_v63 }
 0x3b2   :  { %v2893_v61 = vmax.f32 %v2785_v11, %v2789_v26  ;;  %v2791_v43 = vmax.f32 %v2679_v3, 0.0  ;;  %v6578_v3 = vld [vmem:[%s8487_s3] ss:$8 sps:$4 sm:$0xff]  }
 0x3b3   :  { %v2894_v9 = vmax.f32 %v2786_v12, %v2790_v2  ;;  %v2792_v16 = vmax.f32 %v2680_v44, 0.0  ;;  %v2302_v5 = vpop.f32.mrb[16].mxu0  ;;  %v7733_v12 = vpop.f32.mrb[84].mxu1 }
 0x3b4   :  { %v2895_v13 = vmax.f32 %v2787_v14, %v2791_v43  ;;  %v5831_v15 = vadd.f32 %v2302_v5, %v7485_v18  ;;  %v2304_v10 = vpop.f32.mrb[17].mxu0  ;;  %v6583_v18 = vld [vmem:[%s8487_s3 + $0x14] ss:$8 sps:$4 sm:$0xff]   ;;  %v8542_v43 = vmov 0  }
 0x3b5   :  { %v2947_v39 = vmax.f32 %v2893_v61, %v2894_v9  ;;  %v2896_v4 = vmax.f32 %v2788_v7, %v2792_v16  ;;  %v5832_v28 = vadd.f32 %v2304_v10, %v7488_v20  ;;  %v2306_v35 = vpop.f32.mrb[18].mxu0  ;;  %v7740_v20 = vpop.f32.mrb[85].mxu1  ;;  %v6581_v7 = vld [vmem:[%s8487_s3 + $0x10] ss:$8 sps:$4 sm:$0xff]  }
 0x3b6   :  { %v5833_v37 = vadd.f32 %v2306_v35, %v7493_v22  ;;  %v2308_v11 = vpop.f32.mrb[19].mxu0  ;;  %v7742_v44 = vpop.f32.mrb[86].mxu1  ;;  %v2681_v35 = vadd.f32 %v5831_v15, %v7657_v23 }
 0x3b7   :  { %v2948_v26 = vmax.f32 %v2895_v13, %v2896_v4  ;;  %v5834_v21 = vadd.f32 %v2308_v11, %v7498_v25  ;;  %v7745_v25 = vpop.f32.mrb[87].mxu1  ;;  %v2682_v9 = vadd.f32 %v5832_v28, %v7664_v63  ;;  %v6586_v13 = vld [vmem:[%s8487_s3 + $0x24] ss:$8 sps:$4 sm:$0xff]  }
 0x3b9   :  { %v7735_v2 = vpack.c.bf16 %v2948_v26, %v2947_v39  ;;  %v2684_v4 = vadd.f32 %v5834_v21, %v7664_v63  ;;  %v6589_v21 = vld [vmem:[%s8487_s3 + $0x34] ss:$8 sps:$4 sm:$0xff]  }
 0x3bb   :  { %v2312_v22 = vpop.f32.mrb[20].mxu0  ;;  %3133 = vmatmul.mubr.bf16.vlgmr.msra.gmra.mrb[112].mxu1 %v7735_v2 }
 0x3bc   :  { %v5835_v14 = vadd.f32 %v2312_v22, %v7508_v29  ;;  %v2314_v61 = vpop.f32.mrb[21].mxu0  ;;  %3142 = vmatprep.mubr.bf16.mxu1 %v8542_v43  ;;  %3314 = vmatpush1.bf16.msra.mxu1 %v6578_v3  ;;  %v2683_v29 = vadd.f32 %v5833_v37, %v7657_v23  ;;  %v6584_v37 = vld [vmem:[%s8487_s3 + $0x20] ss:$8 sps:$4 sm:$0xff]  }
 0x3bd   :  { %v5836_v16 = vadd.f32 %v2314_v61, %v7511_v34  ;;  %v2316_v5 = vpop.f32.mrb[22].mxu0  ;;  %3315 = vmatprep.subr.bf16.mxu1 %v6583_v18  ;;  %v2793_v34 = vmax.f32 %v2681_v35, 0.0  ;;  %v2794_v18 = vmax.f32 %v2682_v9, 0.0  ;;  %v2796_v61 = vmax.f32 %v2684_v4, 0.0 }
 0x3be   :  { %v2685_v15 = vadd.f32 %v5835_v14, %v7657_v23  ;;  %v5837_v10 = vadd.f32 %v2316_v5, %v7513_v50  ;;  %v2318_v39 = vpop.f32.mrb[23].mxu0  ;;  %v2795_v14 = vmax.f32 %v2683_v29, 0.0 }
 0x3bf   :  { %v2686_v11 = vadd.f32 %v5836_v16, %v7664_v63  ;;  %v5838_v28 = vadd.f32 %v2318_v39, %v7515_v51 }
 0x3c0   :  { %v2797_v26 = vmax.f32 %v2685_v15, 0.0  ;;  %v2687_v3 = vadd.f32 %v5837_v10, %v7657_v23  ;;  %3316 = vmatpush1.bf16.msra.mxu1 %v6581_v7  ;;  %v7772_v15 = vpop.f32.mrb[88].mxu1 }
 0x3c1   :  { %v2798_v22 = vmax.f32 %v2686_v11, 0.0  ;;  %v2688_v50 = vadd.f32 %v5838_v28, %v7664_v63  ;;  %3317 = vmatprep.subr.bf16.mxu1 %v6586_v13  ;;  %v6587_v13 = vld [vmem:[%s8487_s3 + $0x30] ss:$8 sps:$4 sm:$0xff]   ;;  %v7778_v11 = vpop.f32.mrb[89].mxu1 }
 0x3c2   :  { %v2897_v51 = vmax.f32 %v2793_v34, %v2797_v26  ;;  %v2799_v35 = vmax.f32 %v2687_v3, 0.0  ;;  %v6592_v26 = vld [vmem:[%s8487_s3 + $0x44] ss:$8 sps:$4 sm:$0xff]   ;;  %v7784_v3 = vpop.f32.mrb[90].mxu1 }
 0x3c3   :  { %v2898_v16 = vmax.f32 %v2794_v18, %v2798_v22  ;;  %v2800_v5 = vmax.f32 %v2688_v50, 0.0  ;;  %v2322_v7 = vpop.f32.mrb[24].mxu0  ;;  %v7787_v18 = vpop.f32.mrb[91].mxu1 }
 0x3c4   :  { %v2899_v10 = vmax.f32 %v2795_v14, %v2799_v35  ;;  %v5839_v9 = vadd.f32 %v2322_v7, %v7519_v52  ;;  %v2324_v39 = vpop.f32.mrb[25].mxu0  ;;  %3318 = vmatpush1.bf16.msra.mxu1 %v6584_v37  ;;  %v6595_v14 = vld [vmem:[%s8487_s3 + $0x54] ss:$8 sps:$4 sm:$0xff]  }
 0x3c5   :  { %v2900_v29 = vmax.f32 %v2796_v61, %v2800_v5  ;;  %v5840_v28 = vadd.f32 %v2324_v39, %v7522_v53  ;;  %v2326_v4 = vpop.f32.mrb[26].mxu0  ;;  %v2949_v34 = vmax.f32 %v2897_v51, %v2898_v16  ;;  %3319 = vmatprep.subr.bf16.mxu1 %v6589_v21  ;;  %v6590_v53 = vld [vmem:[%s8487_s3 + $0x40] ss:$8 sps:$4 sm:$0xff]   ;;  %v6593_v61 = vld [vmem:[%s8487_s3 + $0x50] ss:$8 sps:$4 sm:$0xff]   ;;  %v7805_v16 = vpop.f32.mrb[92].mxu1 }
 0x3c6   :  { %v5841_v52 = vadd.f32 %v2326_v4, %v7524_v45  ;;  %v2328_v37 = vpop.f32.mrb[27].mxu0  ;;  %v2689_v45 = vadd.f32 %v5839_v9, %v7657_v23  ;;  %v7812_v9 = vpop.f32.mrb[93].mxu1 }
 0x3c7   :  { %v5842_v22 = vadd.f32 %v2328_v37, %v7526_v54  ;;  %v2950_v50 = vmax.f32 %v2899_v10, %v2900_v29  ;;  %v2690_v5 = vadd.f32 %v5840_v28, %v7664_v63 }
 0x3c8   :  { %3320 = vmatpush1.bf16.msra.mxu1 %v6587_v13  ;;  %v2691_v39 = vadd.f32 %v5841_v52, %v7657_v23 }
 0x3c9   :  { %v7793_v21 = vpack.c.bf16 %v2950_v50, %v2949_v34  ;;  %3321 = vmatprep.subr.bf16.mxu1 %v6592_v26  ;;  %v7817_v34 = vpop.f32.mrb[94].mxu1  ;;  %v2692_v28 = vadd.f32 %v5842_v22, %v7664_v63  ;;  %v2801_v50 = vmax.f32 %v2689_v45, 0.0  ;;  %v2802_v52 = vmax.f32 %v2690_v5, 0.0 }
 0x3ca   :  { %v7822_v37 = vpop.f32.mrb[95].mxu1  ;;  %v2803_v22 = vmax.f32 %v2691_v39, 0.0 }
 0x3cb   :  { %8543 = vst [vmem:[#allocation38_spill] sm:$0xff] %v7793_v21  ;;  %v2332_v51 = vpop.f32.mrb[28].mxu0  ;;  %3143 = vmatmul.mubr.bf16.gmra.mrb[116].mxu1 %v7793_v21 }
 0x3cc   :  { %v5843_v54 = vadd.f32 %v2332_v51, %v7530_v55  ;;  %v2334_v35 = vpop.f32.mrb[29].mxu0  ;;  %3152 = vmatprep.mubr.bf16.mxu1 %v8542_v43  ;;  %3322 = vmatpush1.bf16.msra.mxu1 %v6590_v53  ;;  %v6598_v55 = vld [vmem:[%s8487_s3 + $0x64] ss:$8 sps:$4 sm:$0xff]  }
 0x3cd   :  { %v5844_v7 = vadd.f32 %v2334_v35, %v7533_v19  ;;  %v2336_v10 = vpop.f32.mrb[30].mxu0  ;;  %3323 = vmatprep.subr.bf16.mxu1 %v6595_v14 }
 0x3ce   :  { %v2693_v13 = vadd.f32 %v5843_v54, %v7657_v23  ;;  %v5845_v29 = vadd.f32 %v2336_v10, %v7535_v46  ;;  %v2338_v4 = vpop.f32.mrb[31].mxu0  ;;  %v6596_v46 = vld [vmem:[%s8487_s3 + $0x60] ss:$8 sps:$4 sm:$0xff]  }
 0x3cf   :  { %v2694_v19 = vadd.f32 %v5844_v7, %v7664_v63  ;;  %v5846_v26 = vadd.f32 %v2338_v4, %v7537_v56  ;;  %v6601_v56 = vld [vmem:[%s8487_s3 + $0x74] ss:$8 sps:$4 sm:$0xff]   ;;  %v2804_v7 = vmax.f32 %v2692_v28, 0.0 }
 0x3d0   :  { %v2805_v53 = vmax.f32 %v2693_v13, 0.0  ;;  %v2695_v14 = vadd.f32 %v5845_v29, %v7657_v23  ;;  %3324 = vmatpush1.bf16.msra.mxu1 %v6593_v61  ;;  %v7832_v29 = vpop.f32.mrb[96].mxu1 }
 0x3d1   :  { %v2806_v51 = vmax.f32 %v2694_v19, 0.0  ;;  %v2696_v54 = vadd.f32 %v5846_v26, %v7664_v63  ;;  %3325 = vmatprep.subr.bf16.mxu1 %v6598_v55  ;;  %v6599_v55 = vld [vmem:[%s8487_s3 + $0x70] ss:$8 sps:$4 sm:$0xff]   ;;  %v7838_v26 = vpop.f32.mrb[97].mxu1 }
 0x3d2   :  { %v2901_v35 = vmax.f32 %v2801_v50, %v2805_v53  ;;  %v2807_v45 = vmax.f32 %v2695_v14, 0.0  ;;  %v7841_v14 = vpop.f32.mrb[98].mxu1 }
 0x3d3   :  { %v2902_v10 = vmax.f32 %v2802_v52, %v2806_v51  ;;  %v2808_v13 = vmax.f32 %v2696_v54, 0.0  ;;  %v2342_v61 = vpop.f32.mrb[32].mxu0 }
 0x3d4   :  { %v2903_v4 = vmax.f32 %v2803_v22, %v2807_v45  ;;  %v5847_v5 = vadd.f32 %v2342_v61, %v7541_v57  ;;  %v2344_v19 = vpop.f32.mrb[33].mxu0  ;;  %3326 = vmatpush1.bf16.msra.mxu1 %v6596_v46  ;;  %v7844_v57 = vpop.f32.mrb[99].mxu1  ;;  %v6604_v22 = vld [vmem:[%s8487_s3 + $0x104] ss:$8 sps:$4 sm:$0xff]  }
 0x3d5   :  { %v2951_v39 = vmax.f32 %v2901_v35, %v2902_v10  ;;  %v2904_v50 = vmax.f32 %v2804_v7, %v2808_v13  ;;  %v5848_v28 = vadd.f32 %v2344_v19, %v7544_v58  ;;  %v2346_v53 = vpop.f32.mrb[34].mxu0  ;;  %3327 = vmatprep.subr.bf16.mxu1 %v6601_v56  ;;  %v7853_v56 = vpop.f32.mrb[100].mxu1 }
 0x3d6   :  { %v5849_v52 = vadd.f32 %v2346_v53, %v7546_v47  ;;  %v2348_v51 = vpop.f32.mrb[35].mxu0  ;;  %v2697_v47 = vadd.f32 %v5847_v5, %v7657_v23 }
 0x3d7   :  { %v2952_v46 = vmax.f32 %v2903_v4, %v2904_v50  ;;  %v5850_v54 = vadd.f32 %v2348_v51, %v7548_v24  ;;  %v7858_v24 = vpop.f32.mrb[101].mxu1  ;;  %v2698_v10 = vadd.f32 %v5848_v28, %v7664_v63 }
 0x3d8   :  { %3328 = vmatpush1.bf16.msra.mxu1 %v6599_v55  ;;  %v7862_v4 = vpop.f32.mrb[102].mxu1  ;;  %v2699_v19 = vadd.f32 %v5849_v52, %v7657_v23  ;;  %v2809_v51 = vmax.f32 %v2697_v47, 0.0 }
 0x3d9   :  { %v7850_v35 = vpack.c.bf16 %v2952_v46, %v2951_v39  ;;  %3543 = vmatprep.subr.bf16.mxu1 %v6604_v22  ;;  %v2700_v50 = vadd.f32 %v5850_v54, %v7664_v63  ;;  %v2810_v22 = vmax.f32 %v2698_v10, 0.0 }
 0x3db   :  { %8544 = vst [vmem:[#allocation39_spill] sm:$0xff] %v7850_v35  ;;  %v2352_v58 = vpop.f32.mrb[36].mxu0  ;;  %3153 = vmatmul.mubr.bf16.gmra.mrb[120].mxu1 %v7850_v35 }
 0x3dc   :  { %v5851_v45 = vadd.f32 %v2352_v58, %v7552_v59  ;;  %v2354_v7 = vpop.f32.mrb[37].mxu0  ;;  %3162 = vmatprep.mubr.bf16.mxu1 %v8542_v43  ;;  %v7867_v59 = vpop.f32.mrb[103].mxu1 }
 0x3dd   :  { %v5852_v13 = vadd.f32 %v2354_v7, %v7555_v60  ;;  %v2356_v61 = vpop.f32.mrb[38].mxu0  ;;  %8545 = vst [vmem:[#allocation40_spill] sm:$0xff] %v7867_v59  ;;  %v7874_v54 = vpop.f32.mrb[104].mxu1 }
 0x3de   :  { %v2701_v55 = vadd.f32 %v5851_v45, %v7657_v23  ;;  %v5853_v5 = vadd.f32 %v2356_v61, %v7557_v48  ;;  %v2358_v39 = vpop.f32.mrb[39].mxu0  ;;  %v2811_v45 = vmax.f32 %v2699_v19, 0.0  ;;  %v2812_v61 = vmax.f32 %v2700_v50, 0.0 }
 0x3df   :  { %v2702_v53 = vadd.f32 %v5852_v13, %v7664_v63  ;;  %v5854_v28 = vadd.f32 %v2358_v39, %v7559_v36 }
 0x3e0   :  { %v2813_v60 = vmax.f32 %v2701_v55, 0.0  ;;  %v2703_v46 = vadd.f32 %v5853_v5, %v7657_v23  ;;  %v7877_v55 = vpop.f32.mrb[105].mxu1 }
 0x3e1   :  { %v2814_v58 = vmax.f32 %v2702_v53, 0.0  ;;  %v2704_v52 = vadd.f32 %v5854_v28, %v7664_v63  ;;  %v7880_v19 = vpop.f32.mrb[106].mxu1 }
 0x3e2   :  { %v2905_v7 = vmax.f32 %v2809_v51, %v2813_v60  ;;  %v2815_v48 = vmax.f32 %v2703_v46, 0.0  ;;  %v7883_v51 = vpop.f32.mrb[107].mxu1 }
 0x3e3   :  { %v2906_v35 = vmax.f32 %v2810_v22, %v2814_v58  ;;  %v2816_v21 = vmax.f32 %v2704_v52, 0.0  ;;  %v2362_v59 = vpop.f32.mrb[40].mxu0  ;;  %8546 = vst [vmem:[#allocation41_spill] sm:$0xff] %v7883_v51 }
 0x3e4   :  { %v2907_v13 = vmax.f32 %v2811_v45, %v2815_v48  ;;  %v5855_v36 = vadd.f32 %v2362_v59, %v7563_v38  ;;  %v2364_v47 = vpop.f32.mrb[41].mxu0  ;;  %v7892_v59 = vpop.f32.mrb[108].mxu1  ;;  %v8550_v48 = vld [vmem:[#allocation8_spill] sm:$0xff] }
 0x3e5   :  { %v2953_v5 = vmax.f32 %v2905_v7, %v2906_v35  ;;  %v2908_v10 = vmax.f32 %v2812_v61, %v2816_v21  ;;  %v5856_v39 = vadd.f32 %v2364_v47, %v7566_v40  ;;  %v2366_v53 = vpop.f32.mrb[42].mxu0  ;;  %8548 = vst [vmem:[#allocation43_spill] sm:$0xff] %v7892_v59 }
 0x3e6   :  { %v5857_v50 = vadd.f32 %v2366_v53, %v7568_v49  ;;  %v2368_v28 = vpop.f32.mrb[43].mxu0  ;;  %v2705_v21 = vadd.f32 %v5855_v36, %v7657_v23 }
 0x3e7   :  { %v2954_v60 = vmax.f32 %v2907_v13, %v2908_v10  ;;  %v5858_v46 = vadd.f32 %v2368_v28, %v7570_v41  ;;  %v2706_v49 = vadd.f32 %v5856_v39, %v7664_v63  ;;  %v7896_v41 = vpop.f32.mrb[109].mxu1 }
 0x3e8   :  { %8549 = vst [vmem:[#allocation44_spill] sm:$0xff] %v7896_v41  ;;  %v2707_v45 = vadd.f32 %v5857_v50, %v7657_v23  ;;  %v8554_v41 = vld [vmem:[#allocation10_spill] sm:$0xff] }
 0x3e9   :  { %v7886_v22 = vpack.c.bf16 %v2954_v60, %v2953_v5  ;;  %v2708_v36 = vadd.f32 %v5858_v46, %v7664_v63  ;;  %v8552_v5 = vld [vmem:[#allocation9_spill] sm:$0xff]  ;;  %v2818_v50 = vmax.f32 %v2706_v49, 0.0  ;;  %v8556_v49 = vld [vmem:[#allocation12_spill] sm:$0xff] }
 0x3eb   :  { %8547 = vst [vmem:[#allocation42_spill] sm:$0xff] %v7886_v22  ;;  %v2372_v38 = vpop.f32.mrb[44].mxu0  ;;  %3163 = vmatmul.mubr.bf16.gmra.mrb[124].mxu1 %v7886_v22 }
 0x3ec   :  { %v5859_v40 = vadd.f32 %v2372_v38, %v7574_v6  ;;  %v2374_v35 = vpop.f32.mrb[45].mxu0  ;;  %3172 = vmatprep.mubr.bf16.mxu1 %v8542_v43  ;;  %v7901_v6 = vpop.f32.mrb[110].mxu1 }
 0x3ed   :  { %v5860_v58 = vadd.f32 %v2374_v35, %v7577_v8  ;;  %v2376_v52 = vpop.f32.mrb[46].mxu0  ;;  %8551 = vst [vmem:[#allocation8_spill] sm:$0xff] %v7901_v6  ;;  %v7906_v39 = vpop.f32.mrb[111].mxu1  ;;  %v2817_v8 = vmax.f32 %v2705_v21, 0.0 }
 0x3ee   :  { %v2709_v7 = vadd.f32 %v5859_v40, %v7657_v23  ;;  %v5861_v61 = vadd.f32 %v2376_v52, %v8550_v48  ;;  %v2378_v13 = vpop.f32.mrb[47].mxu0  ;;  %8553 = vst [vmem:[#allocation9_spill] sm:$0xff] %v7906_v39  ;;  %v2819_v40 = vmax.f32 %v2707_v45, 0.0  ;;  %v2820_v48 = vmax.f32 %v2708_v36, 0.0  ;;  %v8557_v45 = vld [vmem:[#allocation13_spill] sm:$0xff] }
 0x3ef   :  { %v2710_v47 = vadd.f32 %v5860_v58, %v7664_v63  ;;  %v5862_v10 = vadd.f32 %v2378_v13, %v8552_v5 }
 0x3f0   :  { %v2821_v53 = vmax.f32 %v2709_v7, 0.0  ;;  %v2711_v28 = vadd.f32 %v5861_v61, %v7657_v23  ;;  %v8555_v7 = vld [vmem:[#allocation11_spill] sm:$0xff] }
 0x3f1   :  { %v2822_v60 = vmax.f32 %v2710_v47, 0.0  ;;  %v2712_v38 = vadd.f32 %v5862_v10, %v7664_v63 }
 0x3f2   :  { %v2909_v35 = vmax.f32 %v2817_v8, %v2821_v53  ;;  %v2823_v52 = vmax.f32 %v2711_v28, 0.0 }
 0x3f3   :  { %v2910_v22 = vmax.f32 %v2818_v50, %v2822_v60  ;;  %v2824_v46 = vmax.f32 %v2712_v38, 0.0  ;;  %v2382_v6 = vpop.f32.mrb[48].mxu0  ;;  %v8560_v60 = vld [vmem:[#allocation15_spill] sm:$0xff] }
 0x3f4   :  { %v2911_v58 = vmax.f32 %v2819_v40, %v2823_v52  ;;  %v5863_v13 = vadd.f32 %v2382_v6, %v8554_v41  ;;  %v2384_v5 = vpop.f32.mrb[49].mxu0  ;;  %v8559_v41 = vld [vmem:[#allocation14_spill] sm:$0xff] }
 0x3f5   :  { %v2955_v39 = vmax.f32 %v2909_v35, %v2910_v22  ;;  %v2912_v21 = vmax.f32 %v2820_v48, %v2824_v46  ;;  %v5864_v59 = vadd.f32 %v2384_v5, %v8555_v7  ;;  %v2386_v61 = vpop.f32.mrb[50].mxu0 }
 0x3f6   :  { %v5865_v47 = vadd.f32 %v2386_v61, %v8556_v49  ;;  %v2388_v51 = vpop.f32.mrb[51].mxu0  ;;  %v2713_v28 = vadd.f32 %v5863_v13, %v7657_v23  ;;  %v8562_v13 = vld [vmem:[#allocation17_spill] sm:$0xff] }
 0x3f7   :  { %v2956_v10 = vmax.f32 %v2911_v58, %v2912_v21  ;;  %v5866_v8 = vadd.f32 %v2388_v51, %v8557_v45  ;;  %v2714_v50 = vadd.f32 %v5864_v59, %v7664_v63 }
 0x3f8   :  { %v2715_v35 = vadd.f32 %v5865_v47, %v7657_v23  ;;  %v2825_v21 = vmax.f32 %v2713_v28, 0.0 }
 0x3f9   :  { %v7914_v53 = vpack.c.bf16 %v2956_v10, %v2955_v39  ;;  %v8561_v39 = vld [vmem:[#allocation16_spill] sm:$0xff]  ;;  %v2716_v46 = vadd.f32 %v5866_v8, %v7664_v63  ;;  %v2826_v61 = vmax.f32 %v2714_v50, 0.0 }
 0x3fa   :  { %v2827_v47 = vmax.f32 %v2715_v35, 0.0  ;;  %v8565_v50 = vld [vmem:[#allocation20_spill] sm:$0xff]  ;;  %v8566_v35 = vld [vmem:[#allocation21_spill] sm:$0xff] }
 0x3fb   :  { %8558 = vst [vmem:[#allocation10_spill] sm:$0xff] %v7914_v53  ;;  %v2392_v36 = vpop.f32.mrb[52].mxu0  ;;  %3173 = vmatmul.mubr.bf16.gmra.mrb[128].mxu1 %v7914_v53 }
 0x3fc   :  { %v5867_v6 = vadd.f32 %v2392_v36, %v8559_v41  ;;  %v2394_v22 = vpop.f32.mrb[53].mxu0  ;;  %3182 = vmatprep.mubr.bf16.mxu1 %v8542_v43  ;;  %v2828_v41 = vmax.f32 %v2716_v46, 0.0 }
 0x3fd   :  { %v5868_v38 = vadd.f32 %v2394_v22, %v8560_v60  ;;  %v2396_v40 = vpop.f32.mrb[54].mxu0 }
 0x3fe   :  { %v2717_v51 = vadd.f32 %v5867_v6, %v7657_v23  ;;  %v5869_v52 = vadd.f32 %v2396_v40, %v8561_v39  ;;  %v2398_v48 = vpop.f32.mrb[55].mxu0  ;;  %v8563_v40 = vld [vmem:[#allocation18_spill] sm:$0xff] }
 0x3ff   :  { %v2718_v58 = vadd.f32 %v5868_v38, %v7664_v63  ;;  %v5870_v5 = vadd.f32 %v2398_v48, %v8562_v13 }
 0x400   :  { %v2829_v7 = vmax.f32 %v2717_v51, 0.0  ;;  %v2719_v59 = vadd.f32 %v5869_v52, %v7657_v23  ;;  %v8564_v51 = vld [vmem:[#allocation19_spill] sm:$0xff] }
 0x401   :  { %v2830_v49 = vmax.f32 %v2718_v58, 0.0  ;;  %v2720_v10 = vadd.f32 %v5870_v5, %v7664_v63 }
 0x402   :  { %v2913_v45 = vmax.f32 %v2825_v21, %v2829_v7  ;;  %v2831_v36 = vmax.f32 %v2719_v59, 0.0 }
 0x403   :  { %v2914_v6 = vmax.f32 %v2826_v61, %v2830_v49  ;;  %v2832_v22 = vmax.f32 %v2720_v10, 0.0  ;;  %v2402_v60 = vpop.f32.mrb[56].mxu0  ;;  %v8568_v61 = vld [vmem:[#allocation22_spill] sm:$0xff] }
 0x404   :  { %v2915_v8 = vmax.f32 %v2827_v47, %v2831_v36  ;;  %v5871_v38 = vadd.f32 %v2402_v60, %v8563_v40  ;;  %v2404_v39 = vpop.f32.mrb[57].mxu0 }
 0x405   :  { %v2957_v48 = vmax.f32 %v2913_v45, %v2914_v6  ;;  %v2916_v28 = vmax.f32 %v2828_v41, %v2832_v22  ;;  %v5872_v13 = vadd.f32 %v2404_v39, %v8564_v51  ;;  %v2406_v52 = vpop.f32.mrb[58].mxu0  ;;  %v8569_v45 = vld [vmem:[#allocation23_spill] sm:$0xff]  ;;  %v8570_v22 = vld [vmem:[#allocation24_spill] sm:$0xff]  ;;  %v8571_v39 = vld [vmem:[#allocation25_spill] sm:$0xff] }
 0x406   :  { %v5873_v58 = vadd.f32 %v2406_v52, %v8565_v50  ;;  %v2408_v53 = vpop.f32.mrb[59].mxu0  ;;  %v2721_v59 = vadd.f32 %v5871_v38, %v7657_v23 }
 0x407   :  { %v2958_v5 = vmax.f32 %v2915_v8, %v2916_v28  ;;  %v5874_v21 = vadd.f32 %v2408_v53, %v8566_v35  ;;  %v2722_v47 = vadd.f32 %v5872_v13, %v7664_v63 }
 0x408   :  { %v2723_v6 = vadd.f32 %v5873_v58, %v7657_v23  ;;  %v2833_v28 = vmax.f32 %v2721_v59, 0.0 }
 0x409   :  { %v7934_v7 = vpack.c.bf16 %v2958_v5, %v2957_v48  ;;  %v2724_v40 = vadd.f32 %v5874_v21, %v7664_v63  ;;  %v2834_v52 = vmax.f32 %v2722_v47, 0.0  ;;  %v8574_v47 = vld [vmem:[#allocation29_spill] sm:$0xff] }
 0x40a   :  { %v2835_v58 = vmax.f32 %v2723_v6, 0.0  ;;  %v8575_v6 = vld [vmem:[#allocation30_spill] sm:$0xff] }
 0x40b   :  { %8567 = vst [vmem:[#allocation11_spill] sm:$0xff] %v7934_v7  ;;  %v2412_v46 = vpop.f32.mrb[60].mxu0  ;;  %3183 = vmatmul.mubr.bf16.gmra.mrb[132].mxu1 %v7934_v7 }
 0x40c   :  { %v5875_v49 = vadd.f32 %v2412_v46, %v8568_v61  ;;  %v2414_v10 = vpop.f32.mrb[61].mxu0  ;;  %3192 = vmatprep.mubr.bf16.mxu1 %v8542_v43  ;;  %v2836_v61 = vmax.f32 %v2724_v40, 0.0 }
 0x40d   :  { %v5876_v36 = vadd.f32 %v2414_v10, %v8569_v45  ;;  %v2416_v41 = vpop.f32.mrb[62].mxu0 }
 0x40e   :  { %v2725_v53 = vadd.f32 %v5875_v49, %v7657_v23  ;;  %v5877_v60 = vadd.f32 %v2416_v41, %v8570_v22  ;;  %v2418_v8 = vpop.f32.mrb[63].mxu0  ;;  %v8572_v41 = vld [vmem:[#allocation27_spill] sm:$0xff] }
 0x40f   :  { %v2726_v38 = vadd.f32 %v5876_v36, %v7664_v63  ;;  %v5878_v48 = vadd.f32 %v2418_v8, %v8571_v39 }
 0x410   :  { %v2837_v51 = vmax.f32 %v2725_v53, 0.0  ;;  %v2727_v13 = vadd.f32 %v5877_v60, %v7657_v23  ;;  %v8573_v53 = vld [vmem:[#allocation28_spill] sm:$0xff] }
 0x411   :  { %v2838_v50 = vmax.f32 %v2726_v38, 0.0  ;;  %v2728_v5 = vadd.f32 %v5878_v48, %v7664_v63 }
 0x412   :  { %v2917_v35 = vmax.f32 %v2833_v28, %v2837_v51  ;;  %v2839_v46 = vmax.f32 %v2727_v13, 0.0 }
 0x413   :  { %v2918_v49 = vmax.f32 %v2834_v52, %v2838_v50  ;;  %v2840_v10 = vmax.f32 %v2728_v5, 0.0  ;;  %v2422_v45 = vpop.f32.mrb[64].mxu0  ;;  %v8576_v52 = vld [vmem:[#allocation31_spill] sm:$0xff] }
 0x414   :  { %v2919_v21 = vmax.f32 %v2835_v58, %v2839_v46  ;;  %v5879_v36 = vadd.f32 %v2422_v45, %v8572_v41  ;;  %v2424_v22 = vpop.f32.mrb[65].mxu0 }
 0x415   :  { %v2959_v8 = vmax.f32 %v2917_v35, %v2918_v49  ;;  %v2920_v59 = vmax.f32 %v2836_v61, %v2840_v10  ;;  %v5880_v39 = vadd.f32 %v2424_v22, %v8573_v53  ;;  %v2426_v60 = vpop.f32.mrb[66].mxu0  ;;  %v8577_v35 = vld [vmem:[#allocation32_spill] sm:$0xff]  ;;  %v8578_v10 = vld [vmem:[#allocation33_spill] sm:$0xff]  ;;  %v8579_v22 = vld [vmem:[#allocation34_spill] sm:$0xff] }
 0x416   :  { %v5881_v38 = vadd.f32 %v2426_v60, %v8574_v47  ;;  %v2428_v7 = vpop.f32.mrb[67].mxu0  ;;  %v2729_v13 = vadd.f32 %v5879_v36, %v7657_v23 }
 0x417   :  { %v2960_v48 = vmax.f32 %v2919_v21, %v2920_v59  ;;  %v5882_v28 = vadd.f32 %v2428_v7, %v8575_v6  ;;  %v2730_v58 = vadd.f32 %v5880_v39, %v7664_v63 }
 0x418   :  { %v2731_v49 = vadd.f32 %v5881_v38, %v7657_v23  ;;  %v2841_v59 = vmax.f32 %v2729_v13, 0.0 }
 0x419   :  { %v7954_v51 = vpack.c.bf16 %v2960_v48, %v2959_v8  ;;  %v2732_v41 = vadd.f32 %v5882_v28, %v7664_v63  ;;  %v2842_v60 = vmax.f32 %v2730_v58, 0.0 }
 0x41a   :  { %v2843_v38 = vmax.f32 %v2731_v49, 0.0 }
 0x41b   :  { %v2432_v40 = vpop.f32.mrb[68].mxu0  ;;  %3193 = vmatmul.mubr.bf16.gmra.mrb[136].mxu1 %v7954_v51 }
 0x41c   :  { %v5883_v50 = vadd.f32 %v2432_v40, %v8576_v52  ;;  %v2434_v5 = vpop.f32.mrb[69].mxu0  ;;  %3202 = vmatprep.mubr.bf16.mxu1 %v8542_v43  ;;  %v2844_v52 = vmax.f32 %v2732_v41, 0.0 }
 0x41d   :  { %v5884_v46 = vadd.f32 %v2434_v5, %v8577_v35  ;;  %v2436_v61 = vpop.f32.mrb[70].mxu0 }
 0x41e   :  { %v2733_v7 = vadd.f32 %v5883_v50, %v7657_v23  ;;  %v5885_v45 = vadd.f32 %v2436_v61, %v8578_v10  ;;  %v2438_v21 = vpop.f32.mrb[71].mxu0  ;;  %v8580_v61 = vld [vmem:[#allocation35_spill] sm:$0xff] }
 0x41f   :  { %v2734_v36 = vadd.f32 %v5884_v46, %v7664_v63  ;;  %v5886_v8 = vadd.f32 %v2438_v21, %v8579_v22 }
 0x420   :  { %v2845_v53 = vmax.f32 %v2733_v7, 0.0  ;;  %v2735_v39 = vadd.f32 %v5885_v45, %v7657_v23  ;;  %v8581_v7 = vld [vmem:[#allocation36_spill] sm:$0xff] }
 0x421   :  { %v2846_v47 = vmax.f32 %v2734_v36, 0.0  ;;  %v2736_v48 = vadd.f32 %v5886_v8, %v7664_v63 }
 0x422   :  { %v2921_v6 = vmax.f32 %v2841_v59, %v2845_v53  ;;  %v2847_v40 = vmax.f32 %v2735_v39, 0.0 }
 0x423   :  { %v2922_v50 = vmax.f32 %v2842_v60, %v2846_v47  ;;  %v2848_v5 = vmax.f32 %v2736_v48, 0.0  ;;  %v2442_v35 = vpop.f32.mrb[72].mxu0 }
 0x424   :  { %v2923_v28 = vmax.f32 %v2843_v38, %v2847_v40  ;;  %v5887_v46 = vadd.f32 %v2442_v35, %v8580_v61  ;;  %v2444_v10 = vpop.f32.mrb[73].mxu0 }
 0x425   :  { %v2961_v21 = vmax.f32 %v2921_v6, %v2922_v50  ;;  %v2924_v13 = vmax.f32 %v2844_v52, %v2848_v5  ;;  %v5888_v22 = vadd.f32 %v2444_v10, %v8581_v7  ;;  %v2446_v45 = vpop.f32.mrb[74].mxu0 }
 0x426   :  { %v5889_v58 = vadd.f32 %v2446_v45, %v7688_v27  ;;  %v2448_v36 = vpop.f32.mrb[75].mxu0  ;;  %v2737_v53 = vadd.f32 %v5887_v46, %v7657_v23 }
 0x427   :  { %v2962_v8 = vmax.f32 %v2923_v28, %v2924_v13  ;;  %v5890_v49 = vadd.f32 %v2448_v36, %v7690_v1  ;;  %v2738_v47 = vadd.f32 %v5888_v22, %v7664_v63 }
 0x428   :  { %v2739_v38 = vadd.f32 %v5889_v58, %v7657_v23  ;;  %v2849_v5 = vmax.f32 %v2737_v53, 0.0 }
 0x429   :  { %v7974_v59 = vpack.c.bf16 %v2962_v8, %v2961_v21  ;;  %v2740_v52 = vadd.f32 %v5890_v49, %v7664_v63  ;;  %v2850_v61 = vmax.f32 %v2738_v47, 0.0 }
 0x42a   :  { %v2851_v10 = vmax.f32 %v2739_v38, 0.0 }
 0x42b   :  { %v2452_v41 = vpop.f32.mrb[76].mxu0  ;;  %3203 = vmatmul.mubr.bf16.gmra.mrb[140].mxu1 %v7974_v59  ;;  %v2852_v7 = vmax.f32 %v2740_v52, 0.0 }
 0x42c   :  { %v5891_v39 = vadd.f32 %v2452_v41, %v7696_v0  ;;  %v2454_v60 = vpop.f32.mrb[77].mxu0  ;;  %3212 = vmatprep.mubr.bf16.mxu1 %v8542_v43 }
 0x42d   :  { %v5892_v27 = vadd.f32 %v2454_v60, %v7700_v17  ;;  %v2456_v48 = vpop.f32.mrb[78].mxu0 }
 0x42e   :  { %v2741_v1 = vadd.f32 %v5891_v39, %v7657_v23  ;;  %v5893_v6 = vadd.f32 %v2456_v48, %v7702_v42  ;;  %v2458_v40 = vpop.f32.mrb[79].mxu0 }
 0x42f   :  { %v2742_v50 = vadd.f32 %v5892_v27, %v7664_v63  ;;  %v5894_v0 = vadd.f32 %v2458_v40, %v7704_v62 }
 0x430   :  { %v2853_v35 = vmax.f32 %v2741_v1, 0.0  ;;  %v2743_v28 = vadd.f32 %v5893_v6, %v7657_v23 }
 0x431   :  { %v2854_v17 = vmax.f32 %v2742_v50, 0.0  ;;  %v2744_v46 = vadd.f32 %v5894_v0, %v7664_v63 }
 0x432   :  { %v2925_v21 = vmax.f32 %v2849_v5, %v2853_v35  ;;  %v2855_v13 = vmax.f32 %v2743_v28, 0.0 }
 0x433   :  { %v2926_v42 = vmax.f32 %v2850_v61, %v2854_v17  ;;  %v2856_v22 = vmax.f32 %v2744_v46, 0.0  ;;  %v2462_v45 = vpop.f32.mrb[80].mxu0 }
 0x434   :  { %v2927_v58 = vmax.f32 %v2851_v10, %v2855_v13  ;;  %v5895_v36 = vadd.f32 %v2462_v45, %v7717_v33  ;;  %v2464_v8 = vpop.f32.mrb[81].mxu0 }
 0x435   :  { %v2963_v62 = vmax.f32 %v2925_v21, %v2926_v42  ;;  %v2928_v49 = vmax.f32 %v2852_v7, %v2856_v22  ;;  %v5896_v41 = vadd.f32 %v2464_v8, %v7720_v31  ;;  %v2466_v53 = vpop.f32.mrb[82].mxu0 }
 0x436   :  { %v5897_v39 = vadd.f32 %v2466_v53, %v7722_v30  ;;  %v2468_v60 = vpop.f32.mrb[83].mxu0  ;;  %v2745_v1 = vadd.f32 %v5895_v36, %v7657_v23 }
 0x437   :  { %v2964_v47 = vmax.f32 %v2927_v58, %v2928_v49  ;;  %v5898_v27 = vadd.f32 %v2468_v60, %v7724_v32  ;;  %v2746_v31 = vadd.f32 %v5896_v41, %v7664_v63 }
 0x438   :  { %v2747_v52 = vadd.f32 %v5897_v39, %v7657_v23  ;;  %v2857_v28 = vmax.f32 %v2745_v1, 0.0 }
 0x439   :  { %v7994_v48 = vpack.c.bf16 %v2964_v47, %v2963_v62  ;;  %v2748_v5 = vadd.f32 %v5898_v27, %v7664_v63  ;;  %v2858_v46 = vmax.f32 %v2746_v31, 0.0 }
 0x43a   :  { %v2859_v21 = vmax.f32 %v2747_v52, 0.0 }
 0x43b   :  { %v2472_v38 = vpop.f32.mrb[84].mxu0  ;;  %3213 = vmatmul.mubr.bf16.gmra.mrb[144].mxu1 %v7994_v48  ;;  %v2860_v42 = vmax.f32 %v2748_v5, 0.0 }
 0x43c   :  { %v5899_v33 = vadd.f32 %v2472_v38, %v7733_v12  ;;  %v2474_v6 = vpop.f32.mrb[85].mxu0  ;;  %3222 = vmatprep.mubr.bf16.mxu1 %v8542_v43 }
 0x43d   :  { %v5900_v30 = vadd.f32 %v2474_v6, %v7740_v20  ;;  %v2476_v40 = vpop.f32.mrb[86].mxu0 }
 0x43e   :  { %v2749_v32 = vadd.f32 %v5899_v33, %v7657_v23  ;;  %v5901_v50 = vadd.f32 %v2476_v40, %v7742_v44  ;;  %v2478_v0 = vpop.f32.mrb[87].mxu0 }
 0x43f   :  { %v2750_v35 = vadd.f32 %v5900_v30, %v7664_v63  ;;  %v5902_v12 = vadd.f32 %v2478_v0, %v7745_v25 }
 0x440   :  { %v2861_v61 = vmax.f32 %v2749_v32, 0.0  ;;  %v2751_v17 = vadd.f32 %v5901_v50, %v7657_v23 }
 0x441   :  { %v2862_v20 = vmax.f32 %v2750_v35, 0.0  ;;  %v2752_v10 = vadd.f32 %v5902_v12, %v7664_v63 }
 0x442   :  { %v2929_v13 = vmax.f32 %v2857_v28, %v2861_v61  ;;  %v2863_v7 = vmax.f32 %v2751_v17, 0.0 }
 0x443   :  { %v2930_v44 = vmax.f32 %v2858_v46, %v2862_v20  ;;  %v2864_v22 = vmax.f32 %v2752_v10, 0.0  ;;  %v2482_v45 = vpop.f32.mrb[88].mxu0 }
 0x444   :  { %v2931_v58 = vmax.f32 %v2859_v21, %v2863_v7  ;;  %v5903_v36 = vadd.f32 %v2482_v45, %v7772_v15  ;;  %v2484_v8 = vpop.f32.mrb[89].mxu0 }
 0x445   :  { %v2965_v25 = vmax.f32 %v2929_v13, %v2930_v44  ;;  %v2932_v62 = vmax.f32 %v2860_v42, %v2864_v22  ;;  %v5904_v49 = vadd.f32 %v2484_v8, %v7778_v11  ;;  %v2486_v41 = vpop.f32.mrb[90].mxu0  ;;  %v8582_v13 = vld [vmem:[#allocation37_spill] sm:$0xff]  ;;  %v6605_v22 = vld [vmem:[%s8487_s3 + $0x110] ss:$8 sps:$4 sm:$0xff]  }
 0x446   :  { %v5905_v53 = vadd.f32 %v2486_v41, %v7784_v3  ;;  %v2488_v39 = vpop.f32.mrb[91].mxu0  ;;  %v2753_v1 = vadd.f32 %v5903_v36, %v7657_v23  ;;  %v6610_v8 = vld [vmem:[%s8487_s3 + $0x124] ss:$8 sps:$4 sm:$0xff]  }
 0x447   :  { %v2966_v60 = vmax.f32 %v2931_v58, %v2932_v62  ;;  %v5906_v47 = vadd.f32 %v2488_v39, %v7787_v18  ;;  %v2754_v11 = vadd.f32 %v5904_v49, %v7664_v63 }
 0x448   :  { %v2755_v31 = vadd.f32 %v5905_v53, %v7657_v23  ;;  %v2865_v50 = vmax.f32 %v2753_v1, 0.0  ;;  %v6608_v53 = vld [vmem:[%s8487_s3 + $0x120] ss:$8 sps:$4 sm:$0xff]  }
 0x449   :  { %v8014_v27 = vpack.c.bf16 %v2966_v60, %v2965_v25  ;;  %v2756_v52 = vadd.f32 %v5906_v47, %v7664_v63  ;;  %v2866_v35 = vmax.f32 %v2754_v11, 0.0 }
 0x44a   :  { %v2867_v61 = vmax.f32 %v2755_v31, 0.0 }
 0x44b   :  { %v2492_v38 = vpop.f32.mrb[92].mxu0  ;;  %3223 = vmatmul.mubr.bf16.gmra.mrb[148].mxu1 %v8014_v27 }
 0x44c   :  { %v5907_v15 = vadd.f32 %v2492_v38, %v7805_v16  ;;  %v2494_v33 = vpop.f32.mrb[93].mxu0  ;;  %3345 = vmatprep.mubr.bf16.mxu1 %v8542_v43  ;;  %v6611_v38 = vld [vmem:[%s8487_s3 + $0x130] ss:$8 sps:$4 sm:$0xff]  }
 0x44d   :  { %v5908_v3 = vadd.f32 %v2494_v33, %v7812_v9  ;;  %v2496_v6 = vpop.f32.mrb[94].mxu0  ;;  %v6602_v9 = vld [vmem:[%s8487_s3 + $0x100] ss:$8 sps:$4 sm:$0xff]  }
 0x44e   :  { %v2757_v18 = vadd.f32 %v5907_v15, %v7657_v23  ;;  %v5909_v30 = vadd.f32 %v2496_v6, %v7817_v34  ;;  %v2498_v40 = vpop.f32.mrb[95].mxu0  ;;  %v6607_v34 = vld [vmem:[%s8487_s3 + $0x114] ss:$8 sps:$4 sm:$0xff]  }
 0x44f   :  { %v2758_v32 = vadd.f32 %v5908_v3, %v7664_v63  ;;  %v5910_v16 = vadd.f32 %v2498_v40, %v7822_v37  ;;  %v2868_v37 = vmax.f32 %v2756_v52, 0.0 }
 0x450   :  { %v2869_v0 = vmax.f32 %v2757_v18, 0.0  ;;  %v2759_v5 = vadd.f32 %v5909_v30, %v7657_v23  ;;  %v8583_v30 = vld [vmem:[#allocation40_spill] sm:$0xff] }
 0x451   :  { %v2870_v12 = vmax.f32 %v2758_v32, 0.0  ;;  %v2760_v28 = vadd.f32 %v5910_v16, %v7664_v63  ;;  %v6614_v16 = vld [vmem:[%s8487_s3 + $0x140] ss:$8 sps:$4 sm:$0xff]  }
 0x452   :  { %v2933_v17 = vmax.f32 %v2865_v50, %v2869_v0  ;;  %v2871_v46 = vmax.f32 %v2759_v5, 0.0  ;;  %v6619_v5 = vld [vmem:[%s8487_s3 + $0x154] ss:$8 sps:$4 sm:$0xff]  }
 0x453   :  { %v2934_v20 = vmax.f32 %v2866_v35, %v2870_v12  ;;  %v2872_v10 = vmax.f32 %v2760_v28, 0.0  ;;  %v2502_v21 = vpop.f32.mrb[96].mxu0  ;;  %3346 = vmatmul.mubr.bf16.vlgmr.msra.gmra.mrb[112].mxu1 %v8582_v13 }
 0x454   :  { %v2935_v7 = vmax.f32 %v2867_v61, %v2871_v46  ;;  %v5911_v42 = vadd.f32 %v2502_v21, %v7832_v29  ;;  %v2504_v44 = vpop.f32.mrb[97].mxu0  ;;  %3544 = vmatpush1.bf16.msra.mxu1 %v6602_v9  ;;  %3355 = vmatprep.mubr.bf16.mxu1 %v8542_v43  ;;  %v8584_v46 = vld [vmem:[#allocation38_spill] sm:$0xff] }
 0x455   :  { %v2936_v45 = vmax.f32 %v2868_v37, %v2872_v10  ;;  %v5912_v58 = vadd.f32 %v2504_v44, %v7838_v26  ;;  %v2506_v36 = vpop.f32.mrb[98].mxu0  ;;  %3545 = vmatprep.subr.bf16.mxu1 %v6607_v34  ;;  %v2967_v25 = vmax.f32 %v2933_v17, %v2934_v20  ;;  %v6613_v26 = vld [vmem:[%s8487_s3 + $0x134] ss:$8 sps:$4 sm:$0xff]   ;;  %v6617_v21 = vld [vmem:[%s8487_s3 + $0x150] ss:$8 sps:$4 sm:$0xff]  }
 0x456   :  { %v5913_v29 = vadd.f32 %v2506_v36, %v7841_v14  ;;  %v2508_v62 = vpop.f32.mrb[99].mxu0  ;;  %v2761_v14 = vadd.f32 %v5911_v42, %v7657_v23  ;;  %v6622_v44 = vld [vmem:[%s8487_s3 + $0x164] ss:$8 sps:$4 sm:$0xff]  }
 0x457   :  { %v5914_v49 = vadd.f32 %v2508_v62, %v7844_v57  ;;  %v2968_v41 = vmax.f32 %v2935_v7, %v2936_v45  ;;  %v2762_v1 = vadd.f32 %v5912_v58, %v7664_v63  ;;  %v8585_v58 = vld [vmem:[#allocation41_spill] sm:$0xff] }
 0x458   :  { %3546 = vmatpush1.bf16.msra.mxu1 %v6605_v22 }
 0x459   :  { %3547 = vmatprep.subr.bf16.mxu1 %v6610_v8  ;;  %v8054_v39 = vpack.c.bf16 %v2968_v41, %v2967_v25  ;;  %v2764_v31 = vadd.f32 %v5914_v49, %v7664_v63  ;;  %v2874_v50 = vmax.f32 %v2762_v1, 0.0  ;;  %v6620_v25 = vld [vmem:[%s8487_s3 + $0x160] ss:$8 sps:$4 sm:$0xff]   ;;  %v8586_v49 = vld [vmem:[#allocation39_spill] sm:$0xff]  ;;  %v6628_v1 = vld [vmem:[%s8487_s3 + $0x184] ss:$8 sps:$4 sm:$0xff]  }
 0x45a   :  { %v8587_v41 = vld [vmem:[#allocation43_spill] sm:$0xff] }
 0x45b   :  { %v2512_v60 = vpop.f32.mrb[100].mxu0  ;;  %3356 = vmatmul.mubr.bf16.gmra.mrb[116].mxu1 %v7735_v2  ;;  %v6616_v2 = vld [vmem:[%s8487_s3 + $0x144] ss:$8 sps:$4 sm:$0xff]   ;;  %v2876_v28 = vmax.f32 %v2764_v31, 0.0 }
 0x45c   :  { %v5915_v57 = vadd.f32 %v2512_v60, %v7853_v56  ;;  %v2514_v47 = vpop.f32.mrb[101].mxu0  ;;  %3365 = vmatprep.mubr.bf16.mxu1 %v8542_v43  ;;  %3548 = vmatpush1.bf16.msra.mxu1 %v6608_v53  ;;  %v2763_v56 = vadd.f32 %v5913_v29, %v7657_v23  ;;  %v6623_v60 = vld [vmem:[%s8487_s3 + $0x170] ss:$8 sps:$4 sm:$0xff]   ;;  %v8590_v31 = vld [vmem:[#allocation9_spill] sm:$0xff] }
 0x45d   :  { %v5916_v15 = vadd.f32 %v2514_v47, %v7858_v24  ;;  %v2516_v33 = vpop.f32.mrb[102].mxu0  ;;  %3549 = vmatprep.subr.bf16.mxu1 %v6613_v26  ;;  %v2873_v24 = vmax.f32 %v2761_v14, 0.0 }
 0x45e   :  { %v2765_v11 = vadd.f32 %v5915_v57, %v7657_v23  ;;  %v5917_v3 = vadd.f32 %v2516_v33, %v7862_v4  ;;  %v2518_v6 = vpop.f32.mrb[103].mxu0  ;;  %v2875_v9 = vmax.f32 %v2763_v56, 0.0  ;;  %v8588_v57 = vld [vmem:[#allocation44_spill] sm:$0xff] }
 0x45f   :  { %v2766_v18 = vadd.f32 %v5916_v15, %v7664_v63  ;;  %v5918_v40 = vadd.f32 %v2518_v6, %v8583_v30 }
 0x460   :  { %v2877_v52 = vmax.f32 %v2765_v11, 0.0  ;;  %v2767_v32 = vadd.f32 %v5917_v3, %v7657_v23  ;;  %3550 = vmatpush1.bf16.msra.mxu1 %v6611_v38 }
 0x461   :  { %v2878_v0 = vmax.f32 %v2766_v18, 0.0  ;;  %v2768_v4 = vadd.f32 %v5918_v40, %v7664_v63  ;;  %3551 = vmatprep.subr.bf16.mxu1 %v6616_v2  ;;  %v8589_v2 = vld [vmem:[#allocation8_spill] sm:$0xff] }
 0x462   :  { %v2937_v35 = vmax.f32 %v2873_v24, %v2877_v52  ;;  %v2879_v12 = vmax.f32 %v2767_v32, 0.0 }
 0x463   :  { %v2938_v34 = vmax.f32 %v2874_v50, %v2878_v0  ;;  %v2880_v61 = vmax.f32 %v2768_v4, 0.0  ;;  %v2522_v17 = vpop.f32.mrb[104].mxu0  ;;  %3366 = vmatmul.mubr.bf16.gmra.mrb[120].mxu1 %v8584_v46 }
 0x464   :  { %v2939_v37 = vmax.f32 %v2875_v9, %v2879_v12  ;;  %v5919_v20 = vadd.f32 %v2522_v17, %v7874_v54  ;;  %v2524_v10 = vpop.f32.mrb[105].mxu0  ;;  %3375 = vmatprep.mubr.bf16.mxu1 %v8542_v43  ;;  %3552 = vmatpush1.bf16.msra.mxu1 %v6614_v16  ;;  %v8591_v12 = vld [vmem:[#allocation42_spill] sm:$0xff] }
 0x465   :  { %v2940_v13 = vmax.f32 %v2876_v28, %v2880_v61  ;;  %v5920_v7 = vadd.f32 %v2524_v10, %v7877_v55  ;;  %v2526_v42 = vpop.f32.mrb[106].mxu0  ;;  %3553 = vmatprep.subr.bf16.mxu1 %v6619_v5  ;;  %v2969_v22 = vmax.f32 %v2937_v35, %v2938_v34  ;;  %v6625_v55 = vld [vmem:[%s8487_s3 + $0x174] ss:$8 sps:$4 sm:$0xff]  }
 0x466   :  { %v5921_v54 = vadd.f32 %v2526_v42, %v7880_v19  ;;  %v2528_v45 = vpop.f32.mrb[107].mxu0  ;;  %v2769_v19 = vadd.f32 %v5919_v20, %v7657_v23  ;;  %v6626_v20 = vld [vmem:[%s8487_s3 + $0x180] ss:$8 sps:$4 sm:$0xff]   ;;  %v6631_v10 = vld [vmem:[%s8487_s3 + $0x194] ss:$8 sps:$4 sm:$0xff]  }
 0x467   :  { %v5922_v36 = vadd.f32 %v2528_v45, %v8585_v58  ;;  %v2970_v8 = vmax.f32 %v2939_v37, %v2940_v13  ;;  %v2770_v14 = vadd.f32 %v5920_v7, %v7664_v63  ;;  %v8592_v37 = vld [vmem:[#allocation10_spill] sm:$0xff]  ;;  %v6634_v13 = vld [vmem:[%s8487_s3 + $0x1a4] ss:$8 sps:$4 sm:$0xff]   ;;  %v6632_v7 = vld [vmem:[%s8487_s3 + $0x1a0] ss:$8 sps:$4 sm:$0xff]  }
 0x468   :  { %3554 = vmatpush1.bf16.msra.mxu1 %v6617_v21  ;;  %v2771_v15 = vadd.f32 %v5921_v54, %v7657_v23  ;;  %v2881_v30 = vmax.f32 %v2769_v19, 0.0  ;;  %v6629_v21 = vld [vmem:[%s8487_s3 + $0x190] ss:$8 sps:$4 sm:$0xff]   ;;  %v6643_v54 = vld [vmem:[%s8487_s3 + $0x1d4] ss:$8 sps:$4 sm:$0xff]  }
 0x469   :  { %3555 = vmatprep.subr.bf16.mxu1 %v6622_v44  ;;  %v8100_v29 = vpack.c.bf16 %v2970_v8, %v2969_v22  ;;  %v2772_v3 = vadd.f32 %v5922_v36, %v7664_v63  ;;  %v2882_v52 = vmax.f32 %v2770_v14, 0.0  ;;  %v6635_v42 = vld [vmem:[%s8487_s3 + $0x1b0] ss:$8 sps:$4 sm:$0xff]   ;;  %v6640_v44 = vld [vmem:[%s8487_s3 + $0x1c4] ss:$8 sps:$4 sm:$0xff]  }
 0x46a   :  { %v2883_v50 = vmax.f32 %v2771_v15, 0.0  ;;  %v6638_v22 = vld [vmem:[%s8487_s3 + $0x1c0] ss:$8 sps:$4 sm:$0xff]   ;;  %v6641_v45 = vld [vmem:[%s8487_s3 + $0x1d0] ss:$8 sps:$4 sm:$0xff]  }
 0x46b   :  { %v2532_v62 = vpop.f32.mrb[108].mxu0  ;;  %3376 = vmatmul.mubr.bf16.gmra.mrb[124].mxu1 %v8586_v49  ;;  %v2884_v5 = vmax.f32 %v2772_v3, 0.0  ;;  %v6646_v58 = vld [vmem:[%s8487_s3 + $0x1e4] ss:$8 sps:$4 sm:$0xff]   ;;  %v6644_v36 = vld [vmem:[%s8487_s3 + $0x1e0] ss:$8 sps:$4 sm:$0xff]  }
 0x46c   :  { %v5923_v53 = vadd.f32 %v2532_v62, %v8587_v41  ;;  %v2534_v26 = vpop.f32.mrb[109].mxu0  ;;  %3385 = vmatprep.mubr.bf16.mxu1 %v8542_v43  ;;  %3556 = vmatpush1.bf16.msra.mxu1 %v6620_v25  ;;  %v6649_v8 = vld [vmem:[%s8487_s3 + $0x1f4] ss:$8 sps:$4 sm:$0xff]   ;;  %v6647_v25 = vld [vmem:[%s8487_s3 + $0x1f0] ss:$8 sps:$4 sm:$0xff]   ;;  %v6675_v3 = vld [vmem:[#allocation4 + $0x48] sm:$0xff]  }
 0x46d   :  { %v5924_v47 = vadd.f32 %v2534_v26, %v8588_v57  ;;  %v2536_v38 = vpop.f32.mrb[110].mxu0  ;;  %3557 = vmatprep.subr.bf16.mxu1 %v6625_v55  ;;  %v6652_v55 = vld [vmem:[%s8487_s3 + $0x204] ss:$8 sps:$4 sm:$0xff]   ;;  %v6650_v62 = vld [vmem:[%s8487_s3 + $0x200] ss:$8 sps:$4 sm:$0xff]  }
 0x46e   :  { %v2773_v33 = vadd.f32 %v5923_v53, %v7657_v23  ;;  %v5925_v56 = vadd.f32 %v2536_v38, %v8589_v2  ;;  %v2538_v11 = vpop.f32.mrb[111].mxu0  ;;  %v6655_v19 = vld [vmem:[%s8487_s3 + $0x214] ss:$8 sps:$4 sm:$0xff]   ;;  %v6653_v41 = vld [vmem:[%s8487_s3 + $0x210] ss:$8 sps:$4 sm:$0xff]  }
 0x46f   :  { %v2774_v6 = vadd.f32 %v5924_v47, %v7664_v63  ;;  %v5926_v18 = vadd.f32 %v2538_v11, %v8590_v31  ;;  %v6658_v53 = vld [vmem:[%s8487_s3 + $0x224] ss:$8 sps:$4 sm:$0xff]   ;;  %v6656_v26 = vld [vmem:[%s8487_s3 + $0x220] ss:$8 sps:$4 sm:$0xff]   ;;  %v6667_v47 = vld [vmem:[%s8487_s3 + $0x254] ss:$8 sps:$4 sm:$0xff]  }
 0x470   :  { %v2885_v40 = vmax.f32 %v2773_v33, 0.0  ;;  %v2775_v24 = vadd.f32 %v5925_v56, %v7657_v23  ;;  %3558 = vmatpush1.bf16.msra.mxu1 %v6623_v60  ;;  %v6659_v60 = vld [vmem:[%s8487_s3 + $0x230] ss:$8 sps:$4 sm:$0xff]   ;;  %v6664_v14 = vld [vmem:[%s8487_s3 + $0x244] ss:$8 sps:$4 sm:$0xff]   ;;  %v6797_v56 = vmov 0.0  }
 0x471   :  { %v2886_v32 = vmax.f32 %v2774_v6, 0.0  ;;  %v2776_v16 = vadd.f32 %v5926_v18, %v7664_v63  ;;  %3813 = vmatprep.subr.bf16.mxu1 %v6628_v1  ;;  %v8593_v63 = vld [vmem:[#allocation11_spill] sm:$0xff]  ;;  %v6662_v57 = vld [vmem:[%s8487_s3 + $0x240] ss:$8 sps:$4 sm:$0xff]   ;;  %v6670_v1 = vld [vmem:[%s8487_s3 + $0x264] ss:$8 sps:$4 sm:$0xff]  }
 0x472   :  { %v2941_v0 = vmax.f32 %v2881_v30, %v2885_v40  ;;  %v2887_v4 = vmax.f32 %v2775_v24, 0.0  ;;  %v6665_v38 = vld [vmem:[%s8487_s3 + $0x250] ss:$8 sps:$4 sm:$0xff]   ;;  %v6668_v15 = vld [vmem:[%s8487_s3 + $0x260] ss:$8 sps:$4 sm:$0xff]  }
 0x473   :  { %v2942_v9 = vmax.f32 %v2882_v52, %v2886_v32  ;;  %v2888_v35 = vmax.f32 %v2776_v16, 0.0  ;;  %3386 = vmatmul.mubr.bf16.gmra.mrb[128].mxu1 %v8591_v12  ;;  %v6673_v33 = vld [vmem:[%s8487_s3 + $0x274] ss:$8 sps:$4 sm:$0xff]   ;;  %v6671_v2 = vld [vmem:[%s8487_s3 + $0x270] ss:$8 sps:$4 sm:$0xff]   ;;  %v6674_v11 = vld [vmem:[#allocation4 + $0x40] sm:$0xff]  }
 0x474   :  { %v2943_v28 = vmax.f32 %v2883_v50, %v2887_v4  ;;  %3395 = vmatprep.mubr.bf16.mxu1 %v8542_v43  ;;  %v6676_v6 = vld [vmem:[#allocation4 + $0x50] sm:$0xff]   ;;  %v6677_v31 = vld [vmem:[#allocation4 + $0x58] sm:$0xff]   ;;  %v6678_v18 = vld [vmem:[#allocation4 + $0x60] sm:$0xff]  }
 0x475   :  { %v2944_v34 = vmax.f32 %v2884_v5, %v2888_v35  ;;  %v2971_v61 = vmax.f32 %v2941_v0, %v2942_v9  ;;  %v8594_v30 = vld [vmem:[#allocation26_spill] sm:$0xff] }
 0x476   :  { %v8595_v40 = vsub.s32 0, %v8594_v30  ;;  %v8596_v32 = vsub.s32 1, %v8594_v30 }
 0x477   :  { %v2972_v23 = vmax.f32 %v2943_v28, %v2944_v34 }
 0x479   :  { %v8124_v17 = vpack.c.bf16 %v2972_v23, %v2971_v61 }
 0x47b   :  { %3396 = vmatmul.mubr.bf16.gmra.mrb[132].mxu1 %v8592_v37 }
 0x47c   :  { %3405 = vmatprep.mubr.bf16.mxu1 %v8542_v43 }
 0x483   :  { %3406 = vmatmul.mubr.bf16.gmra.mrb[136].mxu1 %v8593_v63 }
 0x484   :  { %3415 = vmatprep.mubr.bf16.mxu1 %v8542_v43 }
 0x48b   :  { %3416 = vmatmul.mubr.bf16.gmra.mrb[140].mxu1 %v7954_v51 }
 0x48c   :  { %3425 = vmatprep.mubr.bf16.mxu1 %v8542_v43 }
 0x493   :  { %3426 = vmatmul.mubr.bf16.gmra.mrb[144].mxu1 %v7974_v59 }
 0x494   :  { %3435 = vmatprep.mubr.bf16.mxu1 %v8542_v43 }
 0x49b   :  { %3436 = vmatmul.mubr.bf16.gmra.mrb[148].mxu1 %v7994_v48 }
 0x49c   :  { %3575 = vmatprep.mubr.bf16.mxu1 %v8542_v43 }
 0x4a3   :  { %3576 = vmatmul.mubr.bf16.vlgmr.msra.gmra.mrb[112].mxu1 %v8584_v46  ;;  %v6637_v46 = vld [vmem:[%s8487_s3 + $0x1b4] ss:$8 sps:$4 sm:$0xff]  }
 0x4a4   :  { %3814 = vmatpush1.bf16.msra.mxu1 %v6626_v20  ;;  %3585 = vmatprep.mubr.bf16.mxu1 %v8542_v43 }
 0x4a5   :  { %3815 = vmatprep.subr.bf16.mxu1 %v6631_v10 }
 0x4a8   :  { %3816 = vmatpush1.bf16.msra.mxu1 %v6629_v21 }
 0x4a9   :  { %3817 = vmatprep.subr.bf16.mxu1 %v6634_v13 }
 0x4ab   :  { %3586 = vmatmul.mubr.bf16.gmra.mrb[116].mxu1 %v8586_v49 }
 0x4ac   :  { %3595 = vmatprep.mubr.bf16.mxu1 %v8542_v43  ;;  %3818 = vmatpush1.bf16.msra.mxu1 %v6632_v7 }
 0x4ad   :  { %3819 = vmatprep.subr.bf16.mxu1 %v6637_v46 }
 0x4b0   :  { %3820 = vmatpush1.bf16.msra.mxu1 %v6635_v42 }
 0x4b1   :  { %3821 = vmatprep.subr.bf16.mxu1 %v6640_v44 }
 0x4b3   :  { %3596 = vmatmul.mubr.bf16.gmra.mrb[120].mxu1 %v8591_v12 }
 0x4b4   :  { %3605 = vmatprep.mubr.bf16.mxu1 %v8542_v43  ;;  %3822 = vmatpush1.bf16.msra.mxu1 %v6638_v22 }
 0x4b5   :  { %3823 = vmatprep.subr.bf16.mxu1 %v6643_v54 }
 0x4b8   :  { %3824 = vmatpush1.bf16.msra.mxu1 %v6641_v45 }
 0x4b9   :  { %3825 = vmatprep.subr.bf16.mxu1 %v6646_v58 }
 0x4bb   :  { %3606 = vmatmul.mubr.bf16.gmra.mrb[124].mxu1 %v8592_v37 }
 0x4bc   :  { %3615 = vmatprep.mubr.bf16.mxu1 %v8542_v43  ;;  %3826 = vmatpush1.bf16.msra.mxu1 %v6644_v36 }
 0x4bd   :  { %3827 = vmatprep.subr.bf16.mxu1 %v6649_v8 }
 0x4c0   :  { %3828 = vmatpush1.bf16.msra.mxu1 %v6647_v25 }
 0x4c1   :  { %4083 = vmatprep.subr.bf16.mxu1 %v6652_v55 }
 0x4c3   :  { %3616 = vmatmul.mubr.bf16.gmra.mrb[128].mxu1 %v8593_v63 }
 0x4c4   :  { %3625 = vmatprep.mubr.bf16.mxu1 %v8542_v43 }
 0x4cb   :  { %3626 = vmatmul.mubr.bf16.gmra.mrb[132].mxu1 %v7954_v51 }
 0x4cc   :  { %3635 = vmatprep.mubr.bf16.mxu1 %v8542_v43 }
 0x4d3   :  { %3636 = vmatmul.mubr.bf16.gmra.mrb[136].mxu1 %v7974_v59 }
 0x4d4   :  { %3645 = vmatprep.mubr.bf16.mxu1 %v8542_v43 }
 0x4db   :  { %3646 = vmatmul.mubr.bf16.gmra.mrb[140].mxu1 %v7994_v48 }
 0x4dc   :  { %3655 = vmatprep.mubr.bf16.mxu1 %v8542_v43 }
 0x4e3   :  { %3656 = vmatmul.mubr.bf16.gmra.mrb[144].mxu1 %v8014_v27 }
 0x4e4   :  { %3665 = vmatprep.mubr.bf16.mxu1 %v8542_v43 }
 0x4eb   :  { %3666 = vmatmul.mubr.bf16.gmra.mrb[148].mxu1 %v8054_v39 }
 0x4ec   :  { %3845 = vmatprep.mubr.bf16.mxu1 %v8542_v43 }
 0x4f3   :  { %3846 = vmatmul.mubr.bf16.vlgmr.msra.gmra.mrb[112].mxu1 %v8586_v49  ;;  %v6661_v49 = vld [vmem:[%s8487_s3 + $0x234] ss:$8 sps:$4 sm:$0xff]  }
 0x4f4   :  { %4084 = vmatpush1.bf16.msra.mxu1 %v6650_v62  ;;  %3855 = vmatprep.mubr.bf16.mxu1 %v8542_v43 }
 0x4f5   :  { %4085 = vmatprep.subr.bf16.mxu1 %v6655_v19 }
 0x4f8   :  { %4086 = vmatpush1.bf16.msra.mxu1 %v6653_v41 }
 0x4f9   :  { %4087 = vmatprep.subr.bf16.mxu1 %v6658_v53 }
 0x4fb   :  { %3856 = vmatmul.mubr.bf16.gmra.mrb[116].mxu1 %v8591_v12 }
 0x4fc   :  { %3865 = vmatprep.mubr.bf16.mxu1 %v8542_v43  ;;  %4088 = vmatpush1.bf16.msra.mxu1 %v6656_v26 }
 0x4fd   :  { %4089 = vmatprep.subr.bf16.mxu1 %v6661_v49 }
 0x500   :  { %4090 = vmatpush1.bf16.msra.mxu1 %v6659_v60 }
 0x501   :  { %4091 = vmatprep.subr.bf16.mxu1 %v6664_v14 }
 0x503   :  { %3866 = vmatmul.mubr.bf16.gmra.mrb[120].mxu1 %v8592_v37 }
 0x504   :  { %3875 = vmatprep.mubr.bf16.mxu1 %v8542_v43  ;;  %4092 = vmatpush1.bf16.msra.mxu1 %v6662_v57 }
 0x505   :  { %4093 = vmatprep.subr.bf16.mxu1 %v6667_v47 }
 0x508   :  { %4094 = vmatpush1.bf16.msra.mxu1 %v6665_v38 }
 0x509   :  { %4095 = vmatprep.subr.bf16.mxu1 %v6670_v1 }
 0x50b   :  { %3876 = vmatmul.mubr.bf16.gmra.mrb[124].mxu1 %v8593_v63 }
 0x50c   :  { %3885 = vmatprep.mubr.bf16.mxu1 %v8542_v43  ;;  %4096 = vmatpush1.bf16.msra.mxu1 %v6668_v15 }
 0x50d   :  { %4097 = vmatprep.subr.bf16.mxu1 %v6673_v33 }
 0x510   :  { %4098 = vmatpush1.bf16.msra.mxu1 %v6671_v2 }
 0x511   :  { %5663 = vmatprep.subr.bf16.mxu1 %v6797_v56 }
 0x513   :  { %3886 = vmatmul.mubr.bf16.gmra.mrb[128].mxu1 %v7954_v51 }
 0x514   :  { %3895 = vmatprep.mubr.bf16.mxu1 %v8542_v43 }
 0x51b   :  { %3896 = vmatmul.mubr.bf16.gmra.mrb[132].mxu1 %v7974_v59 }
 0x51c   :  { %3905 = vmatprep.mubr.bf16.mxu1 %v8542_v43 }
 0x523   :  { %3906 = vmatmul.mubr.bf16.gmra.mrb[136].mxu1 %v7994_v48 }
 0x524   :  { %3915 = vmatprep.mubr.bf16.mxu1 %v8542_v43 }
 0x52b   :  { %3916 = vmatmul.mubr.bf16.gmra.mrb[140].mxu1 %v8014_v27 }
 0x52c   :  { %3925 = vmatprep.mubr.bf16.mxu1 %v8542_v43 }
 0x533   :  { %3926 = vmatmul.mubr.bf16.gmra.mrb[144].mxu1 %v8054_v39 }
 0x534   :  { %3935 = vmatprep.mubr.bf16.mxu1 %v8542_v43 }
 0x53b   :  { %3936 = vmatmul.mubr.bf16.gmra.mrb[148].mxu1 %v8100_v29 }
 0x53c   :  { %4115 = vmatprep.mubr.bf16.mxu1 %v8542_v43 }
 0x543   :  { %4116 = vmatmul.mubr.bf16.vlgmr.msra.gmra.mrb[112].mxu1 %v8591_v12 }
 0x544   :  { %4125 = vmatprep.mubr.bf16.mxu1 %v8542_v43  ;;  %5664 = vmatpush3.bf16.msra.mxu1 %v6674_v11 }
 0x545   :  { %5665 = vmatprep.subr.bf16.mxu1 %v6797_v56 }
 0x548   :  { %5666 = vmatpush3.bf16.msra.mxu1 %v6675_v3 }
 0x549   :  { %5667 = vmatprep.subr.bf16.mxu1 %v6797_v56 }
 0x54b   :  { %4126 = vmatmul.mubr.bf16.gmra.mrb[116].mxu1 %v8592_v37 }
 0x54c   :  { %4135 = vmatprep.mubr.bf16.mxu1 %v8542_v43  ;;  %5668 = vmatpush3.bf16.msra.mxu1 %v6676_v6 }
 0x54d   :  { %5669 = vmatprep.subr.bf16.mxu1 %v6797_v56 }
 0x550   :  { %5670 = vmatpush3.bf16.msra.mxu1 %v6677_v31 }
 0x551   :  { %5671 = vmatprep.subr.bf16.mxu1 %v6797_v56 }
 0x553   :  { %4136 = vmatmul.mubr.bf16.gmra.mrb[120].mxu1 %v8593_v63 }
 0x554   :  { %4145 = vmatprep.mubr.bf16.mxu1 %v8542_v43  ;;  %5672 = vmatpush3.bf16.msra.mxu1 %v6678_v18 }
 0x555   :  { %5673 = vmatprep.subr.bf16.mxu1 %v6797_v56 }
 0x55b   :  { %4146 = vmatmul.mubr.bf16.gmra.mrb[124].mxu1 %v7954_v51  ;;  %v6679_v51 = vld [vmem:[#allocation4 + $0x68] sm:$0xff]  }
 0x55c   :  { %4155 = vmatprep.mubr.bf16.mxu1 %v8542_v43  ;;  %5674 = vmatpush3.bf16.msra.mxu1 %v6679_v51 }
 0x55d   :  { %5675 = vmatprep.subr.bf16.mxu1 %v6797_v56 }
 0x563   :  { %4156 = vmatmul.mubr.bf16.gmra.mrb[128].mxu1 %v7974_v59  ;;  %v6680_v59 = vld [vmem:[#allocation4 + $0x70] sm:$0xff]  }
 0x564   :  { %4165 = vmatprep.mubr.bf16.mxu1 %v8542_v43  ;;  %5676 = vmatpush3.bf16.msra.mxu1 %v6680_v59 }
 0x565   :  { %5677 = vmatprep.subr.bf16.mxu1 %v6797_v56 }
 0x56b   :  { %4166 = vmatmul.mubr.bf16.gmra.mrb[132].mxu1 %v7994_v48  ;;  %v6681_v48 = vld [vmem:[#allocation4 + $0x78] sm:$0xff]  }
 0x56c   :  { %4175 = vmatprep.mubr.bf16.mxu1 %v8542_v43  ;;  %5678 = vmatpush3.bf16.msra.mxu1 %v6681_v48 }
 0x56d   :  { %5683 = vmatprep.subr.bf16.mxu1 %v6797_v56 }
 0x573   :  { %4176 = vmatmul.mubr.bf16.gmra.mrb[136].mxu1 %v8014_v27 }
 0x574   :  { %4185 = vmatprep.mubr.bf16.mxu1 %v8542_v43 }
 0x57b   :  { %4186 = vmatmul.mubr.bf16.gmra.mrb[140].mxu1 %v8054_v39 }
 0x57c   :  { %4195 = vmatprep.mubr.bf16.mxu1 %v8542_v43 }
 0x583   :  { %4196 = vmatmul.mubr.bf16.gmra.mrb[144].mxu1 %v8100_v29 }
 0x584   :  { %4205 = vmatprep.mubr.bf16.mxu1 %v8542_v43  ;;  %v4256_v43 = vld [vmem:[%s8488_s4] sm:$0x3] }
 0x585   :  { %v8304_v24 = vrot.slane %v4256_v43, %v8595_v40  ;;  %v8308_v16 = vrot.slane %v4256_v43, %v8596_v32 }
 0x58b   :  { %4206 = vmatmul.mubr.bf16.gmra.mrb[148].mxu1 %v8124_v17 }
 0x58c   :  { %5679 = vmatprep.mubr.msk.bf16.mxu1 %vm6798_vm1, %v6797_v56 }
 0x616   :  { %v4117_v27 = vpop.f32.mrb[112].mxu1 }
 0x617   :  { %v4119_v39 = vpop.f32.mrb[113].mxu1  ;;  %v4268_v50 = vadd.f32 %v8304_v24, %v4117_v27 }
 0x618   :  { %v4121_v29 = vpop.f32.mrb[114].mxu1  ;;  %v4269_v0 = vadd.f32 %v8308_v16, %v4119_v39 }
 0x619   :  { %v4123_v52 = vpop.f32.mrb[115].mxu1  ;;  %v4270_v5 = vadd.f32 %v8304_v24, %v4121_v29  ;;  %v4308_v61 = vmax.f32 %v4268_v50, 0.0  ;;  %v6682_v50 = vld [vmem:[#allocation4] sm:$0xff]  }
 0x61a   :  { %v4271_v12 = vadd.f32 %v8308_v16, %v4123_v52  ;;  %v4309_v63 = vmax.f32 %v4269_v0, 0.0 }
 0x61b   :  { %v4310_v21 = vmax.f32 %v4270_v5, 0.0  ;;  %v6683_v5 = vld [vmem:[#allocation4 + $0x8] sm:$0xff]  }
 0x61c   :  { %v4311_v46 = vmax.f32 %v4271_v12, 0.0 }
 0x61e   :  { %v4127_v4 = vpop.f32.mrb[116].mxu1 }
 0x61f   :  { %v4272_v9 = vadd.f32 %v8304_v24, %v4127_v4  ;;  %v4129_v35 = vpop.f32.mrb[117].mxu1 }
 0x620   :  { %v4273_v28 = vadd.f32 %v8308_v16, %v4129_v35  ;;  %v4131_v34 = vpop.f32.mrb[118].mxu1 }
 0x621   :  { %v4312_v23 = vmax.f32 %v4272_v9, 0.0  ;;  %v4274_v17 = vadd.f32 %v8304_v24, %v4131_v34  ;;  %v4133_v37 = vpop.f32.mrb[119].mxu1 }
 0x622   :  { %v4313_v20 = vmax.f32 %v4273_v28, 0.0  ;;  %v4275_v10 = vadd.f32 %v8308_v16, %v4133_v37 }
 0x623   :  { %v4348_v13 = vmax.f32 %v4308_v61, %v4312_v23  ;;  %v4314_v7 = vmax.f32 %v4274_v17, 0.0 }
 0x624   :  { %v4349_v42 = vmax.f32 %v4309_v63, %v4313_v20  ;;  %v4315_v44 = vmax.f32 %v4275_v10, 0.0 }
 0x625   :  { %v4350_v22 = vmax.f32 %v4310_v21, %v4314_v7  ;;  %v6684_v21 = vld [vmem:[#allocation4 + $0x10] sm:$0xff]  }
 0x626   :  { %v4368_v54 = vmax.f32 %v4348_v13, %v4349_v42  ;;  %v4351_v45 = vmax.f32 %v4311_v46, %v4315_v44  ;;  %v4137_v58 = vpop.f32.mrb[120].mxu1 }
 0x627   :  { %v4139_v36 = vpop.f32.mrb[121].mxu1  ;;  %v4276_v19 = vadd.f32 %v8304_v24, %v4137_v58 }
 0x628   :  { %v4369_v8 = vmax.f32 %v4350_v22, %v4351_v45  ;;  %v4141_v25 = vpop.f32.mrb[122].mxu1  ;;  %v4277_v41 = vadd.f32 %v8308_v16, %v4139_v36 }
 0x629   :  { %v4143_v55 = vpop.f32.mrb[123].mxu1  ;;  %v4278_v26 = vadd.f32 %v8304_v24, %v4141_v25  ;;  %v4316_v38 = vmax.f32 %v4276_v19, 0.0 }
 0x62a   :  { %v8318_v62 = vpack.c.bf16 %v4369_v8, %v4368_v54  ;;  %v4279_v14 = vadd.f32 %v8308_v16, %v4143_v55  ;;  %v4317_v2 = vmax.f32 %v4277_v41, 0.0  ;;  %v6685_v8 = vld [vmem:[#allocation4 + $0x18] sm:$0xff]  }
 0x62b   :  { %v4318_v6 = vmax.f32 %v4278_v26, 0.0 }
 0x62c   :  { %v4319_v51 = vmax.f32 %v4279_v14, 0.0 }
 0x62e   :  { %v4147_v53 = vpop.f32.mrb[124].mxu1 }
 0x62f   :  { %v4280_v49 = vadd.f32 %v8304_v24, %v4147_v53  ;;  %v4149_v60 = vpop.f32.mrb[125].mxu1 }
 0x630   :  { %v4281_v57 = vadd.f32 %v8308_v16, %v4149_v60  ;;  %v4151_v47 = vpop.f32.mrb[126].mxu1  ;;  %v6686_v60 = vld [vmem:[#allocation4 + $0x20] sm:$0xff]  }
 0x631   :  { %v4320_v1 = vmax.f32 %v4280_v49, 0.0  ;;  %v4282_v15 = vadd.f32 %v8304_v24, %v4151_v47  ;;  %v4153_v33 = vpop.f32.mrb[127].mxu1  ;;  %v6687_v47 = vld [vmem:[#allocation4 + $0x28] sm:$0xff]  }
 0x632   :  { %v4321_v11 = vmax.f32 %v4281_v57, 0.0  ;;  %v4283_v3 = vadd.f32 %v8308_v16, %v4153_v33 }
 0x633   :  { %v4352_v31 = vmax.f32 %v4316_v38, %v4320_v1  ;;  %v4322_v18 = vmax.f32 %v4282_v15, 0.0 }
 0x634   :  { %v4353_v59 = vmax.f32 %v4317_v2, %v4321_v11  ;;  %v4323_v48 = vmax.f32 %v4283_v3, 0.0 }
 0x635   :  { %v4354_v27 = vmax.f32 %v4318_v6, %v4322_v18 }
 0x636   :  { %v4370_v43 = vmax.f32 %v4352_v31, %v4353_v59  ;;  %v4355_v39 = vmax.f32 %v4319_v51, %v4323_v48  ;;  %v4157_v29 = vpop.f32.mrb[128].mxu1  ;;  %v6688_v48 = vld [vmem:[#allocation4 + $0x30] sm:$0xff]  }
 0x637   :  { %v4159_v30 = vpop.f32.mrb[129].mxu1  ;;  %v4284_v4 = vadd.f32 %v8304_v24, %v4157_v29 }
 0x638   :  { %v4371_v40 = vmax.f32 %v4354_v27, %v4355_v39  ;;  %v4161_v52 = vpop.f32.mrb[130].mxu1  ;;  %v4285_v9 = vadd.f32 %v8308_v16, %v4159_v30 }
 0x639   :  { %v4163_v32 = vpop.f32.mrb[131].mxu1  ;;  %v4286_v12 = vadd.f32 %v8304_v24, %v4161_v52  ;;  %v4324_v37 = vmax.f32 %v4284_v4, 0.0  ;;  %v6689_v4 = vld [vmem:[#allocation4 + $0x38] sm:$0xff]  }
 0x63a   :  { %v4379_v0 = vpack.c.bf16 %v4371_v40, %v4370_v43  ;;  %v4287_v61 = vadd.f32 %v8308_v16, %v4163_v32  ;;  %v4325_v13 = vmax.f32 %v4285_v9, 0.0 }
 0x63b   :  { %v4326_v42 = vmax.f32 %v4286_v12, 0.0 }
 0x63c   :  { %5680 = vmatmul.mubr.bf16.vlgmr.msra.gmra.mrb[152].mxu1 %v4379_v0  ;;  %v4327_v54 = vmax.f32 %v4287_v61, 0.0 }
 0x63d   :  { %5684 = vmatpush3.bf16.msra.mxu1 %v6682_v50  ;;  %5699 = vmatprep.mubr.msk.bf16.mxu1 %vm6798_vm1, %v6797_v56 }
 0x63e   :  { %v4167_v35 = vpop.f32.mrb[132].mxu1  ;;  %5685 = vmatprep.subr.bf16.mxu1 %v6797_v56 }
 0x63f   :  { %v4288_v28 = vadd.f32 %v8304_v24, %v4167_v35  ;;  %v4169_v34 = vpop.f32.mrb[133].mxu1 }
 0x640   :  { %v4289_v23 = vadd.f32 %v8308_v16, %v4169_v34  ;;  %v4171_v17 = vpop.f32.mrb[134].mxu1 }
 0x641   :  { %v4328_v63 = vmax.f32 %v4288_v28, 0.0  ;;  %v4290_v20 = vadd.f32 %v8304_v24, %v4171_v17  ;;  %5686 = vmatpush3.bf16.msra.mxu1 %v6683_v5  ;;  %v4173_v10 = vpop.f32.mrb[135].mxu1 }
 0x642   :  { %v4329_v7 = vmax.f32 %v4289_v23, 0.0  ;;  %v4291_v46 = vadd.f32 %v8308_v16, %v4173_v10  ;;  %5687 = vmatprep.subr.bf16.mxu1 %v6797_v56  ;;  %v6690_v23 = vld [vmem:[#allocation4 + $0x80] sm:$0xff]  }
 0x643   :  { %v4356_v44 = vmax.f32 %v4324_v37, %v4328_v63  ;;  %v4330_v22 = vmax.f32 %v4290_v20, 0.0  ;;  %v6691_v63 = vld [vmem:[#allocation4 + $0x88] sm:$0xff]  }
 0x644   :  { %v4357_v45 = vmax.f32 %v4325_v13, %v4329_v7  ;;  %v4331_v58 = vmax.f32 %v4291_v46, 0.0 }
 0x645   :  { %v4358_v36 = vmax.f32 %v4326_v42, %v4330_v22  ;;  %5688 = vmatpush3.bf16.msra.mxu1 %v6684_v21 }
 0x646   :  { %v4372_v25 = vmax.f32 %v4356_v44, %v4357_v45  ;;  %v4359_v55 = vmax.f32 %v4327_v54, %v4331_v58  ;;  %v4177_v19 = vpop.f32.mrb[136].mxu1  ;;  %5689 = vmatprep.subr.bf16.mxu1 %v6797_v56  ;;  %v6692_v58 = vld [vmem:[#allocation4 + $0x90] sm:$0xff]  }
 0x647   :  { %v4179_v41 = vpop.f32.mrb[137].mxu1  ;;  %v4292_v57 = vadd.f32 %v8304_v24, %v4177_v19 }
 0x648   :  { %v4373_v53 = vmax.f32 %v4358_v36, %v4359_v55  ;;  %v4181_v26 = vpop.f32.mrb[138].mxu1  ;;  %v4293_v38 = vadd.f32 %v8308_v16, %v4179_v41 }
 0x649   :  { %5690 = vmatpush3.bf16.msra.mxu1 %v6685_v8  ;;  %v4183_v49 = vpop.f32.mrb[139].mxu1  ;;  %v4294_v15 = vadd.f32 %v8304_v24, %v4181_v26  ;;  %v4332_v31 = vmax.f32 %v4292_v57, 0.0  ;;  %v6693_v57 = vld [vmem:[#allocation4 + $0x98] sm:$0xff]  }
 0x64a   :  { %v8341_v14 = vpack.c.bf16 %v4373_v53, %v4372_v25  ;;  %5691 = vmatprep.subr.bf16.mxu1 %v6797_v56  ;;  %v4295_v11 = vadd.f32 %v8308_v16, %v4183_v49  ;;  %v4333_v27 = vmax.f32 %v4293_v38, 0.0 }
 0x64b   :  { %v4334_v29 = vmax.f32 %v4294_v15, 0.0 }
 0x64c   :  { %v4335_v52 = vmax.f32 %v4295_v11, 0.0  ;;  %v6698_v11 = vld [vmem:[#allocation4 + $0xc0] sm:$0xff]  }
 0x64d   :  { %5692 = vmatpush3.bf16.msra.mxu1 %v6686_v60 }
 0x64e   :  { %v4187_v1 = vpop.f32.mrb[140].mxu1  ;;  %5693 = vmatprep.subr.bf16.mxu1 %v6797_v56 }
 0x64f   :  { %v4296_v33 = vadd.f32 %v8304_v24, %v4187_v1  ;;  %v4189_v2 = vpop.f32.mrb[141].mxu1  ;;  %v6694_v1 = vld [vmem:[#allocation4 + $0xa0] sm:$0xff]  }
 0x650   :  { %v4297_v3 = vadd.f32 %v8308_v16, %v4189_v2  ;;  %v4191_v6 = vpop.f32.mrb[142].mxu1  ;;  %v6697_v2 = vld [vmem:[#allocation4 + $0xb8] sm:$0xff]  }
 0x651   :  { %v4336_v18 = vmax.f32 %v4296_v33, 0.0  ;;  %v4298_v51 = vadd.f32 %v8304_v24, %v4191_v6  ;;  %5694 = vmatpush3.bf16.msra.mxu1 %v6687_v47  ;;  %v4193_v59 = vpop.f32.mrb[143].mxu1  ;;  %v6696_v33 = vld [vmem:[#allocation4 + $0xb0] sm:$0xff]  }
 0x652   :  { %v4337_v43 = vmax.f32 %v4297_v3, 0.0  ;;  %v4299_v39 = vadd.f32 %v8308_v16, %v4193_v59  ;;  %5695 = vmatprep.subr.bf16.mxu1 %v6797_v56  ;;  %v6699_v3 = vld [vmem:[#allocation4 + $0xc8] sm:$0xff]   ;;  %v6700_v6 = vld [vmem:[#allocation4 + $0xd0] sm:$0xff]   ;;  %v6705_v59 = vld [vmem:[#allocation4 + $0xf8] sm:$0xff]  }
 0x653   :  { %v4360_v30 = vmax.f32 %v4332_v31, %v4336_v18  ;;  %v4338_v40 = vmax.f32 %v4298_v51, 0.0  ;;  %v6701_v31 = vld [vmem:[#allocation4 + $0xd8] sm:$0xff]   ;;  %v6702_v18 = vld [vmem:[#allocation4 + $0xe0] sm:$0xff]   ;;  %v6704_v51 = vld [vmem:[#allocation4 + $0xf0] sm:$0xff]  }
 0x654   :  { %v4361_v32 = vmax.f32 %v4333_v27, %v4337_v43  ;;  %v4339_v50 = vmax.f32 %v4299_v39, 0.0  ;;  %v6707_v27 = vld [vmem:[#allocation4 + $0x108] sm:$0xff]   ;;  %v6708_v43 = vld [vmem:[#allocation4 + $0x110] sm:$0xff]   ;;  %v6709_v39 = vld [vmem:[#allocation4 + $0x118] sm:$0xff]  }
 0x655   :  { %v4362_v0 = vmax.f32 %v4334_v29, %v4338_v40  ;;  %5696 = vmatpush3.bf16.msra.mxu1 %v6688_v48  ;;  %v6706_v48 = vld [vmem:[#allocation4 + $0x100] sm:$0xff]   ;;  %v6712_v40 = vld [vmem:[#allocation4 + $0x130] sm:$0xff]  }
 0x656   :  { %v4374_v5 = vmax.f32 %v4360_v30, %v4361_v32  ;;  %v4363_v9 = vmax.f32 %v4335_v52, %v4339_v50  ;;  %v4197_v35 = vpop.f32.mrb[144].mxu1  ;;  %5697 = vmatprep.subr.bf16.mxu1 %v6797_v56  ;;  %v6710_v29 = vld [vmem:[#allocation4 + $0x120] sm:$0xff]   ;;  %v6711_v30 = vld [vmem:[#allocation4 + $0x128] sm:$0xff]   ;;  %v6713_v52 = vld [vmem:[#allocation4 + $0x138] sm:$0xff]  }
 0x657   :  { %v4199_v12 = vpop.f32.mrb[145].mxu1  ;;  %v4300_v37 = vadd.f32 %v8304_v24, %v4197_v35  ;;  %v6714_v32 = vld [vmem:[%s8491_s7] sm:$0xff]   ;;  %v6715_v50 = vld [vmem:[%s8491_s7 + $0x8] sm:$0xff]  }
 0x658   :  { %v4375_v28 = vmax.f32 %v4362_v0, %v4363_v9  ;;  %v4201_v34 = vpop.f32.mrb[146].mxu1  ;;  %v4301_v20 = vadd.f32 %v8308_v16, %v4199_v12  ;;  %v6716_v0 = vld [vmem:[%s8491_s7 + $0x10] sm:$0xff]   ;;  %v6719_v9 = vld [vmem:[%s8491_s7 + $0x28] sm:$0xff]  }
 0x659   :  { %5698 = vmatpush3.bf16.msra.mxu1 %v6689_v4  ;;  %v4203_v61 = vpop.f32.mrb[147].mxu1  ;;  %v4302_v21 = vadd.f32 %v8304_v24, %v4201_v34  ;;  %v4340_v44 = vmax.f32 %v4300_v37, 0.0  ;;  %v6717_v4 = vld [vmem:[%s8491_s7 + $0x18] sm:$0xff]   ;;  %v6720_v34 = vld [vmem:[%s8491_s7 + $0x30] sm:$0xff]  }
 0x65a   :  { %v8355_v17 = vpack.c.bf16 %v4375_v28, %v4374_v5  ;;  %5703 = vmatprep.subr.bf16.mxu1 %v6797_v56  ;;  %v4303_v46 = vadd.f32 %v8308_v16, %v4203_v61  ;;  %v4341_v36 = vmax.f32 %v4301_v20, 0.0  ;;  %v6718_v5 = vld [vmem:[%s8491_s7 + $0x20] sm:$0xff]  }
 0x65b   :  { %v4342_v55 = vmax.f32 %v4302_v21, 0.0 }
 0x65c   :  { %5700 = vmatmul.mubr.bf16.vlgmr.msra.gmra.mrb[156].mxu1 %v8318_v62  ;;  %v4343_v53 = vmax.f32 %v4303_v46, 0.0 }
 0x65d   :  { %5704 = vmatpush3.bf16.msra.mxu1 %v6690_v23  ;;  %5719 = vmatprep.mubr.msk.bf16.mxu1 %vm6798_vm1, %v6797_v56  ;;  %v6721_v23 = vld [vmem:[%s8491_s7 + $0x38] sm:$0xff]  }
 0x65e   :  { %v4207_v10 = vpop.f32.mrb[148].mxu1  ;;  %5705 = vmatprep.subr.bf16.mxu1 %v6797_v56 }
 0x65f   :  { %v4304_v13 = vadd.f32 %v8304_v24, %v4207_v10  ;;  %v4209_v7 = vpop.f32.mrb[149].mxu1 }
 0x660   :  { %v4305_v62 = vadd.f32 %v8308_v16, %v4209_v7  ;;  %v4211_v42 = vpop.f32.mrb[150].mxu1 }
 0x661   :  { %v4344_v22 = vmax.f32 %v4304_v13, 0.0  ;;  %v4306_v54 = vadd.f32 %v8304_v24, %v4211_v42  ;;  %5706 = vmatpush3.bf16.msra.mxu1 %v6691_v63  ;;  %v4213_v45 = vpop.f32.mrb[151].mxu1 }
 0x662   :  { %v4345_v8 = vmax.f32 %v4305_v62, 0.0  ;;  %v4307_v25 = vadd.f32 %v8308_v16, %v4213_v45  ;;  %5707 = vmatprep.subr.bf16.mxu1 %v6797_v56  ;;  %v6695_v16 = vld [vmem:[#allocation4 + $0xa8] sm:$0xff]  }
 0x663   :  { %v4364_v19 = vmax.f32 %v4340_v44, %v4344_v22  ;;  %v4346_v41 = vmax.f32 %v4306_v54, 0.0 }
 0x664   :  { %v4365_v26 = vmax.f32 %v4341_v36, %v4345_v8  ;;  %v4347_v49 = vmax.f32 %v4307_v25, 0.0 }
 0x665   :  { %v4366_v60 = vmax.f32 %v4342_v55, %v4346_v41  ;;  %5708 = vmatpush3.bf16.msra.mxu1 %v6692_v58  ;;  %v5581_v55 = vld [vmem:[%s8490_s6] ss:$0 sm:$0xff] }
 0x666   :  { %v4376_v47 = vmax.f32 %v4364_v19, %v4365_v26  ;;  %v4367_v24 = vmax.f32 %v4343_v53, %v4347_v49  ;;  %5709 = vmatprep.subr.bf16.mxu1 %v6797_v56 }
 0x668   :  { %v4377_v38 = vmax.f32 %v4366_v60, %v4367_v24 }
 0x669   :  { %5710 = vmatpush3.bf16.msra.mxu1 %v6693_v57 }
 0x66a   :  { %v8372_v15 = vpack.c.bf16 %v4377_v38, %v4376_v47  ;;  %5711 = vmatprep.subr.bf16.mxu1 %v6797_v56  ;;  %v6722_v38 = vld [vmem:[%s8493_s9] sm:$0xff]  }
 0x66d   :  { %5712 = vmatpush3.bf16.msra.mxu1 %v6694_v1 }
 0x66e   :  { %5713 = vmatprep.subr.bf16.mxu1 %v6797_v56 }
 0x671   :  { %5714 = vmatpush3.bf16.msra.mxu1 %v6695_v16  ;;  %v6724_v16 = vld [vmem:[%s8493_s9 + $0x10] sm:$0xff]  }
 0x672   :  { %5715 = vmatprep.subr.bf16.mxu1 %v6797_v56 }
 0x675   :  { %5716 = vmatpush3.bf16.msra.mxu1 %v6696_v33  ;;  %v6725_v33 = vld [vmem:[%s8493_s9 + $0x18] sm:$0xff]  }
 0x676   :  { %5717 = vmatprep.subr.bf16.mxu1 %v6797_v56 }
 0x679   :  { %5718 = vmatpush3.bf16.msra.mxu1 %v6697_v2  ;;  %v6726_v2 = vld [vmem:[%s8493_s9 + $0x20] sm:$0xff]  }
 0x67a   :  { %5723 = vmatprep.subr.bf16.mxu1 %v6797_v56 }
 0x67c   :  { %5720 = vmatmul.mubr.bf16.vlgmr.msra.gmra.mrb[160].mxu1 %v8341_v14  ;;  %v6703_v14 = vld [vmem:[#allocation4 + $0xe8] sm:$0xff]  }
 0x67d   :  { %5724 = vmatpush3.bf16.msra.mxu1 %v6698_v11  ;;  %5739 = vmatprep.mubr.msk.bf16.mxu1 %vm6798_vm1, %v6797_v56  ;;  %v6727_v11 = vld [vmem:[%s8493_s9 + $0x28] sm:$0xff]  }
 0x67e   :  { %5725 = vmatprep.subr.bf16.mxu1 %v6797_v56 }
 0x681   :  { %5726 = vmatpush3.bf16.msra.mxu1 %v6699_v3  ;;  %v6728_v3 = vld [vmem:[%s8493_s9 + $0x30] sm:$0xff]  }
 0x682   :  { %5727 = vmatprep.subr.bf16.mxu1 %v6797_v56 }
 0x685   :  { %5728 = vmatpush3.bf16.msra.mxu1 %v6700_v6  ;;  %v6729_v6 = vld [vmem:[%s8493_s9 + $0x38] sm:$0xff]  }
 0x686   :  { %5729 = vmatprep.subr.bf16.mxu1 %v6797_v56 }
 0x689   :  { %5730 = vmatpush3.bf16.msra.mxu1 %v6701_v31  ;;  %v5582_v31 = vld [vmem:[%s8492_s8] ss:$0 sm:$0xff] }
 0x68a   :  { %5731 = vmatprep.subr.bf16.mxu1 %v6797_v56 }
 0x68d   :  { %5732 = vmatpush3.bf16.msra.mxu1 %v6702_v18 }
 0x68e   :  { %5733 = vmatprep.subr.bf16.mxu1 %v6797_v56 }
 0x691   :  { %5734 = vmatpush3.bf16.msra.mxu1 %v6703_v14 }
 0x692   :  { %5735 = vmatprep.subr.bf16.mxu1 %v6797_v56 }
 0x695   :  { %5736 = vmatpush3.bf16.msra.mxu1 %v6704_v51 }
 0x696   :  { %5737 = vmatprep.subr.bf16.mxu1 %v6797_v56 }
 0x699   :  { %5738 = vmatpush3.bf16.msra.mxu1 %v6705_v59 }
 0x69a   :  { %5743 = vmatprep.subr.bf16.mxu1 %v6797_v56 }
 0x69c   :  { %5740 = vmatmul.mubr.bf16.vlgmr.msra.gmra.mrb[164].mxu1 %v8355_v17 }
 0x69d   :  { %5744 = vmatpush3.bf16.msra.mxu1 %v6706_v48  ;;  %5759 = vmatprep.mubr.msk.bf16.mxu1 %vm6798_vm1, %v6797_v56 }
 0x69e   :  { %5745 = vmatprep.subr.bf16.mxu1 %v6797_v56 }
 0x6a1   :  { %5746 = vmatpush3.bf16.msra.mxu1 %v6707_v27 }
 0x6a2   :  { %5747 = vmatprep.subr.bf16.mxu1 %v6797_v56 }
 0x6a5   :  { %5748 = vmatpush3.bf16.msra.mxu1 %v6708_v43 }
 0x6a6   :  { %5749 = vmatprep.subr.bf16.mxu1 %v6797_v56 }
 0x6a9   :  { %5750 = vmatpush3.bf16.msra.mxu1 %v6709_v39 }
 0x6aa   :  { %5751 = vmatprep.subr.bf16.mxu1 %v6797_v56 }
 0x6ad   :  { %5752 = vmatpush3.bf16.msra.mxu1 %v6710_v29 }
 0x6ae   :  { %5753 = vmatprep.subr.bf16.mxu1 %v6797_v56 }
 0x6b1   :  { %5754 = vmatpush3.bf16.msra.mxu1 %v6711_v30 }
 0x6b2   :  { %5755 = vmatprep.subr.bf16.mxu1 %v6797_v56 }
 0x6b5   :  { %5756 = vmatpush3.bf16.msra.mxu1 %v6712_v40 }
 0x6b6   :  { %5757 = vmatprep.subr.bf16.mxu1 %v6797_v56 }
 0x6b9   :  { %5758 = vmatpush3.bf16.msra.mxu1 %v6713_v52 }
 0x6ba   :  { %5763 = vmatprep.subr.bf16.mxu1 %v6797_v56 }
 0x6bc   :  { %5760 = vmatmul.mubr.bf16.vlgmr.msra.gmra.mrb[168].mxu1 %v8372_v15  ;;  %v6723_v15 = vld [vmem:[%s8493_s9 + $0x8] sm:$0xff]  }
 0x6bd   :  { %5779 = vmatprep.mubr.msk.bf16.mxu1 %vm6798_vm1, %v6797_v56  ;;  %5764 = vmatpush3.bf16.msra.mxu1 %v6714_v32 }
 0x6be   :  { %5765 = vmatprep.subr.bf16.mxu1 %v6797_v56 }
 0x6c1   :  { %5766 = vmatpush3.bf16.msra.mxu1 %v6715_v50 }
 0x6c2   :  { %5767 = vmatprep.subr.bf16.mxu1 %v6797_v56 }
 0x6c5   :  { %5768 = vmatpush3.bf16.msra.mxu1 %v6716_v0 }
 0x6c6   :  { %5769 = vmatprep.subr.bf16.mxu1 %v6797_v56 }
 0x6c9   :  { %5770 = vmatpush3.bf16.msra.mxu1 %v6717_v4 }
 0x6ca   :  { %5771 = vmatprep.subr.bf16.mxu1 %v6797_v56 }
 0x6cd   :  { %5772 = vmatpush3.bf16.msra.mxu1 %v6718_v5 }
 0x6ce   :  { %5773 = vmatprep.subr.bf16.mxu1 %v6797_v56 }
 0x6d1   :  { %5774 = vmatpush3.bf16.msra.mxu1 %v6719_v9 }
 0x6d2   :  { %5775 = vmatprep.subr.bf16.mxu1 %v6797_v56 }
 0x6d5   :  { %5776 = vmatpush3.bf16.msra.mxu1 %v6720_v34 }
 0x6d6   :  { %5777 = vmatprep.subr.bf16.mxu1 %v6797_v56 }
 0x6d9   :  { %5778 = vmatpush3.bf16.msra.mxu1 %v6721_v23 }
 0x6da   :  { %5783 = vmatprep.subr.bf16.mxu1 %v6797_v56 }
 0x70f   :  { %v4498_v35 = vpop.f32.mrb[152].mxu1 }
 0x710   :  { %v5681_v12 = vpop.f32.mrb[153].mxu1 }
 0x711   :  { %v4501_v28 = vpop.f32.mrb[154].mxu1 }
 0x712   :  { %v5682_v61 = vpop.f32.mrb[155].mxu1 }
 0x72f   :  { %v4587_v17 = vpop.f32.mrb[156].mxu1 }
 0x730   :  { %v4588_v37 = vadd.f32 %v4587_v17, %v4498_v35  ;;  %v5701_v63 = vpop.f32.mrb[157].mxu1 }
 0x731   :  { %v4590_v20 = vpop.f32.mrb[158].mxu1 }
 0x732   :  { %v4591_v10 = vadd.f32 %v4590_v20, %v4501_v28  ;;  %v5702_v21 = vpop.f32.mrb[159].mxu1 }
 0x74f   :  { %v4693_v13 = vpop.f32.mrb[160].mxu1 }
 0x750   :  { %v4700_v7 = vadd.f32 %v4693_v13, %v4588_v37  ;;  %v5721_v46 = vpop.f32.mrb[161].mxu1 }
 0x751   :  { %v4696_v62 = vpop.f32.mrb[162].mxu1 }
 0x752   :  { %v4701_v42 = vadd.f32 %v4696_v62, %v4591_v10  ;;  %v5722_v44 = vpop.f32.mrb[163].mxu1 }
 0x76f   :  { %v4801_v22 = vpop.f32.mrb[164].mxu1 }
 0x770   :  { %v4808_v54 = vadd.f32 %v4801_v22, %v4700_v7  ;;  %v5741_v45 = vpop.f32.mrb[165].mxu1 }
 0x771   :  { %v4804_v58 = vpop.f32.mrb[166].mxu1 }
 0x772   :  { %v4809_v36 = vadd.f32 %v4804_v58, %v4701_v42  ;;  %v5742_v8 = vpop.f32.mrb[167].mxu1 }
 0x78f   :  { %v4909_v25 = vpop.f32.mrb[168].mxu1 }
 0x790   :  { %v4916_v19 = vadd.f32 %v4909_v25, %v4808_v54  ;;  %v5761_v41 = vpop.f32.mrb[169].mxu1 }
 0x791   :  { %v4912_v53 = vpop.f32.mrb[170].mxu1 }
 0x792   :  { %v4925_v26 = vadd.f32 %v5581_v55, %v4916_v19  ;;  %v4917_v49 = vadd.f32 %v4912_v53, %v4809_v36  ;;  %v5762_v60 = vpop.f32.mrb[171].mxu1 }
 0x794   :  { %v4926_v57 = vadd.f32 %v5581_v55, %v4917_v49  ;;  %v4927_v47 = vmax.f32 %v4925_v26, 0.0 }
 0x796   :  { %v4928_v24 = vmax.f32 %v4926_v57, 0.0 }
 0x798   :  { %v4929_v1 = vpack.c.bf16 %v4928_v24, %v4927_v47 }
 0x79a   :  { %5780 = vmatmul.mubr.bf16.vlgmr.msra.gmra.mrb[172].mxu1 %v4929_v1 }
 0x79b   :  { %5784 = vmatpush3.bf16.msra.mxu1 %v6722_v38  ;;  %5799 = vmatprep.mubr.msk.bf16.mxu1 %vm6798_vm1, %v6797_v56 }
 0x79c   :  { %5785 = vmatprep.subr.bf16.mxu1 %v6797_v56 }
 0x79f   :  { %5786 = vmatpush3.bf16.msra.mxu1 %v6723_v15 }
 0x7a0   :  { %5787 = vmatprep.subr.bf16.mxu1 %v6797_v56 }
 0x7a3   :  { %5788 = vmatpush3.bf16.msra.mxu1 %v6724_v16 }
 0x7a4   :  { %5789 = vmatprep.subr.bf16.mxu1 %v6797_v56 }
 0x7a7   :  { %5790 = vmatpush3.bf16.msra.mxu1 %v6725_v33 }
 0x7a8   :  { %5791 = vmatprep.subr.bf16.mxu1 %v6797_v56 }
 0x7ab   :  { %5792 = vmatpush3.bf16.msra.mxu1 %v6726_v2 }
 0x7ac   :  { %5793 = vmatprep.subr.bf16.mxu1 %v6797_v56 }
 0x7af   :  { %5794 = vmatpush3.bf16.msra.mxu1 %v6727_v11 }
 0x7b0   :  { %5795 = vmatprep.subr.bf16.mxu1 %v6797_v56 }
 0x7b3   :  { %5796 = vmatpush3.bf16.msra.mxu1 %v6728_v3 }
 0x7b4   :  { %5797 = vmatprep.subr.bf16.mxu1 %v6797_v56  ;;  %v5591_v56 = vld [vmem:[%s8494_s10] ss:$0 sm:$0xff] }
 0x7b7   :  { %5798 = vmatpush3.bf16.msra.mxu1 %v6729_v6 }
 0x86d   :  { %v5035_v18 = vpop.f32.mrb[172].mxu1 }
 0x86e   :  { %v5036_v14 = vadd.f32 %v5582_v31, %v5035_v18  ;;  %v5781_v51 = vpop.f32.mrb[173].mxu1 }
 0x86f   :  { %v5038_v59 = vpop.f32.mrb[174].mxu1 }
 0x870   :  { %v5039_v48 = vadd.f32 %v5582_v31, %v5038_v59  ;;  %v5782_v27 = vpop.f32.mrb[175].mxu1  ;;  %v5042_v43 = vmax.f32 %v5036_v14, 0.0 }
 0x872   :  { %v5043_v39 = vmax.f32 %v5039_v48, 0.0 }
 0x874   :  { %v5044_v29 = vpack.c.bf16 %v5043_v39, %v5042_v43 }
 0x876   :  { %5800 = vmatmul.mubr.bf16.vlgmr.msra.gmra.mrb[176].mxu1 %v5044_v29 }
 0x949   :  { %v5150_v30 = vpop.f32.mrb[176].mxu1 }
 0x94a   :  { %v5151_v40 = vadd.f32 %v5591_v56, %v5150_v30  ;;  %v5801_v52 = vpop.f32.mrb[177].mxu1 }
 0x94b   :  { %v5153_v32 = vpop.f32.mrb[178].mxu1 }
 0x94c   :  { %5157 = vst [vmem:[%s8495_s11] sm:$0xff] %v5151_v40  ;;  %v5154_v50 = vadd.f32 %v5591_v56, %v5153_v32  ;;  %v5802_v0 = vpop.f32.mrb[179].mxu1 }
 0x94e   :  { %5158 = vst [vmem:[%s8495_s11 + $0x8] sm:$0xff] %v5154_v50 }
 0x94f   :  { %5163 = vsyncpa [#allocation3], 1 }
 0x950   :  { %5164 = vsyncpa [#allocation5], 1 }

</bundles_post_ra>
